<compile_context>
chip_gen: v5e
topology: v5e:2x2
jax: 0.10.0
libtpu: 0.0.40
codegen_flags: <defaults>
</compile_context>

<pallas_src>
import jax
import jax.numpy as jnp
from jax.experimental import pallas as pl
from jax.experimental.pallas import tpu as pltpu

LANE = 128


def _ru(a, b):
    return (a + b - 1) // b * b


def _make_kernel(TH, H, W, Wp, SLAB, Ly, pp):
    PREF = 8                       # zero prefix rows so the "-1" tap reads 0
    BASE = PREF + Wp               # h1_scr index of output (row 0, col 0)
    SLAB_STRIDE = TH * Wp          # flat offset between consecutive tile slabs

    def kernel(x_ref, w1_ref, w2_ref, w3_ref, b1_ref, b2_ref, b3_ref,
               out_ref, h1_scr):
        t = pl.program_id(1)
        slab_start = pl.multiple_of(t * SLAB_STRIDE, 8)

        # --- conv1 (1x1, BN scale folded into weight) + bias + relu ----------
        x_slab = x_ref[0, pl.ds(slab_start, SLAB), :]                 # (SLAB, cp) bf16
        h1 = jnp.dot(x_slab, w1_ref[...], preferred_element_type=jnp.float32)
        h1 = jnp.maximum(h1 + b1_ref[...], 0.0)
        h1_scr[pl.ds(PREF, SLAB), :] = h1.astype(h1_scr.dtype)        # (SLAB, pp) bf16

        # --- zero the conv-padding regions of the h1 slab --------------------
        # (x is zero-padded, but bias+relu leaves relu(b1) there; a few tiny
        #  stores instead of a full SLAB x pp mask multiply)
        zrow = jnp.zeros((8, pp), h1_scr.dtype)
        h1_scr[pl.ds(0, 8), :] = zrow                                 # prefix ("-1" tap)
        h1_scr[pl.ds(PREF + SLAB, 8), :] = zrow                       # tail (deterministic)
        zcol = jnp.zeros((Wp - W, pp), h1_scr.dtype)
        for s in range(TH + 2):                                       # right pad columns
            h1_scr[pl.ds(PREF + s * Wp + W, Wp - W), :] = zcol
        zline = jnp.zeros((Wp, pp), h1_scr.dtype)

        @pl.when(t == 0)                                              # global top pad row
        def _():
            h1_scr[pl.ds(PREF, Wp), :] = zline

        r0 = H + 1 - t * TH                                           # global bottom pad row
        @pl.when(jnp.logical_and(r0 >= 0, r0 <= TH + 1))
        def _():
            h1_scr[pl.ds(pl.multiple_of(PREF + r0 * Wp, 8), Wp), :] = zline

        # --- conv2 (3x3, pad=1) as 9 shifted accumulating MXU dots -----------
        acc = None
        for k in range(9):
            ky, kx = k // 3, k % 3
            off = BASE + (ky - 1) * Wp + (kx - 1)                     # static offset
            p = jnp.dot(h1_scr[pl.ds(off, Ly), :],
                        w2_ref[k * pp:(k + 1) * pp, :],
                        preferred_element_type=jnp.float32)
            acc = p if acc is None else acc + p
        h2 = jnp.maximum(acc + b2_ref[...], 0.0)                      # (Ly, pp) f32

        # --- conv3 (1x1) + bias + identity residual + relu -------------------
        h3 = jnp.dot(h2.astype(jnp.bfloat16), w3_ref[...],
                     preferred_element_type=jnp.float32)              # (Ly, cp) f32
        res = x_ref[0, pl.ds(slab_start + Wp, Ly), :].astype(jnp.float32)
        y = jnp.maximum(h3 + b3_ref[...] + res, 0.0)

        out_ref[0] = y.astype(out_ref.dtype)                          # dense (Ly, cp) block

    return kernel


def bottleneck_forward(x_nchw, params, tile_h=16):
    """x_nchw: (N, Cin, H, W) float32. Returns (N, Cout, H, W) float32."""
    N, Cin, H, W = x_nchw.shape
    w1, w2, w3 = params["w1"], params["w2"], params["w3"]
    planes = w1.shape[1]
    Cout = w3.shape[1]
    assert Cout == Cin, "identity residual (downsample=None) needs inplanes == planes*4"

    # Lane-dense channel padding (multiples of 128).
    cp = _ru(Cin, LANE)            # padded x / output channels
    pp = _ru(planes, LANE)         # padded bottleneck channels

    # Spatial tiling / padding geometry (pad columns on the RIGHT of each row;
    # at least one zero column so flat +-1 shifts never wrap into real data).
    TH = min(tile_h, _ru(H, 8))                   # output rows per grid tile
    H_pad = _ru(H, TH)
    Wp = _ru(W + 1, 8)                            # padded row stride (sublane aligned)
    Hp = H_pad + 2                                # + top/bottom halo rows
    P = Hp * Wp                                   # flat padded length per image
    num_t = H_pad // TH
    SLAB = (TH + 2) * Wp                          # tile slab (1-row halo each side)
    Ly = TH * Wp                                  # dense output span per tile

    # --- fold BN scales into the conv weights (exact for eval-mode BN) -------
    s1 = params["s1"].astype(jnp.float32)
    s2 = params["s2"].astype(jnp.float32)
    s3 = params["s3"].astype(jnp.float32)
    w1f = w1.astype(jnp.float32) * s1[None, :]
    w2f = w2.astype(jnp.float32) * s2[None, None, None, :]
    w3f = w3.astype(jnp.float32) * s3[None, :]

    w1_p = jnp.zeros((cp, pp), jnp.float32).at[:Cin, :planes].set(w1f).astype(jnp.bfloat16)
    w2_p = (jnp.zeros((3, 3, pp, pp), jnp.float32).at[:, :, :planes, :planes].set(w2f)
            .reshape(9 * pp, pp).astype(jnp.bfloat16))
    w3_p = jnp.zeros((pp, cp), jnp.float32).at[:planes, :Cout].set(w3f).astype(jnp.bfloat16)

    def vec_pad(v, C):  # per-channel BN biases as (1, C) f32, zero-padded
        return jnp.zeros((1, C), jnp.float32).at[0, :v.shape[0]].set(v.astype(jnp.float32))

    # --- glue: NCHW -> zero-padded flat NHWC (bf16) ---------------------------
    x_nhwc = jnp.transpose(x_nchw, (0, 2, 3, 1)).astype(jnp.float32)
    x_pad = jnp.pad(x_nhwc, ((0, 0),
                             (1, 1 + H_pad - H),
                             (0, Wp - W),
                             (0, cp - Cin)))
    x_flat = x_pad.reshape(N, P, cp).astype(jnp.bfloat16)

    kernel = _make_kernel(TH, H, W, Wp, SLAB, Ly, pp)

    out_flat = pl.pallas_call(
        kernel,
        out_shape=jax.ShapeDtypeStruct((N, H_pad * Wp, cp), jnp.bfloat16),
        grid_spec=pltpu.PrefetchScalarGridSpec(
            num_scalar_prefetch=0,
            grid=(N, num_t),
            in_specs=[
                pl.BlockSpec((1, P, cp), lambda n, t: (n, 0, 0)),      # x (full padded image)
                pl.BlockSpec((cp, pp), lambda n, t: (0, 0)),           # conv1 weight (BN-folded)
                pl.BlockSpec((9 * pp, pp), lambda n, t: (0, 0)),       # conv2 weight (9 taps)
                pl.BlockSpec((pp, cp), lambda n, t: (0, 0)),           # conv3 weight (BN-folded)
                pl.BlockSpec((1, pp), lambda n, t: (0, 0)),            # bn1 bias
                pl.BlockSpec((1, pp), lambda n, t: (0, 0)),            # bn2 bias
                pl.BlockSpec((1, cp), lambda n, t: (0, 0)),            # bn3 bias
            ],
            out_specs=pl.BlockSpec((1, Ly, cp), lambda n, t: (n, t, 0)),
            scratch_shapes=[
                pltpu.VMEM((SLAB + 16, pp), jnp.bfloat16),             # h1 slab (+8-row borders)
            ],
        ),
        compiler_params=pltpu.CompilerParams(
            dimension_semantics=("parallel", "parallel"),
            vmem_limit_bytes=64 * 1024 * 1024,
        ),
    )(x_flat, w1_p, w2_p, w3_p,
      vec_pad(params["b1"], pp), vec_pad(params["b2"], pp), vec_pad(params["b3"], cp))

    # Crop pad rows/columns/channels, return NCHW f32 to match PyTorch interface.
    # (Chained Bottleneck blocks could stay in the padded flat NHWC bf16 layout.)
    out = out_flat.reshape(N, H_pad, Wp, cp)[:, :H, :W, :Cout].astype(jnp.float32)
    return jnp.transpose(out, (0, 3, 1, 2))


def bottleneck_reference(x_nchw, params):
    """Pure-JAX f32 reference (lax.conv) with identical folded-BN semantics."""
    x = jnp.transpose(x_nchw, (0, 2, 3, 1)).astype(jnp.float32)
    dn = ("NHWC", "HWIO", "NHWC")
    h = jax.lax.conv_general_dilated(x, params["w1"][None, None], (1, 1), "VALID",
                                     dimension_numbers=dn)
    h = jnp.maximum(h * params["s1"] + params["b1"], 0.0)
    h = jax.lax.conv_general_dilated(h, params["w2"], (1, 1), ((1, 1), (1, 1)),
                                     dimension_numbers=dn)
    h = jnp.maximum(h * params["s2"] + params["b2"], 0.0)
    h = jax.lax.conv_general_dilated(h, params["w3"][None, None], (1, 1), "VALID",
                                     dimension_numbers=dn)
    h = h * params["s3"] + params["b3"]
    out = jnp.maximum(h + x, 0.0)
    return jnp.transpose(out, (0, 3, 1, 2))


if __name__ == "__main__":
    key = jax.random.PRNGKey(0)
    ks = jax.random.split(key, 16)

    N, H, W = 2, 16, 16
    planes = 4
    inplanes = planes * 4           # = 16 so the identity residual is valid
    Cout = planes * 4
    eps = 1e-5

    def bn_fold(kg, kb, km, kv, C):
        gamma = 1.0 + 0.1 * jax.random.normal(kg, (C,), jnp.float32)
        beta = 0.1 * jax.random.normal(kb, (C,), jnp.float32)
        mean = 0.1 * jax.random.normal(km, (C,), jnp.float32)
        var = 0.5 + jax.random.uniform(kv, (C,), jnp.float32)
        scale = gamma / jnp.sqrt(var + eps)
        bias = beta - mean * scale
        return scale, bias

    s1, b1 = bn_fold(ks[3], ks[4], ks[5], ks[6], planes)
    s2, b2 = bn_fold(ks[7], ks[8], ks[9], ks[10], planes)
    s3, b3 = bn_fold(ks[11], ks[12], ks[13], ks[14], Cout)

    params = dict(
        w1=0.2 * jax.random.normal(ks[0], (inplanes, planes), jnp.float32),
        w2=0.2 * jax.random.normal(ks[1], (3, 3, planes, planes), jnp.float32),
        w3=0.2 * jax.random.normal(ks[2], (planes, Cout), jnp.float32),
        s1=s1, b1=b1, s2=s2, b2=b2, s3=s3, b3=b3,
    )

    x = jax.random.normal(ks[15], (N, inplanes, H, W), jnp.float32)

    ref = jax.block_until_ready(bottleneck_reference(x, params))

    # Default tiling (single row-tile per image) and a multi-tile configuration
    # (exercises the halo / top-pad / bottom-pad zeroing paths).
    for th in (16, 8):
        out = jax.block_until_ready(bottleneck_forward(x, params, tile_h=th))
        assert out.shape == (N, Cout, H, W), out.shape
        max_err = float(jnp.max(jnp.abs(out - ref)))
        assert jnp.allclose(out, ref, atol=5e-2, rtol=5e-2), \
            f"tile_h={th}: max abs err = {max_err}"

    print("KERNEL_OK")
</pallas_src>

<mosaic_0001>
module attributes {stable_mosaic.version = 11 : i64} {
  func.func @kernel(%arg0: i32, %arg1: i32, %arg2: memref<1x432x128xbf16, #tpu.memory_space<vmem>>, %arg3: memref<128x128xbf16, #tpu.memory_space<vmem>>, %arg4: memref<1152x128xbf16, #tpu.memory_space<vmem>>, %arg5: memref<128x128xbf16, #tpu.memory_space<vmem>>, %arg6: memref<1x128xf32, #tpu.memory_space<vmem>>, %arg7: memref<1x128xf32, #tpu.memory_space<vmem>>, %arg8: memref<1x128xf32, #tpu.memory_space<vmem>>, %arg9: memref<1x384x128xbf16, #tpu.memory_space<vmem>>, %arg10: memref<448x128xbf16, #tpu.memory_space<vmem>>) attributes {dimension_semantics = [#tpu.dimension_semantics<parallel>, #tpu.dimension_semantics<parallel>], iteration_bounds = array<i64: 2, 1>, scalar_prefetch = 0 : i64, scratch_operands = 1 : i64, tpu.core_type = #tpu.core_type<tc>, window_params = [{transform_indices = @transform_0, window_bounds = array<i64: 1, 432, 128>}, {pipeline_mode = #tpu.pipeline_mode<synchronous>, transform_indices = @transform_1, window_bounds = array<i64: 128, 128>}, {pipeline_mode = #tpu.pipeline_mode<synchronous>, transform_indices = @transform_2, window_bounds = array<i64: 1152, 128>}, {pipeline_mode = #tpu.pipeline_mode<synchronous>, transform_indices = @transform_3, window_bounds = array<i64: 128, 128>}, {pipeline_mode = #tpu.pipeline_mode<synchronous>, transform_indices = @transform_4, window_bounds = array<i64: 1, 128>}, {pipeline_mode = #tpu.pipeline_mode<synchronous>, transform_indices = @transform_5, window_bounds = array<i64: 1, 128>}, {pipeline_mode = #tpu.pipeline_mode<synchronous>, transform_indices = @transform_6, window_bounds = array<i64: 1, 128>}, {transform_indices = @transform_7, window_bounds = array<i64: 1, 384, 128>}]} {
    %c384_i32 = arith.constant 384 : i32
    %0 = arith.muli %arg1, %c384_i32 : i32
    %1 = tpu.assume_multiple %0, 8 : i32
    %c0 = arith.constant 0 : index
    %2 = arith.index_cast %1 : i32 to index
    %c0_0 = arith.constant 0 : index
    %3 = vector.load %arg2[%c0, %2, %c0_0] : memref<1x432x128xbf16, #tpu.memory_space<vmem>>, vector<1x432x128xbf16>
    %4 = vector.shape_cast %3 : vector<1x432x128xbf16> to vector<432x128xbf16>
    %c0_1 = arith.constant 0 : index
    %c0_2 = arith.constant 0 : index
    %5 = vector.load %arg3[%c0_1, %c0_2] : memref<128x128xbf16, #tpu.memory_space<vmem>>, vector<128x128xbf16>
    %cst = arith.constant dense<0.000000e+00> : vector<432x128xf32>
    %6 = tpu.matmul %4, %5, %cst {dimension_numbers = #tpu.dot_dimension_numbers<[1], [0], [0], [1], [0, 0, 1, 1], [], []>} : vector<432x128xbf16>, vector<128x128xbf16>, vector<432x128xf32> -> vector<432x128xf32>
    %c0_3 = arith.constant 0 : index
    %c0_4 = arith.constant 0 : index
    %7 = vector.load %arg6[%c0_3, %c0_4] : memref<1x128xf32, #tpu.memory_space<vmem>>, vector<1x128xf32>
    %8 = vector.broadcast %7 : vector<1x128xf32> to vector<432x128xf32>
    %9 = arith.addf %6, %8 : vector<432x128xf32>
    %cst_5 = arith.constant 0.000000e+00 : f32
    %10 = vector.broadcast %cst_5 : f32 to vector<432x128xf32>
    %11 = arith.maximumf %9, %10 : vector<432x128xf32>
    %12 = arith.truncf %11 : vector<432x128xf32> to vector<432x128xbf16>
    %c8 = arith.constant 8 : index
    %c0_6 = arith.constant 0 : index
    %13 = vector.load %arg10[%c8, %c0_6] : memref<448x128xbf16, #tpu.memory_space<vmem>>, vector<432x128xbf16>
    tpu.vector_store %arg10[%c8, %c0_6], %12 {strides = array<i32>} : memref<448x128xbf16, #tpu.memory_space<vmem>>, vector<432x128xbf16>,
    %cst_7 = arith.constant 0.000000e+00 : bf16
    %14 = vector.broadcast %cst_7 : bf16 to vector<8x128xbf16>
    %c0_8 = arith.constant 0 : index
    %c0_9 = arith.constant 0 : index
    %15 = vector.load %arg10[%c0_8, %c0_9] : memref<448x128xbf16, #tpu.memory_space<vmem>>, vector<8x128xbf16>
    tpu.vector_store %arg10[%c0_8, %c0_9], %14 {strides = array<i32>} : memref<448x128xbf16, #tpu.memory_space<vmem>>, vector<8x128xbf16>,
    %c440 = arith.constant 440 : index
    %c0_10 = arith.constant 0 : index
    %16 = vector.load %arg10[%c440, %c0_10] : memref<448x128xbf16, #tpu.memory_space<vmem>>, vector<8x128xbf16>
    tpu.vector_store %arg10[%c440, %c0_10], %14 {strides = array<i32>} : memref<448x128xbf16, #tpu.memory_space<vmem>>, vector<8x128xbf16>,
    %cst_11 = arith.constant 0.000000e+00 : bf16
    %17 = vector.broadcast %cst_11 : bf16 to vector<8x128xbf16>
    %c24 = arith.constant 24 : index
    %c0_12 = arith.constant 0 : index
    %18 = vector.load %arg10[%c24, %c0_12] : memref<448x128xbf16, #tpu.memory_space<vmem>>, vector<8x128xbf16>
    tpu.vector_store %arg10[%c24, %c0_12], %17 {strides = array<i32>} : memref<448x128xbf16, #tpu.memory_space<vmem>>, vector<8x128xbf16>,
    %c48 = arith.constant 48 : index
    %c0_13 = arith.constant 0 : index
    %19 = vector.load %arg10[%c48, %c0_13] : memref<448x128xbf16, #tpu.memory_space<vmem>>, vector<8x128xbf16>
    tpu.vector_store %arg10[%c48, %c0_13], %17 {strides = array<i32>} : memref<448x128xbf16, #tpu.memory_space<vmem>>, vector<8x128xbf16>,
    %c72 = arith.constant 72 : index
    %c0_14 = arith.constant 0 : index
    %20 = vector.load %arg10[%c72, %c0_14] : memref<448x128xbf16, #tpu.memory_space<vmem>>, vector<8x128xbf16>
    tpu.vector_store %arg10[%c72, %c0_14], %17 {strides = array<i32>} : memref<448x128xbf16, #tpu.memory_space<vmem>>, vector<8x128xbf16>,
    %c96 = arith.constant 96 : index
    %c0_15 = arith.constant 0 : index
    %21 = vector.load %arg10[%c96, %c0_15] : memref<448x128xbf16, #tpu.memory_space<vmem>>, vector<8x128xbf16>
    tpu.vector_store %arg10[%c96, %c0_15], %17 {strides = array<i32>} : memref<448x128xbf16, #tpu.memory_space<vmem>>, vector<8x128xbf16>,
    %c120 = arith.constant 120 : index
    %c0_16 = arith.constant 0 : index
    %22 = vector.load %arg10[%c120, %c0_16] : memref<448x128xbf16, #tpu.memory_space<vmem>>, vector<8x128xbf16>
    tpu.vector_store %arg10[%c120, %c0_16], %17 {strides = array<i32>} : memref<448x128xbf16, #tpu.memory_space<vmem>>, vector<8x128xbf16>,
    %c144 = arith.constant 144 : index
    %c0_17 = arith.constant 0 : index
    %23 = vector.load %arg10[%c144, %c0_17] : memref<448x128xbf16, #tpu.memory_space<vmem>>, vector<8x128xbf16>
    tpu.vector_store %arg10[%c144, %c0_17], %17 {strides = array<i32>} : memref<448x128xbf16, #tpu.memory_space<vmem>>, vector<8x128xbf16>,
    %c168 = arith.constant 168 : index
    %c0_18 = arith.constant 0 : index
    %24 = vector.load %arg10[%c168, %c0_18] : memref<448x128xbf16, #tpu.memory_space<vmem>>, vector<8x128xbf16>
    tpu.vector_store %arg10[%c168, %c0_18], %17 {strides = array<i32>} : memref<448x128xbf16, #tpu.memory_space<vmem>>, vector<8x128xbf16>,
    %c192 = arith.constant 192 : index
    %c0_19 = arith.constant 0 : index
    %25 = vector.load %arg10[%c192, %c0_19] : memref<448x128xbf16, #tpu.memory_space<vmem>>, vector<8x128xbf16>
    tpu.vector_store %arg10[%c192, %c0_19], %17 {strides = array<i32>} : memref<448x128xbf16, #tpu.memory_space<vmem>>, vector<8x128xbf16>,
    %c216 = arith.constant 216 : index
    %c0_20 = arith.constant 0 : index
    %26 = vector.load %arg10[%c216, %c0_20] : memref<448x128xbf16, #tpu.memory_space<vmem>>, vector<8x128xbf16>
    tpu.vector_store %arg10[%c216, %c0_20], %17 {strides = array<i32>} : memref<448x128xbf16, #tpu.memory_space<vmem>>, vector<8x128xbf16>,
    %c240 = arith.constant 240 : index
    %c0_21 = arith.constant 0 : index
    %27 = vector.load %arg10[%c240, %c0_21] : memref<448x128xbf16, #tpu.memory_space<vmem>>, vector<8x128xbf16>
    tpu.vector_store %arg10[%c240, %c0_21], %17 {strides = array<i32>} : memref<448x128xbf16, #tpu.memory_space<vmem>>, vector<8x128xbf16>,
    %c264 = arith.constant 264 : index
    %c0_22 = arith.constant 0 : index
    %28 = vector.load %arg10[%c264, %c0_22] : memref<448x128xbf16, #tpu.memory_space<vmem>>, vector<8x128xbf16>
    tpu.vector_store %arg10[%c264, %c0_22], %17 {strides = array<i32>} : memref<448x128xbf16, #tpu.memory_space<vmem>>, vector<8x128xbf16>,
    %c288 = arith.constant 288 : index
    %c0_23 = arith.constant 0 : index
    %29 = vector.load %arg10[%c288, %c0_23] : memref<448x128xbf16, #tpu.memory_space<vmem>>, vector<8x128xbf16>
    tpu.vector_store %arg10[%c288, %c0_23], %17 {strides = array<i32>} : memref<448x128xbf16, #tpu.memory_space<vmem>>, vector<8x128xbf16>,
    %c312 = arith.constant 312 : index
    %c0_24 = arith.constant 0 : index
    %30 = vector.load %arg10[%c312, %c0_24] : memref<448x128xbf16, #tpu.memory_space<vmem>>, vector<8x128xbf16>
    tpu.vector_store %arg10[%c312, %c0_24], %17 {strides = array<i32>} : memref<448x128xbf16, #tpu.memory_space<vmem>>, vector<8x128xbf16>,
    %c336 = arith.constant 336 : index
    %c0_25 = arith.constant 0 : index
    %31 = vector.load %arg10[%c336, %c0_25] : memref<448x128xbf16, #tpu.memory_space<vmem>>, vector<8x128xbf16>
    tpu.vector_store %arg10[%c336, %c0_25], %17 {strides = array<i32>} : memref<448x128xbf16, #tpu.memory_space<vmem>>, vector<8x128xbf16>,
    %c360 = arith.constant 360 : index
    %c0_26 = arith.constant 0 : index
    %32 = vector.load %arg10[%c360, %c0_26] : memref<448x128xbf16, #tpu.memory_space<vmem>>, vector<8x128xbf16>
    tpu.vector_store %arg10[%c360, %c0_26], %17 {strides = array<i32>} : memref<448x128xbf16, #tpu.memory_space<vmem>>, vector<8x128xbf16>,
    %c384 = arith.constant 384 : index
    %c0_27 = arith.constant 0 : index
    %33 = vector.load %arg10[%c384, %c0_27] : memref<448x128xbf16, #tpu.memory_space<vmem>>, vector<8x128xbf16>
    tpu.vector_store %arg10[%c384, %c0_27], %17 {strides = array<i32>} : memref<448x128xbf16, #tpu.memory_space<vmem>>, vector<8x128xbf16>,
    %c408 = arith.constant 408 : index
    %c0_28 = arith.constant 0 : index
    %34 = vector.load %arg10[%c408, %c0_28] : memref<448x128xbf16, #tpu.memory_space<vmem>>, vector<8x128xbf16>
    tpu.vector_store %arg10[%c408, %c0_28], %17 {strides = array<i32>} : memref<448x128xbf16, #tpu.memory_space<vmem>>, vector<8x128xbf16>,
    %c432 = arith.constant 432 : index
    %c0_29 = arith.constant 0 : index
    %35 = vector.load %arg10[%c432, %c0_29] : memref<448x128xbf16, #tpu.memory_space<vmem>>, vector<8x128xbf16>
    tpu.vector_store %arg10[%c432, %c0_29], %17 {strides = array<i32>} : memref<448x128xbf16, #tpu.memory_space<vmem>>, vector<8x128xbf16>,
    %cst_30 = arith.constant 0.000000e+00 : bf16
    %36 = vector.broadcast %cst_30 : bf16 to vector<24x128xbf16>
    %c0_i32 = arith.constant 0 : i32
    %37 = arith.cmpi eq, %arg1, %c0_i32 : i32
    %38 = arith.extui %37 : i1 to i32
    %c0_i32_31 = arith.constant 0 : i32
    %39 = arith.cmpi ne, %38, %c0_i32_31 : i32
    scf.if %39 {
      %c8_79 = arith.constant 8 : index
      %c0_80 = arith.constant 0 : index
      %105 = vector.load %arg10[%c8_79, %c0_80] : memref<448x128xbf16, #tpu.memory_space<vmem>>, vector<24x128xbf16>
      tpu.vector_store %arg10[%c8_79, %c0_80], %36 {strides = array<i32>} : memref<448x128xbf16, #tpu.memory_space<vmem>>, vector<24x128xbf16>,
    } else {
    }
    %c16_i32 = arith.constant 16 : i32
    %40 = arith.muli %arg1, %c16_i32 : i32
    %c17_i32 = arith.constant 17 : i32
    %41 = arith.subi %c17_i32, %40 : i32
    %c0_i32_32 = arith.constant 0 : i32
    %42 = arith.cmpi sge, %41, %c0_i32_32 : i32
    %c17_i32_33 = arith.constant 17 : i32
    %43 = arith.cmpi sle, %41, %c17_i32_33 : i32
    %44 = arith.andi %42, %43 : i1
    %45 = arith.extui %44 : i1 to i32
    %c0_i32_34 = arith.constant 0 : i32
    %46 = arith.cmpi ne, %45, %c0_i32_34 : i32
    scf.if %46 {
      %c24_i32_79 = arith.constant 24 : i32
      %105 = arith.muli %41, %c24_i32_79 : i32
      %c8_i32 = arith.constant 8 : i32
      %106 = arith.addi %c8_i32, %105 : i32
      %107 = tpu.assume_multiple %106, 8 : i32
      %108 = arith.index_cast %107 : i32 to index
      %c0_80 = arith.constant 0 : index
      %109 = vector.load %arg10[%108, %c0_80] : memref<448x128xbf16, #tpu.memory_space<vmem>>, vector<24x128xbf16>
      tpu.vector_store %arg10[%108, %c0_80], %36 {strides = array<i32>} : memref<448x128xbf16, #tpu.memory_space<vmem>>, vector<24x128xbf16>,
    } else {
    }
    %c7 = arith.constant 7 : index
    %c0_35 = arith.constant 0 : index
    %47 = vector.load %arg10[%c7, %c0_35] : memref<448x128xbf16, #tpu.memory_space<vmem>>, vector<384x128xbf16>
    %c0_36 = arith.constant 0 : index
    %c0_37 = arith.constant 0 : index
    %48 = vector.load %arg4[%c0_36, %c0_37] : memref<1152x128xbf16, #tpu.memory_space<vmem>>, vector<128x128xbf16>
    %cst_38 = arith.constant dense<0.000000e+00> : vector<384x128xf32>
    %49 = tpu.matmul %47, %48, %cst_38 {dimension_numbers = #tpu.dot_dimension_numbers<[1], [0], [0], [1], [0, 0, 1, 1], [], []>} : vector<384x128xbf16>, vector<128x128xbf16>, vector<384x128xf32> -> vector<384x128xf32>
    %c8_39 = arith.constant 8 : index
    %c0_40 = arith.constant 0 : index
    %50 = vector.load %arg10[%c8_39, %c0_40] : memref<448x128xbf16, #tpu.memory_space<vmem>>, vector<384x128xbf16>
    %c128 = arith.constant 128 : index
    %c0_41 = arith.constant 0 : index
    %51 = vector.load %arg4[%c128, %c0_41] : memref<1152x128xbf16, #tpu.memory_space<vmem>>, vector<128x128xbf16>
    %cst_42 = arith.constant dense<0.000000e+00> : vector<384x128xf32>
    %52 = tpu.matmul %50, %51, %cst_42 {dimension_numbers = #tpu.dot_dimension_numbers<[1], [0], [0], [1], [0, 0, 1, 1], [], []>} : vector<384x128xbf16>, vector<128x128xbf16>, vector<384x128xf32> -> vector<384x128xf32>
    %53 = arith.addf %49, %52 : vector<384x128xf32>
    %c9 = arith.constant 9 : index
    %c0_43 = arith.constant 0 : index
    %54 = vector.load %arg10[%c9, %c0_43] : memref<448x128xbf16, #tpu.memory_space<vmem>>, vector<384x128xbf16>
    %c256 = arith.constant 256 : index
    %c0_44 = arith.constant 0 : index
    %55 = vector.load %arg4[%c256, %c0_44] : memref<1152x128xbf16, #tpu.memory_space<vmem>>, vector<128x128xbf16>
    %cst_45 = arith.constant dense<0.000000e+00> : vector<384x128xf32>
    %56 = tpu.matmul %54, %55, %cst_45 {dimension_numbers = #tpu.dot_dimension_numbers<[1], [0], [0], [1], [0, 0, 1, 1], [], []>} : vector<384x128xbf16>, vector<128x128xbf16>, vector<384x128xf32> -> vector<384x128xf32>
    %57 = arith.addf %53, %56 : vector<384x128xf32>
    %c31 = arith.constant 31 : index
    %c0_46 = arith.constant 0 : index
    %58 = vector.load %arg10[%c31, %c0_46] : memref<448x128xbf16, #tpu.memory_space<vmem>>, vector<384x128xbf16>
    %c384_47 = arith.constant 384 : index
    %c0_48 = arith.constant 0 : index
    %59 = vector.load %arg4[%c384_47, %c0_48] : memref<1152x128xbf16, #tpu.memory_space<vmem>>, vector<128x128xbf16>
    %cst_49 = arith.constant dense<0.000000e+00> : vector<384x128xf32>
    %60 = tpu.matmul %58, %59, %cst_49 {dimension_numbers = #tpu.dot_dimension_numbers<[1], [0], [0], [1], [0, 0, 1, 1], [], []>} : vector<384x128xbf16>, vector<128x128xbf16>, vector<384x128xf32> -> vector<384x128xf32>
    %61 = arith.addf %57, %60 : vector<384x128xf32>
    %c32 = arith.constant 32 : index
    %c0_50 = arith.constant 0 : index
    %62 = vector.load %arg10[%c32, %c0_50] : memref<448x128xbf16, #tpu.memory_space<vmem>>, vector<384x128xbf16>
    %c512 = arith.constant 512 : index
    %c0_51 = arith.constant 0 : index
    %63 = vector.load %arg4[%c512, %c0_51] : memref<1152x128xbf16, #tpu.memory_space<vmem>>, vector<128x128xbf16>
    %cst_52 = arith.constant dense<0.000000e+00> : vector<384x128xf32>
    %64 = tpu.matmul %62, %63, %cst_52 {dimension_numbers = #tpu.dot_dimension_numbers<[1], [0], [0], [1], [0, 0, 1, 1], [], []>} : vector<384x128xbf16>, vector<128x128xbf16>, vector<384x128xf32> -> vector<384x128xf32>
    %65 = arith.addf %61, %64 : vector<384x128xf32>
    %c33 = arith.constant 33 : index
    %c0_53 = arith.constant 0 : index
    %66 = vector.load %arg10[%c33, %c0_53] : memref<448x128xbf16, #tpu.memory_space<vmem>>, vector<384x128xbf16>
    %c640 = arith.constant 640 : index
    %c0_54 = arith.constant 0 : index
    %67 = vector.load %arg4[%c640, %c0_54] : memref<1152x128xbf16, #tpu.memory_space<vmem>>, vector<128x128xbf16>
    %cst_55 = arith.constant dense<0.000000e+00> : vector<384x128xf32>
    %68 = tpu.matmul %66, %67, %cst_55 {dimension_numbers = #tpu.dot_dimension_numbers<[1], [0], [0], [1], [0, 0, 1, 1], [], []>} : vector<384x128xbf16>, vector<128x128xbf16>, vector<384x128xf32> -> vector<384x128xf32>
    %69 = arith.addf %65, %68 : vector<384x128xf32>
    %c55 = arith.constant 55 : index
    %c0_56 = arith.constant 0 : index
    %70 = vector.load %arg10[%c55, %c0_56] : memref<448x128xbf16, #tpu.memory_space<vmem>>, vector<384x128xbf16>
    %c768 = arith.constant 768 : index
    %c0_57 = arith.constant 0 : index
    %71 = vector.load %arg4[%c768, %c0_57] : memref<1152x128xbf16, #tpu.memory_space<vmem>>, vector<128x128xbf16>
    %cst_58 = arith.constant dense<0.000000e+00> : vector<384x128xf32>
    %72 = tpu.matmul %70, %71, %cst_58 {dimension_numbers = #tpu.dot_dimension_numbers<[1], [0], [0], [1], [0, 0, 1, 1], [], []>} : vector<384x128xbf16>, vector<128x128xbf16>, vector<384x128xf32> -> vector<384x128xf32>
    %73 = arith.addf %69, %72 : vector<384x128xf32>
    %c56 = arith.constant 56 : index
    %c0_59 = arith.constant 0 : index
    %74 = vector.load %arg10[%c56, %c0_59] : memref<448x128xbf16, #tpu.memory_space<vmem>>, vector<384x128xbf16>
    %c896 = arith.constant 896 : index
    %c0_60 = arith.constant 0 : index
    %75 = vector.load %arg4[%c896, %c0_60] : memref<1152x128xbf16, #tpu.memory_space<vmem>>, vector<128x128xbf16>
    %cst_61 = arith.constant dense<0.000000e+00> : vector<384x128xf32>
    %76 = tpu.matmul %74, %75, %cst_61 {dimension_numbers = #tpu.dot_dimension_numbers<[1], [0], [0], [1], [0, 0, 1, 1], [], []>} : vector<384x128xbf16>, vector<128x128xbf16>, vector<384x128xf32> -> vector<384x128xf32>
    %77 = arith.addf %73, %76 : vector<384x128xf32>
    %c57 = arith.constant 57 : index
    %c0_62 = arith.constant 0 : index
    %78 = vector.load %arg10[%c57, %c0_62] : memref<448x128xbf16, #tpu.memory_space<vmem>>, vector<384x128xbf16>
    %c1024 = arith.constant 1024 : index
    %c0_63 = arith.constant 0 : index
    %79 = vector.load %arg4[%c1024, %c0_63] : memref<1152x128xbf16, #tpu.memory_space<vmem>>, vector<128x128xbf16>
    %cst_64 = arith.constant dense<0.000000e+00> : vector<384x128xf32>
    %80 = tpu.matmul %78, %79, %cst_64 {dimension_numbers = #tpu.dot_dimension_numbers<[1], [0], [0], [1], [0, 0, 1, 1], [], []>} : vector<384x128xbf16>, vector<128x128xbf16>, vector<384x128xf32> -> vector<384x128xf32>
    %81 = arith.addf %77, %80 : vector<384x128xf32>
    %c0_65 = arith.constant 0 : index
    %c0_66 = arith.constant 0 : index
    %82 = vector.load %arg7[%c0_65, %c0_66] : memref<1x128xf32, #tpu.memory_space<vmem>>, vector<1x128xf32>
    %83 = vector.broadcast %82 : vector<1x128xf32> to vector<384x128xf32>
    %84 = arith.addf %81, %83 : vector<384x128xf32>
    %cst_67 = arith.constant 0.000000e+00 : f32
    %85 = vector.broadcast %cst_67 : f32 to vector<384x128xf32>
    %86 = arith.maximumf %84, %85 : vector<384x128xf32>
    %87 = arith.truncf %86 : vector<384x128xf32> to vector<384x128xbf16>
    %c0_68 = arith.constant 0 : index
    %c0_69 = arith.constant 0 : index
    %88 = vector.load %arg5[%c0_68, %c0_69] : memref<128x128xbf16, #tpu.memory_space<vmem>>, vector<128x128xbf16>
    %cst_70 = arith.constant dense<0.000000e+00> : vector<384x128xf32>
    %89 = tpu.matmul %87, %88, %cst_70 {dimension_numbers = #tpu.dot_dimension_numbers<[1], [0], [0], [1], [0, 0, 1, 1], [], []>} : vector<384x128xbf16>, vector<128x128xbf16>, vector<384x128xf32> -> vector<384x128xf32>
    %c24_i32 = arith.constant 24 : i32
    %90 = arith.addi %1, %c24_i32 : i32
    %c0_71 = arith.constant 0 : index
    %91 = arith.index_cast %90 : i32 to index
    %c0_72 = arith.constant 0 : index
    %92 = vector.load %arg2[%c0_71, %91, %c0_72] : memref<1x432x128xbf16, #tpu.memory_space<vmem>>, vector<1x384x128xbf16>
    %93 = vector.shape_cast %92 : vector<1x384x128xbf16> to vector<384x128xbf16>
    %94 = arith.extf %93 : vector<384x128xbf16> to vector<384x128xf32>
    %c0_73 = arith.constant 0 : index
    %c0_74 = arith.constant 0 : index
    %95 = vector.load %arg8[%c0_73, %c0_74] : memref<1x128xf32, #tpu.memory_space<vmem>>, vector<1x128xf32>
    %96 = vector.broadcast %95 : vector<1x128xf32> to vector<384x128xf32>
    %97 = arith.addf %89, %96 : vector<384x128xf32>
    %98 = arith.addf %97, %94 : vector<384x128xf32>
    %cst_75 = arith.constant 0.000000e+00 : f32
    %99 = vector.broadcast %cst_75 : f32 to vector<384x128xf32>
    %100 = arith.maximumf %98, %99 : vector<384x128xf32>
    %101 = arith.truncf %100 : vector<384x128xf32> to vector<384x128xbf16>
    %c0_76 = arith.constant 0 : index
    %c0_77 = arith.constant 0 : index
    %c0_78 = arith.constant 0 : index
    %102 = vector.load %arg9[%c0_76, %c0_77, %c0_78] : memref<1x384x128xbf16, #tpu.memory_space<vmem>>, vector<1x384x128xbf16>
    %103 = vector.shape_cast %102 : vector<1x384x128xbf16> to vector<384x128xbf16>
    %104 = vector.shape_cast %101 : vector<384x128xbf16> to vector<1x384x128xbf16>
    tpu.vector_store %arg9[%c0_76, %c0_77, %c0_78], %104 {strides = array<i32>} : memref<1x384x128xbf16, #tpu.memory_space<vmem>>, vector<1x384x128xbf16>,
    return
  }
  func.func @transform_0(%arg0: i32, %arg1: i32) -> (i32, i32, i32) {
    %c0_i32 = arith.constant 0 : i32
    %c0_i32_0 = arith.constant 0 : i32
    %c0_i32_1 = arith.constant 0 : i32
    return %arg0, %c0_i32, %c0_i32_0 : i32, i32, i32
  }
  func.func @transform_1(%arg0: i32, %arg1: i32) -> (i32, i32) {
    %c0_i32 = arith.constant 0 : i32
    %c0_i32_0 = arith.constant 0 : i32
    %c0_i32_1 = arith.constant 0 : i32
    return %c0_i32, %c0_i32_0 : i32, i32
  }
  func.func @transform_2(%arg0: i32, %arg1: i32) -> (i32, i32) {
    %c0_i32 = arith.constant 0 : i32
    %c0_i32_0 = arith.constant 0 : i32
    %c0_i32_1 = arith.constant 0 : i32
    return %c0_i32, %c0_i32_0 : i32, i32
  }
  func.func @transform_3(%arg0: i32, %arg1: i32) -> (i32, i32) {
    %c0_i32 = arith.constant 0 : i32
    %c0_i32_0 = arith.constant 0 : i32
    %c0_i32_1 = arith.constant 0 : i32
    return %c0_i32, %c0_i32_0 : i32, i32
  }
  func.func @transform_4(%arg0: i32, %arg1: i32) -> (i32, i32) {
    %c0_i32 = arith.constant 0 : i32
    %c0_i32_0 = arith.constant 0 : i32
    %c0_i32_1 = arith.constant 0 : i32
    return %c0_i32, %c0_i32_0 : i32, i32
  }
  func.func @transform_5(%arg0: i32, %arg1: i32) -> (i32, i32) {
    %c0_i32 = arith.constant 0 : i32
    %c0_i32_0 = arith.constant 0 : i32
    %c0_i32_1 = arith.constant 0 : i32
    return %c0_i32, %c0_i32_0 : i32, i32
  }
  func.func @transform_6(%arg0: i32, %arg1: i32) -> (i32, i32) {
    %c0_i32 = arith.constant 0 : i32
    %c0_i32_0 = arith.constant 0 : i32
    %c0_i32_1 = arith.constant 0 : i32
    return %c0_i32, %c0_i32_0 : i32, i32
  }
  func.func @transform_7(%arg0: i32, %arg1: i32) -> (i32, i32, i32) {
    %c0_i32 = arith.constant 0 : i32
    %c0_i32_0 = arith.constant 0 : i32
    return %arg0, %arg1, %c0_i32 : i32, i32, i32
  }
}

</mosaic_0001>

<bundles_post_ra>
// kernel: tpu_custom_call.1
= control target key start
LH: loop header
LB: loop body
LE: loop exit
PB: predicated region body
PF: predicated region fallthrough
CT: control target
= control target key end

     0   :  { %s10544_s0 = inlined_call_operand.hbm [shape: bf16[2,432,128], index: 0, kind: input, shape index: {}]   ;;  %s10545_s1 = inlined_call_operand.hbm [shape: bf16[128,128], index: 1, kind: input, shape index: {}]   ;;  %s10546_s2 = inlined_call_operand.hbm [shape: bf16[1152,128], index: 2, kind: input, shape index: {}]   ;;  %s10547_s3 = inlined_call_operand.hbm [shape: bf16[128,128], index: 3, kind: input, shape index: {}]   ;;  %s10548_s4 = inlined_call_operand.vmem [shape: f32[1,128], index: 4, kind: input, shape index: {}]   ;;  %s10549_s5 = inlined_call_operand.vmem [shape: f32[1,128], index: 5, kind: input, shape index: {}]   ;;  %s10550_s6 = inlined_call_operand.vmem [shape: f32[1,128], index: 6, kind: input, shape index: {}]   ;;  %s10551_s7 = inlined_call_operand.hbm [shape: bf16[2,384,128], index: 7, kind: output, shape index: {}]  }
   0x1   :  { %10557 = sst [smem:[#allocation53_spill]] %s10545_s1 }
   0x2   :  { %10558 = sst [smem:[#allocation54_spill]] %s10546_s2 }
   0x3   :  { %10559 = sst [smem:[#allocation55_spill]] %s10547_s3 }
   0x4   :  { %12 = vsyncpa [#allocation4], 0 }
   0x5   :  { %14 = vsyncpa [#allocation4 + $0x1], 0 }
   0x6   :  { %15 = vsyncpa [#allocation7], 0 }
   0x7   :  { %16 = vsyncpa [#allocation10], 0 }
   0x8   :  { %17 = vsyncpa [#allocation5], 0 }
   0x9   :  { %19 = vsyncpa [#allocation5 + $0x1], 0  ;;  %s9043_s24 = smov 0   ;;  %s9045_s25 = smov 0  }
   0xa   :  { %s9047_s26 = smov 0   ;;  %s9049_s27 = smov 0  }
   0xb   :  { %s9051_s28 = smov 0   ;;  %s9053_s29 = smov 0  }
   0xc LB: > { %s6410_s30 = sadd.s32 4294967295, %s8993_s29   ;;  %s6411_s8 = sadd.s32 4294967294, %s8993_s29   ;;  %s8993_s29 = sphi %s9053_s29, %s25_s29   ;;  %s8989_s28 = sphi %s9051_s28, %s10689_s28   ;;  %s8985_s27 = sphi %s9049_s27, %s10688_s27   ;;  %s8981_s26 = sphi %s9047_s26, %s10687_s26   ;;  %s8977_s25 = sphi %s9045_s25, %s10686_s25   ;;  %s8973_s24 = sphi %s9043_s24, %s10685_s24  }
   0xd   : > { %p57_p0 = scmp.ne.s32.totalorder %s8977_s25, %s8973_s24  ;;  %p9077_p1 = scmp.eq.s32.totalorder %s6410_s30, 0 }
   0xe   : > { %p9081_p2 = scmp.eq.s32.totalorder %s6410_s30, 1  ;;  %p215_p3 = scmp.eq.s32.totalorder %s6411_s8, 1 }
   0xf   : > { %p9087_p4 = por %p9077_p1, %p57_p0  ;;  %p6412_p5 = scmp.ge.s32.totalorder %s8993_s29, 1 }
  0x10   : > { %p9092_p6 = por %p215_p3, %p57_p0  ;;  %p222_p7 = scmp.lt.s32.totalorder %s8993_s29, 3 }
  0x11   : > { %s10564_s1 = sld [smem:[#allocation53_spill]]  ;;  %s8995_s17 = smov [#allocation6]  }
  0x12   : > { %p9100_p8 = pnand %p6412_p5, %p222_p7  ;;  %s235_s18 = sshll.u32 %s8995_s17, 4  ;;  %s236_s18 = int_to_ptr.vmem [resolvable:$true] %s235_s18 }
  0x13   : > { %p6416_p11 = scmp.ge.s32.totalorder %s8993_s29, 2  ;;  %s10567_s2 = sld [smem:[#allocation54_spill]] }
  0x14   : > { %p8694_p9 = pneg %p9100_p8  ;;  %s10552_s23 = smov 64  }
  0x15   : > { %s10553_s30 = smov 4   ;;  %s8998_s8 = smov [#allocation8]  }
  0x16   : > { %p9108_p10 = pnand %p8694_p9, %p9077_p1  ;;  %s249_s13 = sshll.u32 %s8998_s8, 4  ;;  %s250_s13 = int_to_ptr.vmem [resolvable:$true] %s249_s13 }
  0x17   : > { %s233_s15 = sshll.u32 %s10564_s1, 4  ;;  %s10568_s3 = sld [smem:[#allocation55_spill]]  ;;  %s234_s15 = int_to_ptr.hbm [resolvable:$true] %s233_s15 }
  0x18   : > { %8697 = dma.hbm_to_vmem [thread:$0]  (!%p9108_p10), %s234_s15, 1024, %s236_s18, [#allocation7], %s10552_s23, %s10552_s23, %s10553_s30  }
  0x19   : > { %s247_s22 = sshll.u32 %s10567_s2, 4  ;;  %s8999_s21 = smov [#allocation9]   ;;  %s248_s22 = int_to_ptr.hbm [resolvable:$true] %s247_s22 }
  0x1a   : > { %8700 = dma.hbm_to_vmem [thread:$0]  (!%p9108_p10), %s248_s22, 9216, %s250_s13, [#allocation7], %s10552_s23, %s10552_s23, %s10553_s30  }
  0x1b   : > { %s263_s1 = sshll.u32 %s8999_s21, 4  ;;  %s37_s15 = sadd.s32 1, %s8989_s28  ;;  %s264_s1 = int_to_ptr.vmem [resolvable:$true] %s263_s1 }
  0x1c   : > { %p39_p12 = scmp.ge.s32.totalorder %s37_s15, 2  ;;  %s44_s18 = sadd.s32 1, %s8981_s26 }
  0x1d   : > { %s261_s20 = sshll.u32 %s10568_s3, 4  ;;  %p51_p13 = scmp.ne.s32.totalorder %s8981_s26, %s8977_s25  ;;  %s262_s20 = int_to_ptr.hbm [resolvable:$true] %s261_s20 }
  0x1e   : > { %8703 = dma.hbm_to_vmem [thread:$0]  (!%p9108_p10), %s262_s20, 1024, %s264_s1, [#allocation10], %s10552_s23, %s10552_s23, %s10553_s30  }
  0x1f   : > { %p52_p0 = scmp.eq.s32.totalorder %s8993_s29, 0  ;;  %s10691_s15 = smov (%p39_p12, %s37_s15), 0 }
  0x20   : > { %10569 = sst [smem:[#allocation16_spill]] %s10691_s15  ;;  %p9143_p5 = por %p9081_p2, %p51_p13 }
  0x21   : > { %p53_p3 = por %p52_p0, %p51_p13  ;;  %s41_s19 = ssub.s32 %s8989_s28, %s10691_s15 }
  0x22   : > { %p8715_p7 = scmp.lt.s32.totalorder %s8993_s29, 2  ;;  %p42_p9 = scmp.eq.s32.totalorder %s41_s19, 0 }
  0x23   : > { %s286_s8 = sand.u32 1, %s8981_s26   ;;  %s8674_s14 = smul.u32 216, %s8989_s28 }
  0x24   : > { %s8673_s13 = smul.u32 216, %s286_s8  ;;  %p8705_p10 = pnand %p8715_p7, %p53_p3 }
  0x25   : > { %s9152_s1 = scalar_select %p42_p9, %s8981_s26, %s44_s18  }
  0x26   : > { %s290_s17 = scalar_lea.vmem [#allocation3], %s8673_s13  ;;  %s295_s30 = scalar_lea.hbm %s10544_s0, %s8674_s14 }
  0x27   : > { %s298_s20 = sshll.u32 %s290_s17, 4  ;;  %s296_s10 = sshll.u32 %s295_s30, 4  ;;  %s299_s20 = int_to_ptr.vmem [resolvable:$true] %s298_s20  ;;  %s297_s10 = int_to_ptr.hbm [resolvable:$true] %s296_s10 }
  0x28   : > { %s287_s2 = scalar_lea.sflag [#allocation4], %s286_s8  ;;  %s10571_s3 = smov 4  }
  0x29   : > { %s10572_s15 = smov 64   ;;  %310 = sbr.rel (%p9100_p8) target bundleno = 1691 (0x69b), region = 48 }
  0x2a   : > { %8707 = dma.hbm_to_vmem [thread:$0]  (!%p8705_p10), %s297_s10, 3456, %s299_s20, %s287_s2, %s10572_s15, %s10572_s15, %s10571_s3  }
  0x2e   : > { %s9164_s18 = sand.u32 1, %s8977_s25  }
  0x2f   : > { %s8675_s19 = smul.u32 216, %s9164_s18  ;;  %s313_s23 = scalar_lea.sflag [#allocation4], %s9164_s18 }
  0x31   : > { %s9168_s13 = scalar_lea.vmem [#allocation3], %s8675_s19 }
  0x32   : > { %8956 = dma.done.wait (%p9087_p4), %s313_s23, 3456  }
  0x33   : > { %8958 = vsyncadd (%p9087_p4), %s313_s23, 4294963840 }
  0x34   : > { %8960 = dma.done.wait (%p9077_p1), [#allocation7], 10240  }
  0x35   : > { %8962 = vsyncadd (%p9077_p1), [#allocation7], 4294957056 }
  0x36   : > { %8964 = dma.done.wait (%p9077_p1), [#allocation10], 1024  }
  0x37   : > { %8966 = vsyncadd (%p9077_p1), [#allocation10], 4294966272  ;;  %v7258_v0 = vld [vmem:[#allocation6 + $0x38] sm:$0xff]  ;;  %v7257_v1 = vld [vmem:[#allocation6 + $0x30] sm:$0xff]  ;;  %v9000_v15 = vmov 0   ;;  %s8676_s14 = smul.u32 192, %s9164_s18 }
  0x38   : > { %654 = vmatpush.bf16.msra.mxu0 %v7258_v0  ;;  %v7256_v2 = vld [vmem:[#allocation6 + $0x28] sm:$0xff]  ;;  %v7255_v3 = vld [vmem:[#allocation6 + $0x20] sm:$0xff]  ;;  %v7254_v4 = vld [vmem:[#allocation6 + $0x18] sm:$0xff]  ;;  %960 = vst [vmem:[#allocation2] sm:$0xf] %v9000_v15  ;;  %s8677_s23 = smul.u32 192, %s8985_s27 }
  0x39   : > { %v7253_v5 = vld [vmem:[#allocation6 + $0x10] sm:$0xff]  ;;  %v7252_v6 = vld [vmem:[#allocation6 + $0x8] sm:$0xff]  ;;  %v7251_v7 = vld [vmem:[#allocation6] sm:$0xff]  ;;  %961 = vst [vmem:[#allocation2 + $0xdc] sm:$0xf] %v9000_v15  ;;  %s10291_s17 = scalar_lea.vmem [#allocation11], %s8676_s14 }
  0x3a   : > { %v7224_v8 = vld [vmem:[%s9168_s13] sm:$0xff]  ;;  %v7225_v9 = vld [vmem:[%s9168_s13 + $0x8] sm:$0xff]  ;;  %v7226_v10 = vld [vmem:[%s9168_s13 + $0x10] sm:$0xff]  ;;  %vm1433_vm0 = vsmask.f32 4352  ;;  %s6287_s9 = scalar_lea.hbm %s10551_s7, %s8677_s23  ;;  %s6288_s11 = sshll.u32 %s10291_s17, 4  ;;  %s6289_s11 = int_to_ptr.vmem [resolvable:$true] %s6288_s11 }
  0x3b   : > { %v7227_v11 = vld [vmem:[%s9168_s13 + $0x18] sm:$0xff]  ;;  %v7228_v12 = vld [vmem:[%s9168_s13 + $0x20] sm:$0xff]  ;;  %v7229_v13 = vld [vmem:[%s9168_s13 + $0x28] sm:$0xff]  ;;  %vm2047_vm1 = vsmask.f32 7424  ;;  %s6290_s16 = sshll.u32 %s6287_s9, 4  ;;  %s6291_s16 = int_to_ptr.hbm [resolvable:$true] %s6290_s16 }
  0x3c   : > { %655 = vmatpush.bf16.msra.mxu0 %v7257_v1  ;;  %v7230_v14 = vld [vmem:[%s9168_s13 + $0x30] sm:$0xff]  ;;  %v7231_v16 = vld [vmem:[%s9168_s13 + $0x38] sm:$0xff]  ;;  %v9195_v17 = vld [vmem:[%s10548_s4] ss:$0 sm:$0xff]  ;;  %s6274_s27 = scalar_lea.sflag [#allocation5], %s9164_s18  ;;  %s8923_s14 = scalar_lea.hbm %s10551_s7, 384 }
  0x3d   : > { %v7232_v18 = vld [vmem:[%s9168_s13 + $0x40] sm:$0xff]  ;;  %v7233_v25 = vld [vmem:[%s9168_s13 + $0x48] sm:$0xff]  ;;  %v7234_v33 = vld [vmem:[%s9168_s13 + $0x50] sm:$0xff] }
  0x3e   : > { %v7235_v41 = vld [vmem:[%s9168_s13 + $0x58] sm:$0xff]  ;;  %v7274_v43 = vld [vmem:[#allocation8 + $0x78] sm:$0xff]  ;;  %v7273_v47 = vld [vmem:[#allocation8 + $0x70] sm:$0xff] }
  0x3f   : > { %8558 = vmatpush.bf16.msra.mxu1 %v7274_v43  ;;  %v7266_v49 = vld [vmem:[#allocation8 + $0x38] sm:$0xff]  ;;  %v7272_v51 = vld [vmem:[#allocation8 + $0x68] sm:$0xff]  ;;  %v7265_v52 = vld [vmem:[#allocation8 + $0x30] sm:$0xff] }
  0x40   : > { %656 = vmatpush.bf16.msra.mxu0 %v7256_v2  ;;  %8566 = vmatpush.bf16.msra.mxu2 %v7266_v49  ;;  %v7271_v53 = vld [vmem:[#allocation8 + $0x60] sm:$0xff]  ;;  %v7264_v54 = vld [vmem:[#allocation8 + $0x28] sm:$0xff]  ;;  %v7270_v58 = vld [vmem:[#allocation8 + $0x58] sm:$0xff] }
  0x41   : > { %v7236_v56 = vld [vmem:[%s9168_s13 + $0x60] sm:$0xff]  ;;  %v7263_v60 = vld [vmem:[#allocation8 + $0x20] sm:$0xff]  ;;  %v9216_v0 = vld [vmem:[#allocation8 + $0xb8] sm:$0xff] }
  0x42   : > { %v7269_v63 = vld [vmem:[#allocation8 + $0x50] sm:$0xff]  ;;  %8574 = vmatpush.bf16.msra.mxu3 %v9216_v0  ;;  %v7262_v2 = vld [vmem:[#allocation8 + $0x18] sm:$0xff] }
  0x43   : > { %8559 = vmatpush.bf16.msra.mxu1 %v7273_v47 }
  0x44   : > { %657 = vmatpush.bf16.msra.mxu0 %v7255_v3  ;;  %8567 = vmatpush.bf16.msra.mxu2 %v7265_v52 }
  0x47   : > { %8560 = vmatpush.bf16.msra.mxu1 %v7272_v51 }
  0x48   : > { %658 = vmatpush.bf16.msra.mxu0 %v7254_v4  ;;  %8568 = vmatpush.bf16.msra.mxu2 %v7264_v54  ;;  %v7268_v4 = vld [vmem:[#allocation8 + $0x48] sm:$0xff] }
  0x4b   : > { %8561 = vmatpush.bf16.msra.mxu1 %v7271_v53 }
  0x4c   : > { %659 = vmatpush.bf16.msra.mxu0 %v7253_v5  ;;  %8569 = vmatpush.bf16.msra.mxu2 %v7263_v60  ;;  %v9220_v5 = vld [vmem:[#allocation8 + $0xb0] sm:$0xff] }
  0x4d   : > { %8575 = vmatpush.bf16.msra.mxu3 %v9220_v5 }
  0x4f   : > { %8562 = vmatpush.bf16.msra.mxu1 %v7270_v58 }
  0x50   : > { %660 = vmatpush.bf16.msra.mxu0 %v7252_v6  ;;  %8570 = vmatpush.bf16.msra.mxu2 %v7262_v2  ;;  %v7261_v6 = vld [vmem:[#allocation8 + $0x10] sm:$0xff] }
  0x53   : > { %8563 = vmatpush.bf16.msra.mxu1 %v7269_v63 }
  0x54   : > { %661 = vmatpush.bf16.msra.mxu0 %v7251_v7  ;;  %v7267_v7 = vld [vmem:[#allocation8 + $0x40] sm:$0xff]  ;;  %8571 = vmatpush.bf16.msra.mxu2 %v7261_v6 }
  0x57   : > { %662 = vmatmul.bf16.vlgmr.msra.gmra.mxu0 %v7224_v8  ;;  %8564 = vmatpush.bf16.msra.mxu1 %v7268_v4  ;;  %v9223_v8 = vld [vmem:[#allocation8 + $0xa8] sm:$0xff] }
  0x58   : > { %1277 = vmatpush.bf16.msrb.mxu0 %v7274_v43  ;;  %8576 = vmatpush.bf16.msra.mxu3 %v9223_v8 }
  0x5b   : > { %8565 = vmatpush.bf16.msra.mxu1 %v7267_v7 }
  0x5c   : > { %1278 = vmatpush.bf16.msrb.mxu0 %v7273_v47 }
  0x60   : > { %1279 = vmatpush.bf16.msrb.mxu0 %v7272_v51 }
  0x64   : > { %1280 = vmatpush.bf16.msrb.mxu0 %v7271_v53 }
  0x67   : > { %667 = vmatmul.bf16.gmra.mxu0 %v7225_v9  ;;  %v7260_v9 = vld [vmem:[#allocation8 + $0x8] sm:$0xff] }
  0x68   : > { %1281 = vmatpush.bf16.msrb.mxu0 %v7270_v58  ;;  %8572 = vmatpush.bf16.msra.mxu2 %v7260_v9 }
  0x6c   : > { %1282 = vmatpush.bf16.msrb.mxu0 %v7269_v63  ;;  %v7240_v63 = vld [vmem:[%s9168_s13 + $0x80] sm:$0xff] }
  0x70   : > { %1283 = vmatpush.bf16.msrb.mxu0 %v7268_v4 }
  0x74   : > { %1284 = vmatpush.bf16.msrb.mxu0 %v7267_v7 }
  0x77   : > { %672 = vmatmul.bf16.gmra.mxu0 %v7226_v10 }
  0x78   : > { %1730 = vmatpush.bf16.msra.mxu0 %v7266_v49 }
  0x7c   : > { %1731 = vmatpush.bf16.msra.mxu0 %v7265_v52 }
  0x80   : > { %1732 = vmatpush.bf16.msra.mxu0 %v7264_v54 }
  0x84   : > { %1733 = vmatpush.bf16.msra.mxu0 %v7263_v60 }
  0x87   : > { %677 = vmatmul.bf16.gmra.mxu0 %v7227_v11  ;;  %v7237_v11 = vld [vmem:[%s9168_s13 + $0x68] sm:$0xff] }
  0x88   : > { %1734 = vmatpush.bf16.msra.mxu0 %v7262_v2 }
  0x8c   : > { %1735 = vmatpush.bf16.msra.mxu0 %v7261_v6 }
  0x90   : > { %1736 = vmatpush.bf16.msra.mxu0 %v7260_v9 }
  0x97   : > { %682 = vmatmul.bf16.gmra.mxu0 %v7228_v12 }
  0xa7   : > { %687 = vmatmul.bf16.gmra.mxu0 %v7229_v13  ;;  %v9228_v13 = vld [vmem:[#allocation8 + $0xa0] sm:$0xff] }
  0xa8   : > { %8577 = vmatpush.bf16.msra.mxu3 %v9228_v13 }
  0xb7   : > { %692 = vmatmul.bf16.gmra.mxu0 %v7230_v14 }
  0xc7   : > { %697 = vmatmul.bf16.gmra.mxu0 %v7231_v16  ;;  %v7259_v16 = vld [vmem:[#allocation8] sm:$0xff] }
  0xc8   : > { %8573 = vmatpush.bf16.msra.mxu2 %v7259_v16  ;;  %1737 = vmatpush.bf16.msra.mxu0 %v7259_v16 }
  0xd4   : > { %v663_v19 = vpop.f32.mrf.mxu0 }
  0xd5   : > { %v664_v20 = vadd.f32 %v9195_v17, %v663_v19 }
  0xd7   : > { %v798_v21 = vmax.f32 %v664_v20, 0.0  ;;  %702 = vmatmul.bf16.gmra.mxu0 %v7232_v18  ;;  %v9232_v20 = vld [vmem:[#allocation8 + $0x98] sm:$0xff] }
  0xd8   : > { %8578 = vmatpush.bf16.msra.mxu3 %v9232_v20 }
  0xd9   : > { %v852_v22 = vpack.c.bf16 %v798_v21, %v798_v21 }
  0xdb   : > { %906 = vst [vmem:[#allocation2 + $0x4] sm:$0xf] %v852_v22 }
  0xdc   : > { %984 = vst [vmem:[#allocation2 + $0x4] sm:$0xf] %v9000_v15  ;;  %v665_v23 = vpop.f32.mrf.mxu0 }
  0xdd   : > { %v666_v24 = vadd.f32 %v9195_v17, %v665_v23  ;;  %v9235_v23 = vld [vmem:[#allocation8 + $0x90] sm:$0xff] }
  0xde   : > { %8579 = vmatpush.bf16.msra.mxu3 %v9235_v23 }
  0xdf   : > { %v799_v28 = vmax.f32 %v666_v24, 0.0  ;;  %v7322_v24 = vld [vmem:[#allocation8 + $0x138] sm:$0xff] }
  0xe0   : > { %3266 = vmatpush.bf16.msrb.mxu2 %v7322_v24 }
  0xe4   : > { %v668_v26 = vpop.f32.mrf.mxu0 }
  0xe5   : > { %v669_v27 = vadd.f32 %v9195_v17, %v668_v26  ;;  %v7314_v26 = vld [vmem:[#allocation8 + $0xf8] sm:$0xff] }
  0xe6   : > { %2977 = vmatpush.bf16.msrb.mxu1 %v7314_v26 }
  0xe7   : > { %v800_v29 = vmax.f32 %v669_v27, 0.0  ;;  %707 = vmatmul.bf16.gmra.mxu0 %v7233_v25  ;;  %v9238_v25 = vld [vmem:[#allocation8 + $0x88] sm:$0xff] }
  0xe8   : > { %8580 = vmatpush.bf16.msra.mxu3 %v9238_v25 }
  0xe9   : > { %v7414_v30 = vpack.c.bf16 %v800_v29, %v799_v28  ;;  %v7238_v28 = vld [vmem:[%s9168_s13 + $0x70] sm:$0xff] }
  0xeb   : > { %8033 = vst [vmem:[#allocation2 + $0x8] sm:$0xff] %v7414_v30   ;;  %v9243_v30 = vld [vmem:[#allocation8 + $0x80] sm:$0xff] }
  0xec   : > { %962 = vst [vmem:[#allocation2 + $0xc] sm:$0xf] %v9000_v15  ;;  %v670_v31 = vpop.f32.mrf.mxu0  ;;  %8581 = vmatpush.bf16.msra.mxu3 %v9243_v30 }
  0xed   : > { %985 = vst [vmem:[#allocation2 + $0x8] sm:$0xf] %v9000_v15  ;;  %v671_v32 = vadd.f32 %v9195_v17, %v670_v31 }
  0xee   : > { %986 = vst [vmem:[#allocation2 + $0xc] sm:$0xf] %v9000_v15 }
  0xef   : > { %v801_v36 = vmax.f32 %v671_v32, 0.0 }
  0xf4   : > { %v673_v34 = vpop.f32.mrf.mxu0 }
  0xf5   : > { %v674_v35 = vadd.f32 %v9195_v17, %v673_v34 }
  0xf7   : > { %v802_v37 = vmax.f32 %v674_v35, 0.0  ;;  %712 = vmatmul.bf16.gmra.mxu0 %v7234_v33 }
  0xf9   : > { %v7419_v38 = vpack.c.bf16 %v802_v37, %v801_v36 }
  0xfb   : > { %8034 = vst [vmem:[#allocation2 + $0x10] sm:$0xff] %v7419_v38  }
  0xfc   : > { %v675_v39 = vpop.f32.mrf.mxu0 }
  0xfd   : > { %v676_v40 = vadd.f32 %v9195_v17, %v675_v39 }
  0xff   : > { %v803_v45 = vmax.f32 %v676_v40, 0.0  ;;  %v7239_v40 = vld [vmem:[%s9168_s13 + $0x78] sm:$0xff] }
 0x104   : > { %v678_v42 = vpop.f32.mrf.mxu0 }
 0x105   : > { %v679_v44 = vadd.f32 %v9195_v17, %v678_v42 }
 0x107   : > { %v804_v46 = vmax.f32 %v679_v44, 0.0  ;;  %717 = vmatmul.bf16.gmra.mxu0 %v7235_v41 }
 0x109   : > { %v7424_v48 = vpack.c.bf16 %v804_v46, %v803_v45 }
 0x10b   : > { %8035 = vst [vmem:[#allocation2 + $0x18] sm:$0xff] %v7424_v48  }
 0x10c   : > { %963 = vst [vmem:[#allocation2 + $0x18] sm:$0xf] %v9000_v15  ;;  %v680_v50 = vpop.f32.mrf.mxu0 }
 0x10d   : > { %v681_v55 = vadd.f32 %v9195_v17, %v680_v50 }
 0x10f   : > { %v805_v61 = vmax.f32 %v681_v55, 0.0 }
 0x114   : > { %v683_v57 = vpop.f32.mrf.mxu0 }
 0x115   : > { %v684_v59 = vadd.f32 %v9195_v17, %v683_v57 }
 0x117   : > { %v806_v62 = vmax.f32 %v684_v59, 0.0  ;;  %722 = vmatmul.bf16.gmra.mxu0 %v7236_v56 }
 0x119   : > { %v7429_v1 = vpack.c.bf16 %v806_v62, %v805_v61 }
 0x11b   : > { %8036 = vst [vmem:[#allocation2 + $0x20] sm:$0xff] %v7429_v1  }
 0x11c   : > { %964 = vst [vmem:[#allocation2 + $0x24] sm:$0xf] %v9000_v15  ;;  %v685_v3 = vpop.f32.mrf.mxu0 }
 0x11d   : > { %v686_v10 = vadd.f32 %v9195_v17, %v685_v3 }
 0x11f   : > { %v807_v18 = vmax.f32 %v686_v10, 0.0 }
 0x124   : > { %v688_v12 = vpop.f32.mrf.mxu0 }
 0x125   : > { %v689_v14 = vadd.f32 %v9195_v17, %v688_v12 }
 0x127   : > { %v808_v19 = vmax.f32 %v689_v14, 0.0  ;;  %727 = vmatmul.bf16.gmra.mxu0 %v7237_v11 }
 0x129   : > { %v7434_v21 = vpack.c.bf16 %v808_v19, %v807_v18 }
 0x12b   : > { %8037 = vst [vmem:[#allocation2 + $0x28] sm:$0xff] %v7434_v21   ;;  %v1479_v36 = vshrl.u32 %v7434_v21, 16  ;;  %v1482_v37 = vshll.u32 %v7434_v21, 16 }
 0x12c   : > { %v690_v22 = vpop.f32.mrf.mxu0 }
 0x12d   : > { %v691_v27 = vadd.f32 %v9195_v17, %v690_v22  ;;  %v1481_v43 = vrot.slane %v1479_v36, 3  ;;  %v1484_v44 = vrot.slane %v1482_v37, 4  ;;  %v7241_v37 = vld [vmem:[%s9168_s13 + $0x88] sm:$0xff] }
 0x12f   : > { %v809_v32 = vmax.f32 %v691_v27, 0.0  ;;  %v9251_v52 = vor.u32 %v1484_v44, %v1481_v43  ;;  %v7321_v27 = vld [vmem:[#allocation8 + $0x130] sm:$0xff] }
 0x130   : > { %3267 = vmatpush.bf16.msrb.mxu2 %v7321_v27 }
 0x134   : > { %v693_v29 = vpop.f32.mrf.mxu0 }
 0x135   : > { %v694_v31 = vadd.f32 %v9195_v17, %v693_v29 }
 0x137   : > { %v810_v33 = vmax.f32 %v694_v31, 0.0  ;;  %732 = vmatmul.bf16.gmra.mxu0 %v7238_v28  ;;  %v7313_v28 = vld [vmem:[#allocation8 + $0xf0] sm:$0xff] }
 0x138   : > { %2978 = vmatpush.bf16.msrb.mxu1 %v7313_v28 }
 0x139   : > { %v7439_v34 = vpack.c.bf16 %v810_v33, %v809_v32 }
 0x13b   : > { %8038 = vst [vmem:[#allocation2 + $0x30] sm:$0xff] %v7439_v34  }
 0x13c   : > { %965 = vst [vmem:[#allocation2 + $0x30] sm:$0xf] %v9000_v15  ;;  %v695_v35 = vpop.f32.mrf.mxu0 }
 0x13d   : > { %v696_v38 = vadd.f32 %v9195_v17, %v695_v35 }
 0x13f   : > { %v811_v50 = vmax.f32 %v696_v38, 0.0 }
 0x143   : > { %v8592_v39 = vld [vmem:[#allocation2 + $0x2c] sm:$0xff]  }
 0x144   : > { %v8064_v41 = vld [vmem:[#allocation2 + $0x30] sm:$0xff]   ;;  %v698_v42 = vpop.f32.mrf.mxu0  ;;  %1310 = vmatmul.bf16.vlgmr.msra.gmra.mxu1 %v8592_v39 }
 0x145   : > { %v1488_v45 = vshrl.u32 %v8064_v41, 16  ;;  %v1491_v46 = vshll.u32 %v8064_v41, 16  ;;  %v699_v47 = vadd.f32 %v9195_v17, %v698_v42  ;;  %v7280_v56 = vld [vmem:[#allocation2 + $0x2c] sm:$0xff] }
 0x146   : > { %v2088_v58 = vshll.u32 %v7280_v56, 16  ;;  %v2092_v3 = vshrl.u32 %v7280_v56, 16 }
 0x147   : > { %v1490_v48 = vrot.slane %v1488_v45, 3  ;;  %v1493_v49 = vrot.slane %v1491_v46, 4  ;;  %v812_v51 = vmax.f32 %v699_v47, 0.0  ;;  %737 = vmatmul.bf16.gmra.mxu0 %v7239_v40 }
 0x148   : > { %v9256_v61 = vrot.slane %v2088_v58, 1 }
 0x149   : > { %v1494_v53 = vor.u32 %v1493_v49, %v1490_v48  ;;  %v7444_v54 = vpack.c.bf16 %v812_v51, %v811_v50  ;;  %v7242_v51 = vld [vmem:[%s9168_s13 + $0x90] sm:$0xff] }
 0x14a   : > { %v2094_v10 = vor.u32 %v2092_v3, %v9256_v61 }
 0x14b   : > { %v1495_v55 = vsel %vm1433_vm0, %v9251_v52, %v1494_v53  ;;  %8039 = vst [vmem:[#allocation2 + $0x38] sm:$0xff] %v7444_v54  }
 0x14c   : > { %1763 = vmatmul.bf16.vlgmr.msra.gmra.mxu2 %v1495_v55  ;;  %966 = vst [vmem:[#allocation2 + $0x3c] sm:$0xf] %v9000_v15  ;;  %v700_v57 = vpop.f32.mrf.mxu0 }
 0x14d   : > { %v701_v62 = vadd.f32 %v9195_v17, %v700_v57 }
 0x14f   : > { %v813_v16 = vmax.f32 %v701_v62, 0.0 }
 0x152   : > { %v8594_v59 = vld [vmem:[#allocation2 + $0x34] sm:$0xff]  }
 0x153   : > { %v7281_v60 = vld [vmem:[#allocation2 + $0x34] sm:$0xff] }
 0x154   : > { %v8065_v1 = vld [vmem:[#allocation2 + $0x38] sm:$0xff]   ;;  %v703_v2 = vpop.f32.mrf.mxu0  ;;  %v2096_v4 = vshll.u32 %v7281_v60, 16  ;;  %1315 = vmatmul.bf16.gmra.mxu1 %v8594_v59  ;;  %v2100_v39 = vshrl.u32 %v7281_v60, 16 }
 0x155   : > { %v1497_v6 = vshrl.u32 %v8065_v1, 16  ;;  %v1500_v7 = vshll.u32 %v8065_v1, 16  ;;  %v704_v9 = vadd.f32 %v9195_v17, %v703_v2 }
 0x156   : > { %v2098_v11 = vrot.slane %v2096_v4, 1 }
 0x157   : > { %v1499_v12 = vrot.slane %v1497_v6, 3  ;;  %v1502_v14 = vrot.slane %v1500_v7, 4  ;;  %v814_v18 = vmax.f32 %v704_v9, 0.0  ;;  %742 = vmatmul.bf16.gmra.mxu0 %v7240_v63 }
 0x158   : > { %v2099_v19 = vsel %vm2047_vm1, %v2094_v10, %v2098_v11  ;;  %v2102_v42 = vor.u32 %v2100_v39, %v2098_v11 }
 0x159   : > { %v1503_v21 = vor.u32 %v1502_v14, %v1499_v12  ;;  %v7449_v22 = vpack.c.bf16 %v814_v18, %v813_v16  ;;  %2349 = vmatmul.bf16.vlgmr.msra.gmra.mxu3 %v2099_v19  ;;  %v7320_v16 = vld [vmem:[#allocation8 + $0x128] sm:$0xff] }
 0x15a   : > { %3268 = vmatpush.bf16.msrb.mxu2 %v7320_v16  ;;  %v7312_v18 = vld [vmem:[#allocation8 + $0xe8] sm:$0xff] }
 0x15b   : > { %v1504_v24 = vsel %vm1433_vm0, %v1494_v53, %v1503_v21  ;;  %8040 = vst [vmem:[#allocation2 + $0x40] sm:$0xff] %v7449_v22   ;;  %v1506_v29 = vshrl.u32 %v7449_v22, 16  ;;  %v1509_v31 = vshll.u32 %v7449_v22, 16  ;;  %2979 = vmatpush.bf16.msrb.mxu1 %v7312_v18 }
 0x15c   : > { %1768 = vmatmul.bf16.gmra.mxu2 %v1504_v24  ;;  %v705_v26 = vpop.f32.mrf.mxu0  ;;  %v7243_v24 = vld [vmem:[%s9168_s13 + $0x98] sm:$0xff] }
 0x15d   : > { %v1508_v34 = vrot.slane %v1506_v29, 3  ;;  %v1511_v35 = vrot.slane %v1509_v31, 4  ;;  %v706_v36 = vadd.f32 %v9195_v17, %v705_v26 }
 0x15f   : > { %v1512_v44 = vor.u32 %v1511_v35, %v1508_v34  ;;  %v815_v45 = vmax.f32 %v706_v36, 0.0 }
 0x161   : > { %v1513_v49 = vsel %vm1433_vm0, %v1503_v21, %v1512_v44 }
 0x162   : > { %v8596_v32 = vld [vmem:[#allocation2 + $0x3c] sm:$0xff]  }
 0x163   : > { %v7282_v33 = vld [vmem:[#allocation2 + $0x3c] sm:$0xff] }
 0x164   : > { %v708_v38 = vpop.f32.mrf.mxu0  ;;  %v2104_v40 = vshll.u32 %v7282_v33, 16  ;;  %1320 = vmatmul.bf16.gmra.mxu1 %v8596_v32  ;;  %v2108_v62 = vshrl.u32 %v7282_v33, 16 }
 0x165   : > { %v709_v41 = vadd.f32 %v9195_v17, %v708_v38 }
 0x166   : > { %v2106_v43 = vrot.slane %v2104_v40, 1 }
 0x167   : > { %v816_v46 = vmax.f32 %v709_v41, 0.0  ;;  %747 = vmatmul.bf16.gmra.mxu0 %v7241_v37 }
 0x168   : > { %v2107_v47 = vsel %vm2047_vm1, %v2102_v42, %v2106_v43  ;;  %v2110_v6 = vor.u32 %v2108_v62, %v2106_v43 }
 0x169   : > { %v7454_v48 = vpack.c.bf16 %v816_v46, %v815_v45  ;;  %2354 = vmatmul.bf16.gmra.mxu3 %v2107_v47 }
 0x16b   : > { %8041 = vst [vmem:[#allocation2 + $0x48] sm:$0xff] %v7454_v48  }
 0x16c   : > { %1773 = vmatmul.bf16.gmra.mxu2 %v1513_v49  ;;  %967 = vst [vmem:[#allocation2 + $0x48] sm:$0xf] %v9000_v15  ;;  %v710_v50 = vpop.f32.mrf.mxu0 }
 0x16d   : > { %v711_v53 = vadd.f32 %v9195_v17, %v710_v50 }
 0x16f   : > { %v817_v3 = vmax.f32 %v711_v53, 0.0  ;;  %v7244_v53 = vld [vmem:[%s9168_s13 + $0xa0] sm:$0xff] }
 0x173   : > { %v8598_v54 = vld [vmem:[#allocation2 + $0x44] sm:$0xff]  }
 0x174   : > { %v8067_v55 = vld [vmem:[#allocation2 + $0x48] sm:$0xff]   ;;  %v713_v57 = vpop.f32.mrf.mxu0  ;;  %1325 = vmatmul.bf16.gmra.mxu1 %v8598_v54 }
 0x175   : > { %v7283_v56 = vld [vmem:[#allocation2 + $0x44] sm:$0xff]  ;;  %v1515_v58 = vshrl.u32 %v8067_v55, 16  ;;  %v1518_v59 = vshll.u32 %v8067_v55, 16  ;;  %v714_v60 = vadd.f32 %v9195_v17, %v713_v57 }
 0x176   : > { %v2112_v63 = vshll.u32 %v7283_v56, 16  ;;  %v2116_v31 = vshrl.u32 %v7283_v56, 16 }
 0x177   : > { %v1517_v1 = vrot.slane %v1515_v58, 3  ;;  %v1520_v2 = vrot.slane %v1518_v59, 4  ;;  %v818_v4 = vmax.f32 %v714_v60, 0.0  ;;  %752 = vmatmul.bf16.gmra.mxu0 %v7242_v51 }
 0x178   : > { %v2114_v7 = vrot.slane %v2112_v63, 1 }
 0x179   : > { %v1521_v9 = vor.u32 %v1520_v2, %v1517_v1  ;;  %v7459_v10 = vpack.c.bf16 %v818_v4, %v817_v3 }
 0x17a   : > { %v2115_v11 = vsel %vm2047_vm1, %v2110_v6, %v2114_v7  ;;  %v2118_v36 = vor.u32 %v2116_v31, %v2114_v7  ;;  %v7319_v6 = vld [vmem:[#allocation8 + $0x120] sm:$0xff]  ;;  %v7245_v7 = vld [vmem:[%s9168_s13 + $0xa8] sm:$0xff] }
 0x17b   : > { %v1522_v12 = vsel %vm1433_vm0, %v1512_v44, %v1521_v9  ;;  %2359 = vmatmul.bf16.gmra.mxu3 %v2115_v11  ;;  %8042 = vst [vmem:[#allocation2 + $0x50] sm:$0xff] %v7459_v10   ;;  %3269 = vmatpush.bf16.msrb.mxu2 %v7319_v6 }
 0x17c   : > { %1778 = vmatmul.bf16.gmra.mxu2 %v1522_v12  ;;  %968 = vst [vmem:[#allocation2 + $0x54] sm:$0xf] %v9000_v15  ;;  %v715_v14 = vpop.f32.mrf.mxu0 }
 0x17d   : > { %v716_v22 = vadd.f32 %v9195_v17, %v715_v14 }
 0x17f   : > { %v819_v38 = vmax.f32 %v716_v22, 0.0 }
 0x182   : > { %v8600_v19 = vld [vmem:[#allocation2 + $0x4c] sm:$0xff]  }
 0x183   : > { %v7284_v21 = vld [vmem:[#allocation2 + $0x4c] sm:$0xff] }
 0x184   : > { %v8068_v26 = vld [vmem:[#allocation2 + $0x50] sm:$0xff]   ;;  %v718_v27 = vpop.f32.mrf.mxu0  ;;  %v2120_v32 = vshll.u32 %v7284_v21, 16  ;;  %1330 = vmatmul.bf16.gmra.mxu1 %v8600_v19  ;;  %v2124_v55 = vshrl.u32 %v7284_v21, 16 }
 0x185   : > { %v1524_v28 = vshrl.u32 %v8068_v26, 16  ;;  %v1527_v29 = vshll.u32 %v8068_v26, 16  ;;  %v719_v33 = vadd.f32 %v9195_v17, %v718_v27 }
 0x186   : > { %v2122_v37 = vrot.slane %v2120_v32, 1 }
 0x187   : > { %v1526_v34 = vrot.slane %v1524_v28, 3  ;;  %v1529_v35 = vrot.slane %v1527_v29, 4  ;;  %v820_v39 = vmax.f32 %v719_v33, 0.0  ;;  %757 = vmatmul.bf16.gmra.mxu0 %v7243_v24 }
 0x188   : > { %v2123_v41 = vsel %vm2047_vm1, %v2118_v36, %v2122_v37  ;;  %v2126_v59 = vor.u32 %v2124_v55, %v2122_v37  ;;  %v7311_v37 = vld [vmem:[#allocation8 + $0xe0] sm:$0xff] }
 0x189   : > { %v1530_v40 = vor.u32 %v1529_v35, %v1526_v34  ;;  %v7464_v42 = vpack.c.bf16 %v820_v39, %v819_v38  ;;  %2980 = vmatpush.bf16.msrb.mxu1 %v7311_v37  ;;  %v7248_v37 = vld [vmem:[%s9168_s13 + $0xc0] sm:$0xff] }
 0x18b   : > { %v1531_v43 = vsel %vm1433_vm0, %v1521_v9, %v1530_v40  ;;  %2364 = vmatmul.bf16.gmra.mxu3 %v2123_v41  ;;  %8043 = vst [vmem:[#allocation2 + $0x58] sm:$0xff] %v7464_v42   ;;  %v1533_v45 = vshrl.u32 %v7464_v42, 16  ;;  %v1536_v46 = vshll.u32 %v7464_v42, 16  ;;  %v7246_v41 = vld [vmem:[%s9168_s13 + $0xb0] sm:$0xff] }
 0x18c   : > { %1783 = vmatmul.bf16.gmra.mxu2 %v1531_v43  ;;  %v720_v44 = vpop.f32.mrf.mxu0 }
 0x18d   : > { %v1535_v48 = vrot.slane %v1533_v45, 3  ;;  %v1538_v49 = vrot.slane %v1536_v46, 4  ;;  %v721_v51 = vadd.f32 %v9195_v17, %v720_v44 }
 0x18f   : > { %v1539_v58 = vor.u32 %v1538_v49, %v1535_v48  ;;  %v821_v62 = vmax.f32 %v721_v51, 0.0 }
 0x191   : > { %v1540_v3 = vsel %vm1433_vm0, %v1530_v40, %v1539_v58 }
 0x192   : > { %v8602_v47 = vld [vmem:[#allocation2 + $0x54] sm:$0xff]  }
 0x193   : > { %v7285_v50 = vld [vmem:[#allocation2 + $0x54] sm:$0xff] }
 0x194   : > { %v723_v54 = vpop.f32.mrf.mxu0  ;;  %v2128_v56 = vshll.u32 %v7285_v50, 16  ;;  %1335 = vmatmul.bf16.gmra.mxu1 %v8602_v47  ;;  %v2132_v21 = vshrl.u32 %v7285_v50, 16 }
 0x195   : > { %v724_v57 = vadd.f32 %v9195_v17, %v723_v54 }
 0x196   : > { %v2130_v60 = vrot.slane %v2128_v56, 1 }
 0x197   : > { %v822_v63 = vmax.f32 %v724_v57, 0.0  ;;  %762 = vmatmul.bf16.gmra.mxu0 %v7244_v53 }
 0x198   : > { %v2131_v1 = vsel %vm2047_vm1, %v2126_v59, %v2130_v60  ;;  %v2134_v29 = vor.u32 %v2132_v21, %v2130_v60 }
 0x199   : > { %v7469_v2 = vpack.c.bf16 %v822_v63, %v821_v62 }
 0x19b   : > { %2369 = vmatmul.bf16.gmra.mxu3 %v2131_v1  ;;  %8044 = vst [vmem:[#allocation2 + $0x60] sm:$0xff] %v7469_v2  }
 0x19c   : > { %1788 = vmatmul.bf16.gmra.mxu2 %v1540_v3  ;;  %969 = vst [vmem:[#allocation2 + $0x60] sm:$0xf] %v9000_v15  ;;  %v725_v4 = vpop.f32.mrf.mxu0 }
 0x19d   : > { %v726_v9 = vadd.f32 %v9195_v17, %v725_v4 }
 0x19f   : > { %v823_v27 = vmax.f32 %v726_v9, 0.0 }
 0x1a3   : > { %v8604_v10 = vld [vmem:[#allocation2 + $0x5c] sm:$0xff]  }
 0x1a4   : > { %v8070_v11 = vld [vmem:[#allocation2 + $0x60] sm:$0xff]   ;;  %v728_v14 = vpop.f32.mrf.mxu0  ;;  %1340 = vmatmul.bf16.gmra.mxu1 %v8604_v10  ;;  %v7247_v10 = vld [vmem:[%s9168_s13 + $0xb8] sm:$0xff] }
 0x1a5   : > { %v7286_v12 = vld [vmem:[#allocation2 + $0x5c] sm:$0xff]  ;;  %v1542_v16 = vshrl.u32 %v8070_v11, 16  ;;  %v1545_v18 = vshll.u32 %v8070_v11, 16  ;;  %v729_v19 = vadd.f32 %v9195_v17, %v728_v14 }
 0x1a6   : > { %v2136_v22 = vshll.u32 %v7286_v12, 16  ;;  %v2140_v46 = vshrl.u32 %v7286_v12, 16 }
 0x1a7   : > { %v1544_v24 = vrot.slane %v1542_v16, 3  ;;  %v1547_v26 = vrot.slane %v1545_v18, 4  ;;  %v824_v28 = vmax.f32 %v729_v19, 0.0  ;;  %767 = vmatmul.bf16.gmra.mxu0 %v7245_v7  ;;  %v7354_v7 = vld [vmem:[#allocation8 + $0x178] sm:$0xff] }
 0x1a8   : > { %v2138_v31 = vrot.slane %v2136_v22, 1  ;;  %3899 = vmatpush.bf16.msrb.mxu3 %v7354_v7 }
 0x1a9   : > { %v1548_v32 = vor.u32 %v1547_v26, %v1544_v24  ;;  %v7474_v33 = vpack.c.bf16 %v824_v28, %v823_v27 }
 0x1aa   : > { %v2139_v34 = vsel %vm2047_vm1, %v2134_v29, %v2138_v31  ;;  %v2142_v51 = vor.u32 %v2140_v46, %v2138_v31  ;;  %v7318_v31 = vld [vmem:[#allocation8 + $0x118] sm:$0xff] }
 0x1ab   : > { %v1549_v35 = vsel %vm1433_vm0, %v1539_v58, %v1548_v32  ;;  %2374 = vmatmul.bf16.gmra.mxu3 %v2139_v34  ;;  %8045 = vst [vmem:[#allocation2 + $0x68] sm:$0xff] %v7474_v33   ;;  %3270 = vmatpush.bf16.msrb.mxu2 %v7318_v31 }
 0x1ac   : > { %1793 = vmatmul.bf16.gmra.mxu2 %v1549_v35  ;;  %970 = vst [vmem:[#allocation2 + $0x6c] sm:$0xf] %v9000_v15  ;;  %v730_v36 = vpop.f32.mrf.mxu0 }
 0x1ad   : > { %v731_v40 = vadd.f32 %v9195_v17, %v730_v36 }
 0x1af   : > { %v825_v54 = vmax.f32 %v731_v40, 0.0 }
 0x1b2   : > { %v8606_v38 = vld [vmem:[#allocation2 + $0x64] sm:$0xff]  }
 0x1b3   : > { %v7287_v39 = vld [vmem:[#allocation2 + $0x64] sm:$0xff] }
 0x1b4   : > { %v8071_v42 = vld [vmem:[#allocation2 + $0x68] sm:$0xff]   ;;  %v733_v43 = vpop.f32.mrf.mxu0  ;;  %v2144_v47 = vshll.u32 %v7287_v39, 16  ;;  %1345 = vmatmul.bf16.gmra.mxu1 %v8606_v38  ;;  %v2148_v12 = vshrl.u32 %v7287_v39, 16 }
 0x1b5   : > { %v1551_v44 = vshrl.u32 %v8071_v42, 16  ;;  %v1554_v45 = vshll.u32 %v8071_v42, 16  ;;  %v734_v48 = vadd.f32 %v9195_v17, %v733_v43 }
 0x1b6   : > { %v2146_v53 = vrot.slane %v2144_v47, 1 }
 0x1b7   : > { %v1553_v49 = vrot.slane %v1551_v44, 3  ;;  %v1556_v50 = vrot.slane %v1554_v45, 4  ;;  %v826_v55 = vmax.f32 %v734_v48, 0.0  ;;  %772 = vmatmul.bf16.gmra.mxu0 %v7246_v41 }
 0x1b8   : > { %v2147_v57 = vsel %vm2047_vm1, %v2142_v51, %v2146_v53  ;;  %v2150_v19 = vor.u32 %v2148_v12, %v2146_v53 }
 0x1b9   : > { %v1557_v56 = vor.u32 %v1556_v50, %v1553_v49  ;;  %v7479_v58 = vpack.c.bf16 %v826_v55, %v825_v54 }
 0x1bb   : > { %v1558_v59 = vsel %vm1433_vm0, %v1548_v32, %v1557_v56  ;;  %2379 = vmatmul.bf16.gmra.mxu3 %v2147_v57  ;;  %8046 = vst [vmem:[#allocation2 + $0x70] sm:$0xff] %v7479_v58   ;;  %v1560_v62 = vshrl.u32 %v7479_v58, 16  ;;  %v1563_v63 = vshll.u32 %v7479_v58, 16  ;;  %v7310_v32 = vld [vmem:[#allocation8 + $0xd8] sm:$0xff] }
 0x1bc   : > { %1798 = vmatmul.bf16.gmra.mxu2 %v1558_v59  ;;  %v735_v60 = vpop.f32.mrf.mxu0  ;;  %2981 = vmatpush.bf16.msrb.mxu1 %v7310_v32 }
 0x1bd   : > { %v1562_v3 = vrot.slane %v1560_v62, 3  ;;  %v1565_v4 = vrot.slane %v1563_v63, 4  ;;  %v736_v9 = vadd.f32 %v9195_v17, %v735_v60 }
 0x1bf   : > { %v1566_v18 = vor.u32 %v1565_v4, %v1562_v3  ;;  %v827_v22 = vmax.f32 %v736_v9, 0.0 }
 0x1c1   : > { %v1311_v1 = vpop.f32.mrf.mxu1  ;;  %v1567_v29 = vsel %vm1433_vm0, %v1557_v56, %v1566_v18 }
 0x1c2   : > { %v8608_v2 = vld [vmem:[#allocation2 + $0x6c] sm:$0xff]  }
 0x1c3   : > { %v7288_v6 = vld [vmem:[#allocation2 + $0x6c] sm:$0xff] }
 0x1c4   : > { %v738_v11 = vpop.f32.mrf.mxu0  ;;  %v2152_v14 = vshll.u32 %v7288_v6, 16  ;;  %1350 = vmatmul.bf16.gmra.mxu1 %v8608_v2  ;;  %v2156_v45 = vshrl.u32 %v7288_v6, 16 }
 0x1c5   : > { %v739_v16 = vadd.f32 %v9195_v17, %v738_v11  ;;  %v7249_v11 = vld [vmem:[%s9168_s13 + $0xc8] sm:$0xff] }
 0x1c6   : > { %v2154_v21 = vrot.slane %v2152_v14, 1 }
 0x1c7   : > { %v828_v24 = vmax.f32 %v739_v16, 0.0  ;;  %777 = vmatmul.bf16.gmra.mxu0 %v7247_v10 }
 0x1c8   : > { %v2155_v26 = vsel %vm2047_vm1, %v2150_v19, %v2154_v21  ;;  %v2158_v51 = vor.u32 %v2156_v45, %v2154_v21 }
 0x1c9   : > { %v7484_v27 = vpack.c.bf16 %v828_v24, %v827_v22  ;;  %v1313_v28 = vpop.f32.mrf.mxu1 }
 0x1cb   : > { %2384 = vmatmul.bf16.gmra.mxu3 %v2155_v26  ;;  %8047 = vst [vmem:[#allocation2 + $0x78] sm:$0xff] %v7484_v27  }
 0x1cc   : > { %1803 = vmatmul.bf16.gmra.mxu2 %v1567_v29  ;;  %971 = vst [vmem:[#allocation2 + $0x78] sm:$0xf] %v9000_v15  ;;  %v740_v33 = vpop.f32.mrf.mxu0 }
 0x1cd   : > { %v741_v38 = vadd.f32 %v9195_v17, %v740_v33 }
 0x1cf   : > { %v1764_v34 = vpop.f32.mrf.mxu2  ;;  %v829_v53 = vmax.f32 %v741_v38, 0.0 }
 0x1d0   : > { %v1765_v35 = vadd.f32 %v1764_v34, %v1311_v1 }
 0x1d1   : > { %v1316_v36 = vpop.f32.mrf.mxu1 }
 0x1d3   : > { %v8610_v39 = vld [vmem:[#allocation2 + $0x74] sm:$0xff]  }
 0x1d4   : > { %v8073_v40 = vld [vmem:[#allocation2 + $0x78] sm:$0xff]   ;;  %v743_v42 = vpop.f32.mrf.mxu0  ;;  %1355 = vmatmul.bf16.gmra.mxu1 %v8610_v39 }
 0x1d5   : > { %v7289_v41 = vld [vmem:[#allocation2 + $0x74] sm:$0xff]  ;;  %v1569_v43 = vshrl.u32 %v8073_v40, 16  ;;  %v1572_v44 = vshll.u32 %v8073_v40, 16  ;;  %v744_v46 = vadd.f32 %v9195_v17, %v743_v42 }
 0x1d6   : > { %v2160_v47 = vshll.u32 %v7289_v41, 16  ;;  %v2164_v21 = vshrl.u32 %v7289_v41, 16 }
 0x1d7   : > { %v1766_v48 = vpop.f32.mrf.mxu2  ;;  %v1571_v49 = vrot.slane %v1569_v43, 3  ;;  %v1574_v50 = vrot.slane %v1572_v44, 4  ;;  %v830_v54 = vmax.f32 %v744_v46, 0.0  ;;  %782 = vmatmul.bf16.gmra.mxu0 %v7248_v37  ;;  %v7353_v43 = vld [vmem:[#allocation8 + $0x170] sm:$0xff] }
 0x1d8   : > { %v1767_v55 = vadd.f32 %v1766_v48, %v1313_v28  ;;  %v2162_v56 = vrot.slane %v2160_v47, 1  ;;  %3900 = vmatpush.bf16.msrb.mxu3 %v7353_v43 }
 0x1d9   : > { %v1575_v57 = vor.u32 %v1574_v50, %v1571_v49  ;;  %v7489_v58 = vpack.c.bf16 %v830_v54, %v829_v53  ;;  %v1318_v60 = vpop.f32.mrf.mxu1  ;;  %v7317_v49 = vld [vmem:[#allocation8 + $0x110] sm:$0xff] }
 0x1da   : > { %v2163_v59 = vsel %vm2047_vm1, %v2158_v51, %v2162_v56  ;;  %v2166_v31 = vor.u32 %v2164_v21, %v2162_v56  ;;  %v7309_v50 = vld [vmem:[#allocation8 + $0xd0] sm:$0xff]  ;;  %3271 = vmatpush.bf16.msrb.mxu2 %v7317_v49 }
 0x1db   : > { %v1576_v62 = vsel %vm1433_vm0, %v1566_v18, %v1575_v57  ;;  %2389 = vmatmul.bf16.gmra.mxu3 %v2163_v59  ;;  %8048 = vst [vmem:[#allocation2 + $0x80] sm:$0xff] %v7489_v58   ;;  %2982 = vmatpush.bf16.msrb.mxu1 %v7309_v50  ;;  %v7250_v58 = vld [vmem:[%s9168_s13 + $0xd0] sm:$0xff]  ;;  %v9329_v21 = vld [vmem:[#allocation2 + $0x4] sm:$0xf] }
 0x1dc   : > { %1808 = vmatmul.bf16.gmra.mxu2 %v1576_v62  ;;  %972 = vst [vmem:[#allocation2 + $0x84] sm:$0xf] %v9000_v15  ;;  %v745_v63 = vpop.f32.mrf.mxu0  ;;  %v2350_v1 = vpop.f32.mrf.mxu3 }
 0x1dd   : > { %v9310_v2 = vadd.f32 %v2350_v1, %v1765_v35  ;;  %v746_v10 = vadd.f32 %v9195_v17, %v745_v63 }
 0x1df   : > { %v1769_v3 = vpop.f32.mrf.mxu2  ;;  %v831_v33 = vmax.f32 %v746_v10, 0.0 }
 0x1e0   : > { %v1770_v4 = vadd.f32 %v1769_v3, %v1316_v36 }
 0x1e1   : > { %v1321_v6 = vpop.f32.mrf.mxu1 }
 0x1e2   : > { %v8612_v7 = vld [vmem:[#allocation2 + $0x7c] sm:$0xff]  }
 0x1e3   : > { %v7290_v9 = vld [vmem:[#allocation2 + $0x7c] sm:$0xff] }
 0x1e4   : > { %v8074_v12 = vld [vmem:[#allocation2 + $0x80] sm:$0xff]   ;;  %v748_v14 = vpop.f32.mrf.mxu0  ;;  %v2352_v16 = vpop.f32.mrf.mxu3  ;;  %v2168_v22 = vshll.u32 %v7290_v9, 16  ;;  %1360 = vmatmul.bf16.gmra.mxu1 %v8612_v7  ;;  %v2172_v62 = vshrl.u32 %v7290_v9, 16 }
 0x1e5   : > { %v1578_v18 = vshrl.u32 %v8074_v12, 16  ;;  %v1581_v19 = vshll.u32 %v8074_v12, 16  ;;  %v749_v24 = vadd.f32 %v9195_v17, %v748_v14  ;;  %v9315_v26 = vadd.f32 %v2352_v16, %v1767_v55 }
 0x1e6   : > { %v2170_v32 = vrot.slane %v2168_v22, 1 }
 0x1e7   : > { %v1771_v27 = vpop.f32.mrf.mxu2  ;;  %v1580_v28 = vrot.slane %v1578_v18, 3  ;;  %v1583_v29 = vrot.slane %v1581_v19, 4  ;;  %v832_v34 = vmax.f32 %v749_v24, 0.0  ;;  %787 = vmatmul.bf16.gmra.mxu0 %v7249_v11 }
 0x1e8   : > { %v1772_v35 = vadd.f32 %v1771_v27, %v1318_v60  ;;  %v2171_v37 = vsel %vm2047_vm1, %v2166_v31, %v2170_v32  ;;  %v2174_v7 = vor.u32 %v2172_v62, %v2170_v32  ;;  %v1133_v32 = vunpack.c.l.b16 %v9329_v21 }
 0x1e9   : > { %v1584_v36 = vor.u32 %v1583_v29, %v1580_v28  ;;  %v7494_v38 = vpack.c.bf16 %v832_v34, %v831_v33  ;;  %v1323_v39 = vpop.f32.mrf.mxu1  ;;  %v9333_v28 = vld [vmem:[#allocation2 + $0x8] sm:$0xff]   ;;  %v9340_v34 = vld [vmem:[%s10548_s4] ss:$0 sm:$0xff] }
 0x1ea   : > { %v7543_v31 = vunpack.c.l.b16 %v9333_v28 }
 0x1eb   : > { %v1585_v40 = vsel %vm1433_vm0, %v1575_v57, %v1584_v36  ;;  %2394 = vmatmul.bf16.gmra.mxu3 %v2171_v37  ;;  %8049 = vst [vmem:[#allocation2 + $0x88] sm:$0xff] %v7494_v38   ;;  %v1587_v46 = vshrl.u32 %v7494_v38, 16  ;;  %v1590_v47 = vshll.u32 %v7494_v38, 16 }
 0x1ec   : > { %1813 = vmatmul.bf16.gmra.mxu2 %v1585_v40  ;;  %v750_v41 = vpop.f32.mrf.mxu0  ;;  %v2355_v42 = vpop.f32.mrf.mxu3  ;;  %v1181_v37 = vpack.c.b16 %v7543_v31, %v1133_v32  ;;  %v8584_v31 = vld [vmem:[#allocation2 + $0xc] sm:$0xff]  }
 0x1ed   : > { %v9319_v44 = vadd.f32 %v2355_v42, %v1770_v4  ;;  %v1589_v54 = vrot.slane %v1587_v46, 3  ;;  %v1592_v55 = vrot.slane %v1590_v47, 4  ;;  %v751_v57 = vadd.f32 %v9195_v17, %v750_v41 }
 0x1ef   : > { %v1774_v45 = vpop.f32.mrf.mxu2  ;;  %v833_v11 = vmax.f32 %v751_v57, 0.0 }
 0x1f0   : > { %v1775_v48 = vadd.f32 %v1774_v45, %v1321_v6  ;;  %v1593_v6 = vor.u32 %v1592_v55, %v1589_v54 }
 0x1f1   : > { %v1326_v51 = vpop.f32.mrf.mxu1 }
 0x1f2   : > { %v8614_v53 = vld [vmem:[#allocation2 + $0x84] sm:$0xff]   ;;  %v1594_v9 = vsel %vm1433_vm0, %v1584_v36, %v1593_v6 }
 0x1f3   : > { %v7291_v56 = vld [vmem:[#allocation2 + $0x84] sm:$0xff] }
 0x1f4   : > { %v753_v59 = vpop.f32.mrf.mxu0  ;;  %v2357_v60 = vpop.f32.mrf.mxu3  ;;  %v2176_v63 = vshll.u32 %v7291_v56, 16  ;;  %1365 = vmatmul.bf16.gmra.mxu1 %v8614_v53  ;;  %v2180_v43 = vshrl.u32 %v7291_v56, 16 }
 0x1f5   : > { %v754_v1 = vadd.f32 %v9195_v17, %v753_v59  ;;  %v9324_v3 = vadd.f32 %v2357_v60, %v1772_v35 }
 0x1f6   : > { %v2178_v10 = vrot.slane %v2176_v63, 1 }
 0x1f7   : > { %v1776_v4 = vpop.f32.mrf.mxu2  ;;  %v834_v12 = vmax.f32 %v754_v1, 0.0  ;;  %792 = vmatmul.bf16.gmra.mxu0 %v7250_v58 }
 0x1f8   : > { %v1777_v14 = vadd.f32 %v1776_v4, %v1323_v39  ;;  %v2179_v16 = vsel %vm2047_vm1, %v2174_v7, %v2178_v10  ;;  %v2182_v53 = vor.u32 %v2180_v43, %v2178_v10 }
 0x1f9   : > { %v7499_v18 = vpack.c.bf16 %v834_v12, %v833_v11  ;;  %v1328_v19 = vpop.f32.mrf.mxu1 }
 0x1fb   : > { %2399 = vmatmul.bf16.gmra.mxu3 %v2179_v16  ;;  %8050 = vst [vmem:[#allocation2 + $0x90] sm:$0xff] %v7499_v18   ;;  %v7316_v16 = vld [vmem:[#allocation8 + $0x108] sm:$0xff] }
 0x1fc   : > { %1818 = vmatmul.bf16.gmra.mxu2 %v1594_v9  ;;  %973 = vst [vmem:[#allocation2 + $0x90] sm:$0xf] %v9000_v15  ;;  %v755_v17 = vpop.f32.mrf.mxu0 }
 0x1fd   : > { %v756_v35 = vadd.f32 %v9340_v34, %v755_v17  ;;  %3272 = vmatpush.bf16.msrb.mxu2 %v7316_v16 }
 0x1fe   : > { %v2360_v22 = vpop.f32.mrf.mxu3 }
 0x1ff   : > { %v1779_v24 = vpop.f32.mrf.mxu2  ;;  %v9331_v27 = vadd.f32 %v2360_v22, %v1775_v48  ;;  %v835_v54 = vmax.f32 %v756_v35, 0.0 }
 0x200   : > { %v1780_v29 = vadd.f32 %v1779_v24, %v1326_v51 }
 0x201   : > { %v1331_v33 = vpop.f32.mrf.mxu1 }
 0x203   : > { %v8616_v36 = vld [vmem:[#allocation2 + $0x8c] sm:$0xff]  }
 0x204   : > { %v8076_v38 = vld [vmem:[#allocation2 + $0x90] sm:$0xff]   ;;  %v758_v40 = vpop.f32.mrf.mxu0  ;;  %1370 = vmatmul.bf16.gmra.mxu1 %v8616_v36 }
 0x205   : > { %v7292_v39 = vld [vmem:[#allocation2 + $0x8c] sm:$0xff]  ;;  %v1596_v41 = vshrl.u32 %v8076_v38, 16  ;;  %v1599_v42 = vshll.u32 %v8076_v38, 16  ;;  %v759_v45 = vadd.f32 %v9340_v34, %v758_v40 }
 0x206   : > { %v2362_v46 = vpop.f32.mrf.mxu3  ;;  %v2184_v47 = vshll.u32 %v7292_v39, 16  ;;  %v2188_v9 = vshrl.u32 %v7292_v39, 16 }
 0x207   : > { %v1781_v48 = vpop.f32.mrf.mxu2  ;;  %v9346_v49 = vadd.f32 %v2362_v46, %v1777_v14  ;;  %v1598_v50 = vrot.slane %v1596_v41, 3  ;;  %v1601_v51 = vrot.slane %v1599_v42, 4  ;;  %v836_v55 = vmax.f32 %v759_v45, 0.0  ;;  %1285 = vmatmul.bf16.vlgmr.msrb.gmra.mxu0 %v1181_v37 }
 0x208   : > { %v1782_v57 = vadd.f32 %v1781_v48, %v1328_v19  ;;  %v2186_v58 = vrot.slane %v2184_v47, 1  ;;  %2316 = vmatpush.bf16.msrb.mxu0 %v9216_v0  ;;  %v7352_v0 = vld [vmem:[#allocation8 + $0x168] sm:$0xff] }
 0x209   : > { %10573 = vst [vmem:[#allocation17_spill] sm:$0xff] %v9346_v49  ;;  %v1602_v59 = vor.u32 %v1601_v51, %v1598_v50  ;;  %v7504_v56 = vpack.c.bf16 %v836_v55, %v835_v54  ;;  %v1333_v62 = vpop.f32.mrf.mxu1  ;;  %3901 = vmatpush.bf16.msrb.mxu3 %v7352_v0  ;;  %v7308_v50 = vld [vmem:[#allocation8 + $0xc8] sm:$0xff] }
 0x20a   : > { %v2187_v60 = vsel %vm2047_vm1, %v2182_v53, %v2186_v58  ;;  %2983 = vmatpush.bf16.msrb.mxu1 %v7308_v50  ;;  %v8586_v0 = vld [vmem:[#allocation2 + $0x14] sm:$0xff]  }
 0x20b   : > { %v1603_v63 = vsel %vm1433_vm0, %v1593_v6, %v1602_v59  ;;  %2404 = vmatmul.bf16.gmra.mxu3 %v2187_v60  ;;  %8051 = vst [vmem:[#allocation2 + $0x98] sm:$0xff] %v7504_v56  }
 0x20c   : > { %1823 = vmatmul.bf16.gmra.mxu2 %v1603_v63  ;;  %974 = vst [vmem:[#allocation2 + $0x9c] sm:$0xf] %v9000_v15  ;;  %v760_v1 = vpop.f32.mrf.mxu0  ;;  %2317 = vmatpush.bf16.msrb.mxu0 %v9220_v5 }
 0x20d   : > { %v761_v18 = vadd.f32 %v9340_v34, %v760_v1 }
 0x20e   : > { %v2365_v4 = vpop.f32.mrf.mxu3 }
 0x20f   : > { %v1784_v7 = vpop.f32.mrf.mxu2  ;;  %v9353_v10 = vadd.f32 %v2365_v4, %v1780_v29  ;;  %v837_v40 = vmax.f32 %v761_v18, 0.0 }
 0x210   : > { %v1785_v11 = vadd.f32 %v1784_v7, %v1331_v33  ;;  %2318 = vmatpush.bf16.msrb.mxu0 %v9223_v8  ;;  %v2190_v33 = vor.u32 %v2188_v9, %v2186_v58 }
 0x211   : > { %10574 = vst [vmem:[#allocation18_spill] sm:$0xff] %v9353_v10  ;;  %v1336_v12 = vpop.f32.mrf.mxu1  ;;  %v7409_v10 = vld [vmem:[#allocation9 + $0x30] sm:$0xff] }
 0x212   : > { %v8618_v14 = vld [vmem:[#allocation2 + $0x94] sm:$0xff]  }
 0x213   : > { %v9356_v6 = vld [vmem:[#allocation2 + $0x94] sm:$0xff] }
 0x214   : > { %v8077_v19 = vld [vmem:[#allocation2 + $0x98] sm:$0xff]   ;;  %v763_v17 = vpop.f32.mrf.mxu0  ;;  %v2192_v24 = vshll.u32 %v9356_v6, 16  ;;  %2319 = vmatpush.bf16.msrb.mxu0 %v9228_v13  ;;  %1375 = vmatmul.bf16.gmra.mxu1 %v8618_v14 }
 0x215   : > { %v1605_v5 = vshrl.u32 %v8077_v19, 16  ;;  %v1608_v22 = vshll.u32 %v8077_v19, 16  ;;  %v764_v8 = vadd.f32 %v9340_v34, %v763_v17 }
 0x216   : > { %v2367_v29 = vpop.f32.mrf.mxu3  ;;  %v2194_v39 = vrot.slane %v2192_v24, 1 }
 0x217   : > { %v1786_v35 = vpop.f32.mrf.mxu2  ;;  %v9362_v36 = vadd.f32 %v2367_v29, %v1782_v57  ;;  %v1607_v37 = vrot.slane %v1605_v5, 3  ;;  %v1610_v38 = vrot.slane %v1608_v22, 4  ;;  %v838_v41 = vmax.f32 %v764_v8, 0.0  ;;  %1290 = vmatmul.bf16.gmra.mxu0 %v8584_v31 }
 0x218   : > { %v1787_v42 = vadd.f32 %v1786_v35, %v1333_v62  ;;  %v2195_v45 = vsel %vm2047_vm1, %v2190_v33, %v2194_v39  ;;  %2320 = vmatpush.bf16.msrb.mxu0 %v9232_v20 }
 0x219   : > { %10575 = vst [vmem:[#allocation19_spill] sm:$0xff] %v9362_v36  ;;  %v1611_v43 = vor.u32 %v1610_v38, %v1607_v37  ;;  %v7509_v13 = vpack.c.bf16 %v838_v41, %v837_v40  ;;  %v1338_v46 = vpop.f32.mrf.mxu1  ;;  %v7366_v36 = vld [vmem:[#allocation8 + $0x1d8] sm:$0xff] }
 0x21b   : > { %v1612_v47 = vsel %vm1433_vm0, %v1602_v59, %v1611_v43  ;;  %2409 = vmatmul.bf16.gmra.mxu3 %v2195_v45  ;;  %8052 = vst [vmem:[#allocation2 + $0xa0] sm:$0xff] %v7509_v13   ;;  %v1614_v55 = vshrl.u32 %v7509_v13, 16  ;;  %v1617_v57 = vshll.u32 %v7509_v13, 16 }
 0x21c   : > { %1828 = vmatmul.bf16.gmra.mxu2 %v1612_v47  ;;  %v765_v48 = vpop.f32.mrf.mxu0  ;;  %2321 = vmatpush.bf16.msrb.mxu0 %v9235_v23  ;;  %v2196_v23 = vshrl.u32 %v9356_v6, 16  ;;  %v8588_v47 = vld [vmem:[#allocation2 + $0x1c] sm:$0xff]  }
 0x21d   : > { %v1616_v59 = vrot.slane %v1614_v55, 3  ;;  %v1619_v60 = vrot.slane %v1617_v57, 4  ;;  %v766_v63 = vadd.f32 %v9340_v34, %v765_v48 }
 0x21e   : > { %v2370_v51 = vpop.f32.mrf.mxu3  ;;  %v2198_v16 = vor.u32 %v2196_v23, %v2194_v39 }
 0x21f   : > { %v1789_v53 = vpop.f32.mrf.mxu2  ;;  %v9368_v54 = vadd.f32 %v2370_v51, %v1785_v11  ;;  %v1620_v14 = vor.u32 %v1619_v60, %v1616_v59  ;;  %v839_v19 = vmax.f32 %v766_v63, 0.0 }
 0x220   : > { %v1790_v58 = vadd.f32 %v1789_v53, %v1336_v12  ;;  %2322 = vmatpush.bf16.msrb.mxu0 %v9238_v25 }
 0x221   : > { %10576 = vst [vmem:[#allocation20_spill] sm:$0xff] %v9368_v54  ;;  %v1341_v20 = vpop.f32.mrf.mxu1 }
 0x222   : > { %v8620_v56 = vld [vmem:[#allocation2 + $0x9c] sm:$0xff]  }
 0x223   : > { %v7294_v62 = vld [vmem:[#allocation2 + $0x9c] sm:$0xff] }
 0x224   : > { %v768_v1 = vpop.f32.mrf.mxu0  ;;  %v2200_v4 = vshll.u32 %v7294_v62, 16  ;;  %2323 = vmatpush.bf16.msrb.mxu0 %v9243_v30  ;;  %1380 = vmatmul.bf16.gmra.mxu1 %v8620_v56  ;;  %v1621_v30 = vsel %vm1433_vm0, %v1611_v43, %v1620_v14  ;;  %v2204_v45 = vshrl.u32 %v7294_v62, 16 }
 0x225   : > { %v769_v7 = vadd.f32 %v9340_v34, %v768_v1 }
 0x226   : > { %v2372_v11 = vpop.f32.mrf.mxu3  ;;  %v2202_v18 = vrot.slane %v2200_v4, 1 }
 0x227   : > { %v1791_v12 = vpop.f32.mrf.mxu2  ;;  %v9375_v25 = vadd.f32 %v2372_v11, %v1787_v42  ;;  %v840_v9 = vmax.f32 %v769_v7, 0.0  ;;  %1295 = vmatmul.bf16.gmra.mxu0 %v8586_v0  ;;  %v7351_v7 = vld [vmem:[#allocation8 + $0x160] sm:$0xff]  ;;  %v1004_v0 = vld [vmem:[#allocation2] sm:$0x8] }
 0x228   : > { %v1792_v17 = vadd.f32 %v1791_v12, %v1338_v46  ;;  %v2203_v6 = vsel %vm2047_vm1, %v2198_v16, %v2202_v18  ;;  %v2206_v57 = vor.u32 %v2204_v45, %v2202_v18  ;;  %v7315_v11 = vld [vmem:[#allocation8 + $0x100] sm:$0xff]  ;;  %3902 = vmatpush.bf16.msrb.mxu3 %v7351_v7 }
 0x229   : > { %10577 = vst [vmem:[#allocation21_spill] sm:$0xff] %v9375_v25  ;;  %v7514_v5 = vpack.c.bf16 %v840_v9, %v839_v19  ;;  %v1343_v22 = vpop.f32.mrf.mxu1  ;;  %3273 = vmatpush.bf16.msrb.mxu2 %v7315_v11  ;;  %v7307_v9 = vld [vmem:[#allocation8 + $0xc0] sm:$0xff] }
 0x22a   : > { %2984 = vmatpush.bf16.msrb.mxu1 %v7307_v9 }
 0x22b   : > { %2414 = vmatmul.bf16.gmra.mxu3 %v2203_v6  ;;  %8053 = vst [vmem:[#allocation2 + $0xa8] sm:$0xff] %v7514_v5  }
 0x22c   : > { %1833 = vmatmul.bf16.gmra.mxu2 %v1621_v30  ;;  %975 = vst [vmem:[#allocation2 + $0xa8] sm:$0xf] %v9000_v15  ;;  %v770_v24 = vpop.f32.mrf.mxu0 }
 0x22d   : > { %v771_v37 = vadd.f32 %v9340_v34, %v770_v24 }
 0x22e   : > { %v2375_v8 = vpop.f32.mrf.mxu3 }
 0x22f   : > { %v1794_v29 = vpop.f32.mrf.mxu2  ;;  %v9380_v31 = vadd.f32 %v2375_v8, %v1790_v58  ;;  %v841_v58 = vmax.f32 %v771_v37, 0.0 }
 0x230   : > { %v1795_v33 = vadd.f32 %v1794_v29, %v1341_v20 }
 0x231   : > { %10578 = vst [vmem:[#allocation22_spill] sm:$0xff] %v9380_v31  ;;  %v1346_v35 = vpop.f32.mrf.mxu1  ;;  %v7398_v31 = vld [vmem:[#allocation8 + $0x218] sm:$0xff] }
 0x233   : > { %v8622_v38 = vld [vmem:[#allocation2 + $0xa4] sm:$0xff]  }
 0x234   : > { %v8079_v39 = vld [vmem:[#allocation2 + $0xa8] sm:$0xff]   ;;  %v773_v41 = vpop.f32.mrf.mxu0  ;;  %1385 = vmatmul.bf16.gmra.mxu1 %v8622_v38 }
 0x235   : > { %v7295_v40 = vld [vmem:[#allocation2 + $0xa4] sm:$0xff]  ;;  %v1623_v42 = vshrl.u32 %v8079_v39, 16  ;;  %v1626_v43 = vshll.u32 %v8079_v39, 16  ;;  %v774_v13 = vadd.f32 %v9340_v34, %v773_v41 }
 0x236   : > { %v2377_v46 = vpop.f32.mrf.mxu3  ;;  %v2208_v48 = vshll.u32 %v7295_v40, 16  ;;  %v2212_v24 = vshrl.u32 %v7295_v40, 16  ;;  %v8590_v41 = vld [vmem:[#allocation2 + $0x24] sm:$0xff]  }
 0x237   : > { %v1796_v50 = vpop.f32.mrf.mxu2  ;;  %v9384_v51 = vadd.f32 %v2377_v46, %v1792_v17  ;;  %v1625_v53 = vrot.slane %v1623_v42, 3  ;;  %v1628_v55 = vrot.slane %v1626_v43, 4  ;;  %v842_v20 = vmax.f32 %v774_v13, 0.0  ;;  %1300 = vmatmul.bf16.gmra.mxu0 %v8588_v47 }
 0x238   : > { %v1797_v56 = vadd.f32 %v1796_v50, %v1343_v22  ;;  %v2210_v59 = vrot.slane %v2208_v48, 1  ;;  %v1407_v17 = vunpack.c.l.b16 %v1004_v0 }
 0x239   : > { %10579 = vst [vmem:[#allocation23_spill] sm:$0xff] %v9384_v51  ;;  %v1629_v60 = vor.u32 %v1628_v55, %v1625_v53  ;;  %v7519_v63 = vpack.c.bf16 %v842_v20, %v841_v58  ;;  %v1348_v1 = vpop.f32.mrf.mxu1  ;;  %v1443_v58 = vshrl.u32 %v9333_v28, 16 }
 0x23a   : > { %v2211_v62 = vsel %vm2047_vm1, %v2206_v57, %v2210_v59  ;;  %v1408_v8 = vpack.c.b16 %v1133_v32, %v1407_v17  ;;  %v2214_v42 = vor.u32 %v2212_v24, %v2210_v59  ;;  %v1446_v59 = vshll.u32 %v9333_v28, 16 }
 0x23b   : > { %v1630_v23 = vsel %vm1433_vm0, %v1620_v14, %v1629_v60  ;;  %2419 = vmatmul.bf16.gmra.mxu3 %v2211_v62  ;;  %8054 = vst [vmem:[#allocation2 + $0xb0] sm:$0xff] %v7519_v63  }
 0x23c   : > { %1838 = vmatmul.bf16.gmra.mxu2 %v1630_v23  ;;  %976 = vst [vmem:[#allocation2 + $0xb4] sm:$0xf] %v9000_v15  ;;  %v775_v4 = vpop.f32.mrf.mxu0  ;;  %v1435_v53 = vshrl.u32 %v1408_v8, 16  ;;  %v1438_v55 = vshll.u32 %v1408_v8, 16  ;;  %v1448_v0 = vrot.slane %v1446_v59, 4 }
 0x23d   : > { %v776_v22 = vadd.f32 %v9340_v34, %v775_v4  ;;  %v1445_v4 = vrot.slane %v1443_v58, 3 }
 0x23e   : > { %v2380_v12 = vpop.f32.mrf.mxu3  ;;  %v1437_v62 = vrot.slane %v1435_v53, 3 }
 0x23f   : > { %v1799_v16 = vpop.f32.mrf.mxu2  ;;  %v9389_v18 = vadd.f32 %v2380_v12, %v1795_v33  ;;  %v843_v47 = vmax.f32 %v776_v22, 0.0 }
 0x240   : > { %v1800_v19 = vadd.f32 %v1799_v16, %v1346_v35 }
 0x241   : > { %10580 = vst [vmem:[#allocation24_spill] sm:$0xff] %v9389_v18  ;;  %v1351_v14 = vpop.f32.mrf.mxu1 }
 0x242   : > { %v8624_v6 = vld [vmem:[#allocation2 + $0xac] sm:$0xff]  }
 0x243   : > { %v9391_v5 = vld [vmem:[#allocation2 + $0xac] sm:$0xff] }
 0x244   : > { %v8080_v30 = vld [vmem:[#allocation2 + $0xb0] sm:$0xff]   ;;  %v778_v29 = vpop.f32.mrf.mxu0  ;;  %v2216_v38 = vshll.u32 %v9391_v5, 16  ;;  %1390 = vmatmul.bf16.gmra.mxu1 %v8624_v6  ;;  %v1449_v6 = vor.u32 %v1448_v0, %v1445_v4  ;;  %v7348_v0 = vld [vmem:[#allocation8 + $0x148] sm:$0xff] }
 0x245   : > { %v1632_v33 = vshrl.u32 %v8080_v30, 16  ;;  %v1635_v37 = vshll.u32 %v8080_v30, 16  ;;  %v779_v35 = vadd.f32 %v9340_v34, %v778_v29 }
 0x246   : > { %v2382_v39 = vpop.f32.mrf.mxu3  ;;  %v2218_v40 = vrot.slane %v2216_v38, 1 }
 0x247   : > { %v1801_v43 = vpop.f32.mrf.mxu2  ;;  %v9398_v45 = vadd.f32 %v2382_v39, %v1797_v56  ;;  %v1634_v13 = vrot.slane %v1632_v33, 3  ;;  %v1637_v46 = vrot.slane %v1635_v37, 4  ;;  %v844_v21 = vmax.f32 %v779_v35, 0.0  ;;  %1305 = vmatmul.bf16.gmra.mxu0 %v8590_v41 }
 0x248   : > { %v1802_v32 = vadd.f32 %v1801_v43, %v1348_v1  ;;  %v2219_v50 = vsel %vm2047_vm1, %v2214_v42, %v2218_v40  ;;  %v1440_v1 = vrot.slane %v1438_v55, 4  ;;  %v2220_v33 = vshrl.u32 %v9391_v5, 16 }
 0x249   : > { %10581 = vst [vmem:[#allocation25_spill] sm:$0xff] %v9398_v45  ;;  %v1638_v48 = vor.u32 %v1637_v46, %v1634_v13  ;;  %v9401_v57 = vpack.c.bf16 %v844_v21, %v843_v47  ;;  %v1353_v20 = vpop.f32.mrf.mxu1  ;;  %v9422_v13 = vld [vmem:[#allocation2 + $0x10] sm:$0xff]  }
 0x24a   : > { %v1441_v9 = vor.u32 %v1440_v1, %v1437_v62  ;;  %v2222_v42 = vor.u32 %v2220_v33, %v2218_v40  ;;  %v1452_v53 = vshrl.u32 %v9422_v13, 16  ;;  %v1455_v55 = vshll.u32 %v9422_v13, 16  ;;  %v7350_v40 = vld [vmem:[#allocation8 + $0x158] sm:$0xff] }
 0x24b   : > { %v1639_v56 = vsel %vm1433_vm0, %v1629_v60, %v1638_v48  ;;  %2424 = vmatmul.bf16.gmra.mxu3 %v2219_v50  ;;  %8055 = vst [vmem:[#allocation2 + $0xb8] sm:$0xff] %v9401_v57   ;;  %v1641_v12 = vshrl.u32 %v9401_v57, 16  ;;  %v1644_v16 = vshll.u32 %v9401_v57, 16 }
 0x24c   : > { %1843 = vmatmul.bf16.gmra.mxu2 %v1639_v56  ;;  %v780_v63 = vpop.f32.mrf.mxu0  ;;  %3903 = vmatpush.bf16.msrb.mxu3 %v7350_v40  ;;  %v1454_v59 = vrot.slane %v1452_v53, 3  ;;  %v9447_v40 = vld [vmem:[#allocation2 + $0x18] sm:$0xff]  }
 0x24d   : > { %v1643_v22 = vrot.slane %v1641_v12, 3  ;;  %v1646_v30 = vrot.slane %v1644_v16, 4  ;;  %v781_v8 = vadd.f32 %v9340_v34, %v780_v63  ;;  %v1457_v63 = vrot.slane %v1455_v55, 4 }
 0x24e   : > { %v2385_v23 = vpop.f32.mrf.mxu3 }
 0x24f   : > { %v1804_v7 = vpop.f32.mrf.mxu2  ;;  %v9407_v11 = vadd.f32 %v2385_v23, %v1800_v19  ;;  %v1450_v19 = vsel %vm1433_vm0, %v1441_v9, %v1449_v6  ;;  %v9420_v41 = vor.u32 %v1646_v30, %v1643_v22  ;;  %v845_v46 = vmax.f32 %v781_v8, 0.0  ;;  %v7349_v23 = vld [vmem:[#allocation8 + $0x150] sm:$0xff]  ;;  %v8397_v8 = vld [vmem:[#allocation2 + $0xc] sm:$0x8] }
 0x250   : > { %v1805_v60 = vadd.f32 %v1804_v7, %v1351_v14  ;;  %3904 = vmatpush.bf16.msrb.mxu3 %v7349_v23  ;;  %v9432_v7 = vor.u32 %v1457_v63, %v1454_v59  ;;  %v7632_v22 = vunpack.c.h.b16 %v9401_v57 }
 0x251   : > { %10582 = vst [vmem:[#allocation26_spill] sm:$0xff] %v9407_v11  ;;  %v1356_v17 = vpop.f32.mrf.mxu1 }
 0x252   : > { %v8625_v28 = vld [vmem:[#allocation2 + $0xb4] sm:$0xff]  }
 0x253   : > { %v9411_v24 = vld [vmem:[#allocation2 + $0xb4] sm:$0xff] }
 0x254   : > { %v783_v29 = vpop.f32.mrf.mxu0  ;;  %v2224_v37 = vshll.u32 %v9411_v24, 16  ;;  %1395 = vmatmul.bf16.gmra.mxu1 %v8625_v28  ;;  %3905 = vmatpush.bf16.msrb.mxu3 %v7348_v0  ;;  %v1461_v0 = vshrl.u32 %v9447_v40, 16 }
 0x255   : > { %v784_v38 = vadd.f32 %v9340_v34, %v783_v29 }
 0x256   : > { %v2387_v14 = vpop.f32.mrf.mxu3  ;;  %v2226_v43 = vrot.slane %v2224_v37, 1  ;;  %v8627_v37 = vld [vmem:[#allocation2 + $0xc] sm:$0xf0]  }
 0x257   : > { %v1806_v35 = vpop.f32.mrf.mxu2  ;;  %v9418_v39 = vadd.f32 %v2387_v14, %v1802_v32  ;;  %v846_v47 = vmax.f32 %v784_v38, 0.0  ;;  %1738 = vmatmul.bf16.vlgmr.msra.gmra.mxu0 %v1450_v19  ;;  %v1648_v32 = vsel %vm1433_vm0, %v1638_v48, %v9420_v41  ;;  %v1459_v19 = vsel %vm1433_vm0, %v1449_v6, %v9432_v7  ;;  %v7402_v38 = vld [vmem:[#allocation8 + $0x238] sm:$0xff]  ;;  %v8629_v6 = vld [vmem:[#allocation2 + $0x14] sm:$0xff]  }
 0x258   : > { %v1807_v21 = vadd.f32 %v1806_v35, %v1353_v20  ;;  %v2227_v5 = vsel %vm2047_vm1, %v2222_v42, %v2226_v43  ;;  %v7370_v14 = vld [vmem:[#allocation8 + $0x1f8] sm:$0xff]  ;;  %5482 = vmatpush.bf16.msra.mxu2 %v7402_v38  ;;  %v8398_v59 = vor.u32 %v8627_v37, %v8397_v8  ;;  %v1463_v38 = vrot.slane %v1461_v0, 3 }
 0x259   : > { %10583 = vst [vmem:[#allocation27_spill] sm:$0xff] %v9418_v39  ;;  %v7529_v50 = vpack.c.bf16 %v846_v47, %v845_v46  ;;  %v1358_v58 = vpop.f32.mrf.mxu1  ;;  %4849 = vmatpush.bf16.msra.mxu1 %v7370_v14 }
 0x25a   : > { %v2685_v8 = vshll.u32 %v8398_v59, 16 }
 0x25b   : > { %2429 = vmatmul.bf16.gmra.mxu3 %v2227_v5  ;;  %8056 = vst [vmem:[#allocation2 + $0xc0] sm:$0xff] %v7529_v50   ;;  %v7347_v5 = vld [vmem:[#allocation8 + $0x140] sm:$0xff] }
 0x25c   : > { %1848 = vmatmul.bf16.gmra.mxu2 %v1648_v32  ;;  %977 = vst [vmem:[#allocation2 + $0xc0] sm:$0xf] %v9000_v15  ;;  %v785_v56 = vpop.f32.mrf.mxu0  ;;  %3906 = vmatpush.bf16.msrb.mxu3 %v7347_v5 }
 0x25d   : > { %v786_v12 = vadd.f32 %v9340_v34, %v785_v56 }
 0x25e   : > { %v2390_v20 = vpop.f32.mrf.mxu3 }
 0x25f   : > { %v1809_v62 = vpop.f32.mrf.mxu2  ;;  %v9430_v1 = vadd.f32 %v2390_v20, %v1805_v60  ;;  %v2228_v60 = vshrl.u32 %v9411_v24, 16  ;;  %v847_v50 = vmax.f32 %v786_v12, 0.0  ;;  %v1464_v12 = vshll.u32 %v9447_v40, 16 }
 0x260   : > { %v1810_v4 = vadd.f32 %v1809_v62, %v1356_v17 }
 0x261   : > { %10584 = vst [vmem:[#allocation28_spill] sm:$0xff] %v9430_v1  ;;  %v9434_v48 = vpop.f32.mrf.mxu1  ;;  %v2230_v47 = vor.u32 %v2228_v60, %v2226_v43  ;;  %v2682_v60 = vshrl.u32 %v8398_v59, 16  ;;  %v1466_v14 = vrot.slane %v1464_v12, 4 }
 0x262   : > { %v1907_v24 = vld [vmem:[#allocation2 + $0xc4] sm:$0x1] }
 0x263   : > { %v1052_v16 = vld [vmem:[#allocation2 + $0xc0] sm:$0xf]  ;;  %v2021_v43 = vunpack.c.l.b16 %v1907_v24  ;;  %v2687_v24 = vrot.slane %v2685_v8, 4 }
 0x264   : > { %v9437_v9 = vld [vmem:[#allocation2 + $0xbc] sm:$0xff]  ;;  %v788_v28 = vpop.f32.mrf.mxu0  ;;  %v1180_v30 = vunpack.c.l.b16 %v1052_v16  ;;  %v2690_v16 = vshrl.u32 %v8629_v6, 16 }
 0x265   : > { %v789_v17 = vadd.f32 %v9340_v34, %v788_v28  ;;  %v2232_v33 = vshll.u32 %v9437_v9, 16  ;;  %v2693_v28 = vshll.u32 %v8629_v6, 16  ;;  %v1467_v6 = vor.u32 %v1466_v14, %v1463_v38  ;;  %v9477_v38 = vld [vmem:[#allocation2 + $0x18] sm:$0xff] }
 0x266   : > { %v2392_v29 = vpop.f32.mrf.mxu3  ;;  %v1204_v57 = vpack.c.b16 %v1180_v30, %v7632_v22  ;;  %v1432_v46 = vpack.c.b16 %v1180_v30, %v1180_v30 }
 0x267   : > { %v1811_v35 = vpop.f32.mrf.mxu2  ;;  %v9445_v42 = vadd.f32 %v2392_v29, %v1807_v21  ;;  %v848_v53 = vmax.f32 %v789_v17, 0.0  ;;  %1743 = vmatmul.bf16.gmra.mxu0 %v1459_v19  ;;  %v2234_v32 = vrot.slane %v2232_v33, 1  ;;  %v2046_v29 = vpack.c.b16 %v2021_v43, %v2021_v43 }
 0x268   : > { %v1812_v55 = vadd.f32 %v1811_v35, %v1358_v58  ;;  %1400 = vmatmul.bf16.gmra.mxu1 %v1204_v57  ;;  %v1650_v56 = vshrl.u32 %v1432_v46, 16  ;;  %v1653_v20 = vshll.u32 %v1432_v46, 16  ;;  %v2692_v57 = vrot.slane %v2690_v16, 3 }
 0x269   : > { %10585 = vst [vmem:[#allocation29_spill] sm:$0xff] %v9445_v42  ;;  %v7534_v21 = vpack.c.bf16 %v848_v53, %v847_v50  ;;  %v2235_v63 = vsel %vm2047_vm1, %v2230_v47, %v2234_v32  ;;  %v1363_v62 = vpop.f32.mrf.mxu1  ;;  %v2695_v46 = vrot.slane %v2693_v28, 4  ;;  %v2684_v47 = vrot.slane %v2682_v60, 3  ;;  %v9469_v28 = vld [vmem:[#allocation2 + $0x20] sm:$0xff]  }
 0x26a   : > { %v1652_v23 = vrot.slane %v1650_v56, 3  ;;  %v1655_v58 = vrot.slane %v1653_v20, 4  ;;  %v2240_v50 = vshll.u32 %v2046_v29, 16  ;;  %v1468_v0 = vsel %vm1433_vm0, %v9432_v7, %v1467_v6  ;;  %v7323_v7 = vld [vmem:[#allocation2 + $0x10] sm:$0xff] }
 0x26b   : > { %2434 = vmatmul.bf16.gmra.mxu3 %v2235_v63  ;;  %8057 = vst [vmem:[#allocation2 + $0xc8] sm:$0xff] %v7534_v21   ;;  %v9459_v56 = vor.u32 %v2695_v46, %v2692_v57  ;;  %v1473_v8 = vshll.u32 %v9469_v28, 16 }
 0x26c   : > { %978 = vst [vmem:[#allocation2 + $0xcc] sm:$0xf] %v9000_v15  ;;  %v790_v22 = vpop.f32.mrf.mxu0  ;;  %v1656_v30 = vor.u32 %v1655_v58, %v1652_v23  ;;  %v2242_v43 = vrot.slane %v2240_v50, 1 }
 0x26d   : > { %v791_v5 = vadd.f32 %v9340_v34, %v790_v22  ;;  %v8631_v22 = vld [vmem:[#allocation2 + $0x1c] sm:$0xff]  }
 0x26e   : > { %v2395_v17 = vpop.f32.mrf.mxu3  ;;  %v1657_v37 = vsel %vm1433_vm0, %v9420_v41, %v1656_v30  ;;  %v2688_v41 = vor.u32 %v2687_v24, %v2684_v47  ;;  %v1475_v47 = vrot.slane %v1473_v8, 4  ;;  %v3634_v24 = vshll.u32 %v7323_v7, 16 }
 0x26f   : > { %v1814_v19 = vpop.f32.mrf.mxu2  ;;  %v9453_v33 = vadd.f32 %v2395_v17, %v1810_v4  ;;  %1853 = vmatmul.bf16.gmra.mxu2 %v1657_v37  ;;  %v2236_v4 = vshrl.u32 %v9437_v9, 16  ;;  %v849_v59 = vmax.f32 %v791_v5, 0.0  ;;  %v2702_v17 = vshll.u32 %v8631_v22, 16 }
 0x270   : > { %v1815_v35 = vadd.f32 %v1814_v19, %v9434_v48  ;;  %v2697_v9 = vsel %vm1433_vm0, %v2688_v41, %v9459_v56 }
 0x271   : > { %10586 = vst [vmem:[#allocation30_spill] sm:$0xff] %v9453_v33  ;;  %v1366_v53 = vpop.f32.mrf.mxu1  ;;  %v2238_v63 = vor.u32 %v2236_v4, %v2234_v32 }
 0x273   : > { %v2243_v32 = vsel %vm2047_vm1, %v2238_v63, %v2242_v43  ;;  %v3636_v63 = vrot.slane %v3634_v24, 1  ;;  %v3632_v43 = vshrl.u32 %v7323_v7, 16 }
 0x274   : > { %v793_v20 = vpop.f32.mrf.mxu0 }
 0x275   : > { %v794_v21 = vadd.f32 %v9340_v34, %v793_v20  ;;  %v2704_v20 = vrot.slane %v2702_v17, 4  ;;  %v9498_v17 = vld [vmem:[#allocation2 + $0x20] sm:$0xff] }
 0x276   : > { %v2397_v48 = vpop.f32.mrf.mxu3 }
 0x277   : > { %v1816_v23 = vpop.f32.mrf.mxu2  ;;  %v9463_v58 = vadd.f32 %v2397_v48, %v1812_v55  ;;  %v850_v12 = vmax.f32 %v794_v21, 0.0  ;;  %1748 = vmatmul.bf16.gmra.mxu0 %v1468_v0  ;;  %v1470_v55 = vshrl.u32 %v9469_v28, 16 }
 0x278   : > { %v1817_v16 = vadd.f32 %v1816_v23, %v1363_v62  ;;  %2985 = vmatmul.bf16.vlgmr.msrb.gmra.mxu1 %v2697_v9  ;;  %v2699_v62 = vshrl.u32 %v8631_v22, 16 }
 0x279   : > { %10587 = vst [vmem:[#allocation31_spill] sm:$0xff] %v9463_v58  ;;  %v7539_v30 = vpack.c.bf16 %v850_v12, %v849_v59  ;;  %v1368_v60 = vpop.f32.mrf.mxu1  ;;  %v1472_v46 = vrot.slane %v1470_v55, 3  ;;  %v3639_v59 = vshll.u32 %v9477_v38, 16 }
 0x27a   : > { %v2701_v4 = vrot.slane %v2699_v62, 3 }
 0x27b   : > { %2439 = vmatmul.bf16.gmra.mxu3 %v2243_v32  ;;  %8058 = vst [vmem:[#allocation2 + $0xd0] sm:$0xff] %v7539_v30   ;;  %v3637_v30 = vor.u32 %v3636_v63, %v3632_v43  ;;  %v8633_v32 = vld [vmem:[#allocation2 + $0x24] sm:$0xff]  }
 0x27c   : > { %6562 = vst [vmem:[#allocation2 + $0xd0] sm:$0xf] %v9000_v15  ;;  %v795_v29 = vpop.f32.mrf.mxu0  ;;  %v2705_v48 = vor.u32 %v2704_v20, %v2701_v4  ;;  %v2708_v8 = vshrl.u32 %v8633_v32, 16  ;;  %v2711_v7 = vshll.u32 %v8633_v32, 16  ;;  %v3643_v20 = vshrl.u32 %v9477_v38, 16  ;;  %v7276_v38 = vld [vmem:[#allocation2 + $0xc] sm:$0xff] }
 0x27d   : > { %6563 = vst [vmem:[#allocation2 + $0xd4] sm:$0xf] %v9000_v15  ;;  %v796_v19 = vadd.f32 %v9340_v34, %v795_v29  ;;  %v9483_v34 = vor.u32 %v1475_v47, %v1472_v46  ;;  %v7369_v47 = vld [vmem:[#allocation8 + $0x1f0] sm:$0xff] }
 0x27e   : > { %v2400_v37 = vpop.f32.mrf.mxu3  ;;  %v2706_v22 = vsel %vm1433_vm0, %v9459_v56, %v2705_v48  ;;  %v2710_v56 = vrot.slane %v2708_v8, 3  ;;  %4850 = vmatpush.bf16.msra.mxu1 %v7369_v47 }
 0x27f   : > { %v1819_v14 = vpop.f32.mrf.mxu2  ;;  %v9479_v57 = vadd.f32 %v2400_v37, %v1815_v35  ;;  %v851_v5 = vmax.f32 %v796_v19, 0.0  ;;  %3274 = vmatmul.bf16.vlgmr.msrb.gmra.mxu2 %v9422_v13  ;;  %v3641_v13 = vrot.slane %v3639_v59, 1  ;;  %v1477_v12 = vsel %vm1433_vm0, %v1467_v6, %v9483_v34  ;;  %v7401_v37 = vld [vmem:[#allocation8 + $0x230] sm:$0xff] }
 0x280   : > { %v1820_v50 = vadd.f32 %v1819_v14, %v1366_v53  ;;  %v2713_v19 = vrot.slane %v2711_v7, 4  ;;  %v3647_v14 = vshll.u32 %v9498_v17, 16  ;;  %5483 = vmatpush.bf16.msra.mxu2 %v7401_v37 }
 0x281   : > { %10588 = vst [vmem:[#allocation32_spill] sm:$0xff] %v9479_v57  ;;  %v905_v41 = vpack.c.bf16 %v851_v5, %v851_v5  ;;  %v1371_v21 = vpop.f32.mrf.mxu1  ;;  %v3642_v55 = vsel %vm2047_vm1, %v3637_v30, %v3641_v13  ;;  %v3645_v43 = vor.u32 %v3643_v20, %v3641_v13  ;;  %v2056_v13 = vshll.u32 %v7276_v38, 16 }
 0x282   : > { %v2714_v24 = vor.u32 %v2713_v19, %v2710_v56 }
 0x283   : > { %959 = vst [vmem:[#allocation2 + $0xd8] sm:$0xf] %v905_v41 }
 0x284   : > { %979 = vst [vmem:[#allocation2 + $0xd8] sm:$0xf] %v9000_v15  ;;  %v9486_v35 = vpop.f32.mrf.mxu0 }
 0x285   : > { %6564 = vst [vmem:[#allocation2 + $0xd8] sm:$0xf] %v9000_v15 }
 0x286   : > { %v2402_v53 = vpop.f32.mrf.mxu3 }
 0x287   : > { %v1821_v23 = vpop.f32.mrf.mxu2  ;;  %v9489_v0 = vadd.f32 %v2402_v53, %v1817_v16  ;;  %1753 = vmatmul.bf16.gmra.mxu0 %v1477_v12  ;;  %v2715_v53 = vsel %vm1433_vm0, %v2705_v48, %v2714_v24 }
 0x288   : > { %v1822_v9 = vadd.f32 %v1821_v23, %v1368_v60  ;;  %2990 = vmatmul.bf16.gmra.mxu1 %v2706_v22  ;;  %v8635_v23 = vld [vmem:[#allocation2 + $0x2c] sm:$0xff]  }
 0x289   : > { %10589 = vst [vmem:[#allocation33_spill] sm:$0xff] %v9489_v0  ;;  %v1373_v15 = vpop.f32.mrf.mxu1  ;;  %v2720_v32 = vshll.u32 %v8635_v23, 16 }
 0x28b   : > { %3907 = vmatmul.bf16.vlgmr.msrb.gmra.mxu3 %v3642_v55  ;;  %v2722_v19 = vrot.slane %v2720_v32, 4 }
 0x28c   : > { %v9496_v62 = vpop.f32.mrf.mxu0 }
 0x28e   : > { %v2405_v16 = vpop.f32.mrf.mxu3 }
 0x28f   : > { %v1824_v6 = vpop.f32.mrf.mxu2  ;;  %v9500_v60 = vadd.f32 %v2405_v16, %v1820_v50  ;;  %3279 = vmatmul.bf16.gmra.mxu2 %v9447_v40  ;;  %v3649_v50 = vrot.slane %v3647_v14, 1  ;;  %v1486_v40 = vsel %vm1433_vm0, %v9483_v34, %v9251_v52  ;;  %v7326_v52 = vld [vmem:[#allocation2 + $0x28] sm:$0xff] }
 0x290   : > { %v1825_v29 = vadd.f32 %v1824_v6, %v1371_v21  ;;  %v7275_v21 = vld [vmem:[#allocation2 + $0x4] sm:$0xff]  ;;  %v3655_v37 = vshll.u32 %v7326_v52, 16 }
 0x291   : > { %10590 = vst [vmem:[#allocation34_spill] sm:$0xff] %v9500_v60  ;;  %v1376_v46 = vpop.f32.mrf.mxu1  ;;  %v3650_v12 = vsel %vm2047_vm1, %v3645_v43, %v3649_v50  ;;  %v2051_v30 = vshll.u32 %v7275_v21, 16  ;;  %v2049_v16 = vshrl.u32 %v7275_v21, 16 }
 0x293   : > { %v2053_v48 = vrot.slane %v2051_v30, 1  ;;  %v8637_v30 = vld [vmem:[#allocation2 + $0x34] sm:$0xff]  }
 0x294   : > { %v9504_v5 = vpop.f32.mrf.mxu0 }
 0x295   : > { %v2054_v47 = vor.u32 %v2053_v48, %v2049_v16  ;;  %v9531_v48 = vld [vmem:[#allocation2 + $0x30] sm:$0xff] }
 0x296   : > { %v2407_v4 = vpop.f32.mrf.mxu3 }
 0x297   : > { %v1826_v41 = vpop.f32.mrf.mxu2  ;;  %v9507_v59 = vadd.f32 %v2407_v4, %v1822_v9  ;;  %1758 = vmatmul.bf16.gmra.mxu0 %v1486_v40  ;;  %v2717_v9 = vshrl.u32 %v8635_v23, 16  ;;  %v2058_v4 = vrot.slane %v2056_v13, 1 }
 0x298   : > { %v1827_v63 = vadd.f32 %v1826_v41, %v1373_v15  ;;  %2995 = vmatmul.bf16.gmra.mxu1 %v2715_v53  ;;  %v3651_v53 = vshrl.u32 %v9498_v17, 16  ;;  %v2726_v17 = vshrl.u32 %v8637_v30, 16 }
 0x299   : > { %10591 = vst [vmem:[#allocation35_spill] sm:$0xff] %v9507_v59  ;;  %v1378_v22 = vpop.f32.mrf.mxu1  ;;  %v2719_v56 = vrot.slane %v2717_v9, 3 }
 0x29b   : > { %3912 = vmatmul.bf16.gmra.mxu3 %v3650_v12  ;;  %v2723_v20 = vor.u32 %v2722_v19, %v2719_v56  ;;  %v3653_v12 = vor.u32 %v3651_v53, %v3649_v50  ;;  %v2728_v19 = vrot.slane %v2726_v17, 3  ;;  %v2060_v53 = vshrl.u32 %v7276_v38, 16  ;;  %v7362_v38 = vld [vmem:[#allocation8 + $0x1b8] sm:$0xff] }
 0x29c   : > { %v9514_v55 = vpop.f32.mrf.mxu0  ;;  %4560 = vmatpush.bf16.msra.mxu0 %v7362_v38 }
 0x29e   : > { %v2410_v8 = vpop.f32.mrf.mxu3 }
 0x29f   : > { %v1829_v7 = vpop.f32.mrf.mxu2  ;;  %v9516_v15 = vadd.f32 %v2410_v8, %v1825_v29  ;;  %3284 = vmatmul.bf16.gmra.mxu2 %v9469_v28  ;;  %v3657_v29 = vrot.slane %v3655_v37, 1  ;;  %v2724_v28 = vsel %vm1433_vm0, %v2714_v24, %v2723_v20  ;;  %v9527_v8 = vld [vmem:[#allocation2 + $0x14] sm:$0xff]  ;;  %v9535_v24 = vld [vmem:[#allocation2 + $0x28] sm:$0xff]  }
 0x2a0   : > { %v1830_v6 = vadd.f32 %v1829_v7, %v1376_v46  ;;  %v2059_v46 = vsel %vm2047_vm1, %v2054_v47, %v2058_v4  ;;  %v2729_v7 = vshll.u32 %v8637_v30, 16  ;;  %v2064_v50 = vshll.u32 %v9527_v8, 16 }
 0x2a1   : > { %10592 = vst [vmem:[#allocation36_spill] sm:$0xff] %v9516_v15  ;;  %v1381_v14 = vpop.f32.mrf.mxu1  ;;  %v3658_v9 = vsel %vm2047_vm1, %v3653_v12, %v3657_v29  ;;  %v3663_v47 = vshll.u32 %v9531_v48, 16  ;;  %v2062_v12 = vor.u32 %v2060_v53, %v2058_v4  ;;  %v3659_v30 = vshrl.u32 %v7326_v52, 16  ;;  %v9547_v4 = vld [vmem:[#allocation2 + $0x1c] sm:$0xff] }
 0x2a2   : > { %v2731_v37 = vrot.slane %v2729_v7, 4  ;;  %v7361_v53 = vld [vmem:[#allocation8 + $0x1b0] sm:$0xff] }
 0x2a3   : > { %v3661_v7 = vor.u32 %v3659_v30, %v3657_v29  ;;  %4561 = vmatpush.bf16.msra.mxu0 %v7361_v53  ;;  %v7359_v53 = vld [vmem:[#allocation8 + $0x1a0] sm:$0xff] }
 0x2a4   : > { %v9519_v41 = vpop.f32.mrf.mxu0 }
 0x2a6   : > { %v2412_v40 = vpop.f32.mrf.mxu3 }
 0x2a7   : > { %v1831_v43 = vpop.f32.mrf.mxu2  ;;  %v9522_v21 = vadd.f32 %v2412_v40, %v1827_v63  ;;  %2324 = vmatmul.bf16.vlgmr.msrb.gmra.mxu0 %v2059_v46  ;;  %v2732_v46 = vor.u32 %v2731_v37, %v2728_v19 }
 0x2a8   : > { %v1832_v23 = vadd.f32 %v1831_v43, %v1378_v22  ;;  %3000 = vmatmul.bf16.gmra.mxu1 %v2724_v28  ;;  %v2066_v43 = vrot.slane %v2064_v50, 1 }
 0x2a9   : > { %10593 = vst [vmem:[#allocation37_spill] sm:$0xff] %v9522_v21  ;;  %v1383_v32 = vpop.f32.mrf.mxu1  ;;  %v2733_v17 = vsel %vm1433_vm0, %v2723_v20, %v2732_v46  ;;  %v8639_v21 = vld [vmem:[#allocation2 + $0x3c] sm:$0xff]  }
 0x2aa   : > { %v2735_v52 = vshrl.u32 %v8639_v21, 16 }
 0x2ab   : > { %3917 = vmatmul.bf16.gmra.mxu3 %v3658_v9  ;;  %v3665_v9 = vrot.slane %v3663_v47, 1 }
 0x2ac   : > { %v9529_v16 = vpop.f32.mrf.mxu0 }
 0x2ad   : > { %v3666_v50 = vsel %vm2047_vm1, %v3661_v7, %v3665_v9  ;;  %v7368_v7 = vld [vmem:[#allocation8 + $0x1e8] sm:$0xff] }
 0x2ae   : > { %v2415_v63 = vpop.f32.mrf.mxu3  ;;  %4851 = vmatpush.bf16.msra.mxu1 %v7368_v7 }
 0x2af   : > { %v1834_v22 = vpop.f32.mrf.mxu2  ;;  %v9533_v13 = vadd.f32 %v2415_v63, %v1830_v6  ;;  %3289 = vmatmul.bf16.gmra.mxu2 %v9535_v24 }
 0x2b0   : > { %v1835_v56 = vadd.f32 %v1834_v22, %v1381_v14  ;;  %v2067_v14 = vsel %vm2047_vm1, %v2062_v12, %v2066_v43  ;;  %v9555_v12 = vld [vmem:[#allocation2 + $0x30] sm:$0xff]  }
 0x2b1   : > { %10594 = vst [vmem:[#allocation38_spill] sm:$0xff] %v9533_v13  ;;  %v1386_v40 = vpop.f32.mrf.mxu1 }
 0x2b4   : > { %v9540_v28 = vpop.f32.mrf.mxu0 }
 0x2b6   : > { %v2417_v6 = vpop.f32.mrf.mxu3 }
 0x2b7   : > { %v1836_v63 = vpop.f32.mrf.mxu2  ;;  %v9542_v13 = vadd.f32 %v2417_v6, %v1832_v23  ;;  %2329 = vmatmul.bf16.gmra.mxu0 %v2067_v14  ;;  %v2738_v23 = vshll.u32 %v8639_v21, 16  ;;  %v2072_v6 = vshll.u32 %v9547_v4, 16  ;;  %v7400_v21 = vld [vmem:[#allocation8 + $0x228] sm:$0xff] }
 0x2b8   : > { %v1837_v22 = vadd.f32 %v1836_v63, %v1383_v32  ;;  %3005 = vmatmul.bf16.gmra.mxu1 %v2733_v17  ;;  %v9551_v32 = vld [vmem:[#allocation2 + $0x38] sm:$0xff]  ;;  %v2737_v63 = vrot.slane %v2735_v52, 3  ;;  %5484 = vmatpush.bf16.msra.mxu2 %v7400_v21  ;;  %v3667_v52 = vshrl.u32 %v9531_v48, 16  ;;  %v7279_v48 = vld [vmem:[#allocation2 + $0x24] sm:$0xff] }
 0x2b9   : > { %10595 = vst [vmem:[#allocation39_spill] sm:$0xff] %v9542_v13  ;;  %v1388_v19 = vpop.f32.mrf.mxu1  ;;  %v2740_v14 = vrot.slane %v2738_v23, 4  ;;  %v7360_v17 = vld [vmem:[#allocation8 + $0x1a8] sm:$0xff]  ;;  %v3671_v38 = vshll.u32 %v9551_v32, 16 }
 0x2ba   : > { %4562 = vmatpush.bf16.msra.mxu0 %v7360_v17 }
 0x2bb   : > { %3922 = vmatmul.bf16.gmra.mxu3 %v3666_v50  ;;  %v3673_v23 = vrot.slane %v3671_v38, 1 }
 0x2bc   : > { %v9549_v37 = vpop.f32.mrf.mxu0 }
 0x2be   : > { %v2420_v47 = vpop.f32.mrf.mxu3  ;;  %4563 = vmatpush.bf16.msra.mxu0 %v7359_v53 }
 0x2bf   : > { %v1839_v20 = vpop.f32.mrf.mxu2  ;;  %v9553_v29 = vadd.f32 %v2420_v47, %v1835_v56  ;;  %3294 = vmatmul.bf16.gmra.mxu2 %v9555_v12  ;;  %v2068_v56 = vshrl.u32 %v9527_v8, 16  ;;  %v2074_v47 = vrot.slane %v2072_v6, 1  ;;  %v3669_v6 = vor.u32 %v3667_v52, %v3665_v9 }
 0x2c0   : > { %v1840_v30 = vadd.f32 %v1839_v20, %v1386_v40  ;;  %v2080_v52 = vshll.u32 %v7279_v48, 16 }
 0x2c1   : > { %10596 = vst [vmem:[#allocation40_spill] sm:$0xff] %v9553_v29  ;;  %v1391_v50 = vpop.f32.mrf.mxu1  ;;  %v2741_v29 = vor.u32 %v2740_v14, %v2737_v63  ;;  %v2070_v40 = vor.u32 %v2068_v56, %v2066_v43  ;;  %v8641_v63 = vld [vmem:[#allocation2 + $0x44] sm:$0xff]   ;;  %v3674_v43 = vsel %vm2047_vm1, %v3669_v6, %v3673_v23  ;;  %v7356_v6 = vld [vmem:[#allocation8 + $0x188] sm:$0xff] }
 0x2c2   : > { %v7358_v14 = vld [vmem:[#allocation8 + $0x198] sm:$0xff]  ;;  %v2744_v38 = vshrl.u32 %v8641_v63, 16  ;;  %v2747_v56 = vshll.u32 %v8641_v63, 16 }
 0x2c3   : > { %v2075_v21 = vsel %vm2047_vm1, %v2070_v40, %v2074_v47  ;;  %v2742_v8 = vsel %vm1433_vm0, %v2732_v46, %v2741_v29  ;;  %4564 = vmatpush.bf16.msra.mxu0 %v7358_v14  ;;  %v2076_v14 = vshrl.u32 %v9547_v4, 16 }
 0x2c4   : > { %v9561_v13 = vpop.f32.mrf.mxu0 }
 0x2c6   : > { %v2422_v20 = vpop.f32.mrf.mxu3 }
 0x2c7   : > { %v1841_v15 = vpop.f32.mrf.mxu2  ;;  %v9564_v59 = vadd.f32 %v2422_v20, %v1837_v22  ;;  %2334 = vmatmul.bf16.gmra.mxu0 %v2075_v21  ;;  %v9575_v20 = vld [vmem:[#allocation2 + $0x38] sm:$0xff]   ;;  %v2746_v21 = vrot.slane %v2744_v38, 3 }
 0x2c8   : > { %v1842_v7 = vadd.f32 %v1841_v15, %v1388_v19  ;;  %3010 = vmatmul.bf16.gmra.mxu1 %v2742_v8  ;;  %v9571_v15 = vld [vmem:[#allocation2 + $0x40] sm:$0xff]  ;;  %v2749_v8 = vrot.slane %v2747_v56, 4 }
 0x2c9   : > { %10597 = vst [vmem:[#allocation41_spill] sm:$0xff] %v9564_v59  ;;  %v1393_v17 = vpop.f32.mrf.mxu1  ;;  %v7357_v19 = vld [vmem:[#allocation8 + $0x190] sm:$0xff]  ;;  %v3679_v63 = vshll.u32 %v9571_v15, 16 }
 0x2ca   : > { %4565 = vmatpush.bf16.msra.mxu0 %v7357_v19  ;;  %v2750_v60 = vor.u32 %v2749_v8, %v2746_v21  ;;  %v8643_v21 = vld [vmem:[#allocation2 + $0x4c] sm:$0xff]  }
 0x2cb   : > { %3927 = vmatmul.bf16.gmra.mxu3 %v3674_v43  ;;  %v2082_v43 = vrot.slane %v2080_v52, 1  ;;  %v2753_v8 = vshrl.u32 %v8643_v21, 16 }
 0x2cc   : > { %v9569_v22 = vpop.f32.mrf.mxu0  ;;  %v2751_v4 = vsel %vm1433_vm0, %v2741_v29, %v2750_v60 }
 0x2cd   : > { %10598 = vst [vmem:[#allocation42_spill] sm:$0xff] %v9569_v22 }
 0x2ce   : > { %v2425_v40 = vpop.f32.mrf.mxu3  ;;  %4566 = vmatpush.bf16.msra.mxu0 %v7356_v6 }
 0x2cf   : > { %v1844_v46 = vpop.f32.mrf.mxu2  ;;  %v9573_v9 = vadd.f32 %v2425_v40, %v1840_v30  ;;  %3299 = vmatmul.bf16.gmra.mxu2 %v9575_v20  ;;  %v2078_v30 = vor.u32 %v2076_v14, %v2074_v47  ;;  %v9590_v14 = vld [vmem:[#allocation2 + $0x48] sm:$0xff] }
 0x2d0   : > { %v1845_v53 = vadd.f32 %v1844_v46, %v1391_v50  ;;  %v3675_v50 = vshrl.u32 %v9551_v32, 16  ;;  %v3681_v46 = vrot.slane %v3679_v63, 1  ;;  %v2756_v32 = vshll.u32 %v8643_v21, 16 }
 0x2d1   : > { %10599 = vst [vmem:[#allocation43_spill] sm:$0xff] %v9573_v9  ;;  %v1396_v59 = vpop.f32.mrf.mxu1  ;;  %v7355_v9 = vld [vmem:[#allocation8 + $0x180] sm:$0xff]  ;;  %v2083_v19 = vsel %vm2047_vm1, %v2078_v30, %v2082_v43 }
 0x2d2   : > { %v3677_v52 = vor.u32 %v3675_v50, %v3673_v23  ;;  %4567 = vmatpush.bf16.msra.mxu0 %v7355_v9  ;;  %v2755_v23 = vrot.slane %v2753_v8, 3  ;;  %v2758_v9 = vrot.slane %v2756_v32, 4  ;;  %v3687_v50 = vshll.u32 %v9590_v14, 16 }
 0x2d4   : > { %v9580_v0 = vpop.f32.mrf.mxu0  ;;  %v3682_v47 = vsel %vm2047_vm1, %v3677_v52, %v3681_v46  ;;  %v2759_v52 = vor.u32 %v2758_v9, %v2755_v23 }
 0x2d6   : > { %v2427_v40 = vpop.f32.mrf.mxu3 }
 0x2d7   : > { %v1846_v38 = vpop.f32.mrf.mxu2  ;;  %v9583_v56 = vadd.f32 %v2427_v40, %v1842_v7  ;;  %2339 = vmatmul.bf16.gmra.mxu0 %v2083_v19  ;;  %v9594_v40 = vld [vmem:[#allocation2 + $0x40] sm:$0xff]   ;;  %v9598_v19 = vld [vmem:[#allocation2 + $0x1c] sm:$0xf] }
 0x2d8   : > { %v1847_v57 = vadd.f32 %v1846_v38, %v1393_v17  ;;  %3015 = vmatmul.bf16.gmra.mxu1 %v2751_v4  ;;  %v4076_v38 = vld [vmem:[#allocation2 + $0x18] sm:$0x8]  ;;  %10602 = vst [vmem:[#allocation46_spill] sm:$0xff] %v9598_v19  ;;  %v2084_v4 = vshrl.u32 %v7279_v48, 16  ;;  %v2760_v48 = vsel %vm1433_vm0, %v2750_v60, %v2759_v52 }
 0x2d9   : > { %10600 = vst [vmem:[#allocation44_spill] sm:$0xff] %v9583_v56  ;;  %v1398_v63 = vpop.f32.mrf.mxu1  ;;  %v4190_v56 = vunpack.c.l.b16 %v4076_v38 }
 0x2db   : > { %3932 = vmatmul.bf16.gmra.mxu3 %v3682_v47  ;;  %v2086_v47 = vor.u32 %v2084_v4, %v2082_v43  ;;  %v8645_v43 = vld [vmem:[#allocation2 + $0x54] sm:$0xff]  }
 0x2dc   : > { %v9588_v6 = vpop.f32.mrf.mxu0 }
 0x2dd   : > { %v2091_v58 = vsel %vm2047_vm1, %v2086_v47, %v9256_v61 }
 0x2de   : > { %v2430_v7 = vpop.f32.mrf.mxu3 }
 0x2df   : > { %v1849_v30 = vpop.f32.mrf.mxu2  ;;  %v9592_v17 = vadd.f32 %v2430_v7, %v1845_v53  ;;  %3304 = vmatmul.bf16.gmra.mxu2 %v9594_v40  ;;  %v10555_v53 = vunpack.c.l.b16 %v9598_v19 }
 0x2e0   : > { %v1850_v29 = vadd.f32 %v1849_v30, %v1396_v59  ;;  %v3683_v59 = vshrl.u32 %v9571_v15, 16  ;;  %v3689_v30 = vrot.slane %v3687_v50, 1  ;;  %v2762_v15 = vshrl.u32 %v8645_v43, 16 }
 0x2e1   : > { %10601 = vst [vmem:[#allocation45_spill] sm:$0xff] %v9592_v17  ;;  %v4239_v9 = vpack.c.b16 %v10555_v53, %v4190_v56  ;;  %v2765_v50 = vshll.u32 %v8645_v43, 16 }
 0x2e2   : > { %v3685_v23 = vor.u32 %v3683_v59, %v3681_v46  ;;  %v9618_v46 = vld [vmem:[#allocation2 + $0x48] sm:$0xff]   ;;  %v2764_v56 = vrot.slane %v2762_v15, 3  ;;  %v7399_v59 = vld [vmem:[#allocation8 + $0x220] sm:$0xff] }
 0x2e3   : > { %v4268_v4 = vshll.u32 %v4239_v9, 16  ;;  %v2767_v47 = vrot.slane %v2765_v50, 4  ;;  %5485 = vmatpush.bf16.msra.mxu2 %v7399_v59  ;;  %v3691_v50 = vshrl.u32 %v9590_v14, 16  ;;  %v4285_v14 = vshll.u32 %v9535_v24, 16 }
 0x2e4   : > { %v9600_v21 = vpop.f32.mrf.mxu0  ;;  %v3690_v38 = vsel %vm2047_vm1, %v3685_v23, %v3689_v30 }
 0x2e5   : > { %v1401_v7 = vpop.f32.mrf.mxu1 }
 0x2e6   : > { %v2432_v17 = vpop.f32.mrf.mxu3 }
 0x2e7   : > { %v1851_v8 = vpop.f32.mrf.mxu2  ;;  %v9604_v32 = vadd.f32 %v2432_v17, %v1847_v57  ;;  %2344 = vmatmul.bf16.gmra.mxu0 %v2091_v58  ;;  %v4265_v17 = vshrl.u32 %v4239_v9, 16  ;;  %v9614_v58 = vld [vmem:[#allocation2 + $0x50] sm:$0xff]  ;;  %5486 = vmatpush.bf16.msra.mxu2 %v7398_v31 }
 0x2e8   : > { %v1852_v33 = vadd.f32 %v1851_v8, %v1398_v63  ;;  %3020 = vmatmul.bf16.gmra.mxu1 %v2760_v48  ;;  %v4270_v48 = vrot.slane %v4268_v4, 4  ;;  %v3695_v23 = vshll.u32 %v9614_v58, 16  ;;  %v7367_v9 = vld [vmem:[#allocation8 + $0x1e0] sm:$0xff] }
 0x2e9   : > { %10603 = vst [vmem:[#allocation47_spill] sm:$0xff] %v9604_v32  ;;  %v4267_v8 = vrot.slane %v4265_v17, 3  ;;  %v2768_v32 = vor.u32 %v2767_v47, %v2764_v56  ;;  %4852 = vmatpush.bf16.msra.mxu1 %v7367_v9  ;;  %v3693_v56 = vor.u32 %v3691_v50, %v3689_v30  ;;  %v8647_v47 = vld [vmem:[#allocation2 + $0x5c] sm:$0xff]   ;;  %v9641_v50 = vld [vmem:[#allocation2 + $0x50] sm:$0xff]  }
 0x2ea   : > { %v3697_v17 = vrot.slane %v3695_v23, 1  ;;  %v2774_v9 = vshll.u32 %v8647_v47, 16 }
 0x2eb   : > { %3937 = vmatmul.bf16.gmra.mxu3 %v3690_v38  ;;  %v7410_v38 = vld [vmem:[#allocation9 + $0x38] sm:$0xff] }
 0x2ec   : > { %v9612_v57 = vpop.f32.mrf.mxu0  ;;  %5952 = vmatpush.bf16.msra.mxu3 %v7410_v38 }
 0x2ed   : > { %v1403_v61 = vpop.f32.mrf.mxu1  ;;  %4853 = vmatpush.bf16.msra.mxu1 %v7366_v36 }
 0x2ee   : > { %v2435_v63 = vpop.f32.mrf.mxu3 }
 0x2ef   : > { %v9616_v60 = vadd.f32 %v2435_v63, %v1850_v29  ;;  %3309 = vmatmul.bf16.gmra.mxu2 %v9618_v46  ;;  %v4271_v29 = vor.u32 %v4270_v48, %v4267_v8  ;;  %v3698_v8 = vsel %vm2047_vm1, %v3693_v56, %v3697_v17 }
 0x2f0   : > { %5953 = vmatpush.bf16.msra.mxu3 %v7409_v10  ;;  %v1742_v10 = vadd.f32 %v9588_v6, %v9496_v62  ;;  %v9723_v6 = vld [vmem:[#allocation2 + $0x70] sm:$0xff] }
 0x2f1   : > { %10604 = vst [vmem:[#allocation48_spill] sm:$0xff] %v9616_v60  ;;  %v4280_v59 = vsel %vm1433_vm0, %v4271_v29, %v9483_v34 }
 0x2f2   : > { %v1854_v43 = vpop.f32.mrf.mxu2 }
 0x2f3   : > { %v1855_v53 = vadd.f32 %v1854_v43, %v1401_v7  ;;  %v2769_v7 = vsel %vm1433_vm0, %v2759_v52, %v2768_v32  ;;  %v4282_v43 = vshrl.u32 %v9535_v24, 16  ;;  %v7332_v52 = vld [vmem:[#allocation2 + $0x58] sm:$0xff] }
 0x2f4   : > { %v9622_v19 = vpop.f32.mrf.mxu0  ;;  %v3703_v24 = vshll.u32 %v7332_v52, 16  ;;  %v3707_v45 = vshrl.u32 %v7332_v52, 16 }
 0x2f5   : > { %v9624_v63 = vpop.f32.mrf.mxu1 }
 0x2f6   : > { %v2437_v15 = vpop.f32.mrf.mxu3 }
 0x2f7   : > { %v9627_v4 = vadd.f32 %v2437_v15, %v1852_v33  ;;  %4568 = vmatmul.bf16.vlgmr.msra.gmra.mxu0 %v4280_v59  ;;  %v2771_v33 = vshrl.u32 %v8647_v47, 16  ;;  %v4284_v59 = vrot.slane %v4282_v43, 3 }
 0x2f8   : > { %3025 = vmatmul.bf16.gmra.mxu1 %v2769_v7  ;;  %v4287_v7 = vrot.slane %v4285_v14, 4 }
 0x2f9   : > { %10605 = vst [vmem:[#allocation49_spill] sm:$0xff] %v9627_v4  ;;  %v2773_v56 = vrot.slane %v2771_v33, 3 }
 0x2fa   : > { %v1856_v48 = vpop.f32.mrf.mxu2  ;;  %v4288_v47 = vor.u32 %v4287_v7, %v4284_v59 }
 0x2fb   : > { %3942 = vmatmul.bf16.gmra.mxu3 %v3698_v8  ;;  %v1857_v23 = vadd.f32 %v1856_v48, %v1403_v61  ;;  %v2776_v8 = vrot.slane %v2774_v9, 4  ;;  %v8649_v9 = vld [vmem:[#allocation2 + $0x64] sm:$0xff]  }
 0x2fc   : > { %v9635_v38 = vpop.f32.mrf.mxu0  ;;  %v4289_v43 = vsel %vm1433_vm0, %v9483_v34, %v4288_v47 }
 0x2fd   : > { %v9637_v29 = vpop.f32.mrf.mxu1  ;;  %v2777_v48 = vor.u32 %v2776_v8, %v2773_v56  ;;  %v4291_v56 = vshrl.u32 %v9555_v12, 16 }
 0x2fe   : > { %v2440_v15 = vpop.f32.mrf.mxu3 }
 0x2ff   : > { %v9639_v30 = vadd.f32 %v2440_v15, %v1855_v53  ;;  %3314 = vmatmul.bf16.gmra.mxu2 %v9641_v50  ;;  %v3699_v53 = vshrl.u32 %v9614_v58, 16  ;;  %v3705_v15 = vrot.slane %v3703_v24, 1  ;;  %v2778_v14 = vsel %vm1433_vm0, %v2768_v32, %v2777_v48  ;;  %v7333_v32 = vld [vmem:[#allocation2 + $0x60] sm:$0xff] }
 0x300   : > { %v4294_v58 = vshll.u32 %v9555_v12, 16 }
 0x301   : > { %10606 = vst [vmem:[#allocation50_spill] sm:$0xff] %v9639_v30  ;;  %v3701_v33 = vor.u32 %v3699_v53, %v3697_v17  ;;  %v9667_v17 = vld [vmem:[#allocation2 + $0x58] sm:$0xff]   ;;  %v4293_v53 = vrot.slane %v4291_v56, 3 }
 0x302   : > { %v9644_v61 = vpop.f32.mrf.mxu2 }
 0x303   : > { %v3706_v59 = vsel %vm2047_vm1, %v3701_v33, %v3705_v15 }
 0x304   : > { %v9646_v4 = vpop.f32.mrf.mxu0 }
 0x305   : > { %v9648_v60 = vpop.f32.mrf.mxu1 }
 0x306   : > { %v2442_v42 = vpop.f32.mrf.mxu3 }
 0x307   : > { %v9651_v30 = vadd.f32 %v2442_v42, %v1857_v23  ;;  %4573 = vmatmul.bf16.gmra.mxu0 %v4289_v43  ;;  %v2780_v42 = vshrl.u32 %v8649_v9, 16  ;;  %v2783_v23 = vshll.u32 %v8649_v9, 16  ;;  %v4296_v43 = vrot.slane %v4294_v58, 4 }
 0x308   : > { %3030 = vmatmul.bf16.gmra.mxu1 %v2778_v14 }
 0x309   : > { %10607 = vst [vmem:[#allocation51_spill] sm:$0xff] %v9651_v30  ;;  %v2782_v14 = vrot.slane %v2780_v42, 3  ;;  %v2785_v33 = vrot.slane %v2783_v23, 4  ;;  %v4297_v12 = vor.u32 %v4296_v43, %v4293_v53  ;;  %v3709_v42 = vor.u32 %v3707_v45, %v3705_v15  ;;  %v8651_v23 = vld [vmem:[#allocation2 + $0x6c] sm:$0xff]  }
 0x30a   : > { %v9657_v7 = vpop.f32.mrf.mxu2  ;;  %v4300_v43 = vshrl.u32 %v9575_v20, 16  ;;  %v2792_v52 = vshll.u32 %v8651_v23, 16  ;;  %v9691_v45 = vld [vmem:[#allocation2 + $0x68] sm:$0xff] }
 0x30b   : > { %3947 = vmatmul.bf16.gmra.mxu3 %v3706_v59  ;;  %v3711_v59 = vshll.u32 %v7333_v32, 16  ;;  %v2786_v9 = vor.u32 %v2785_v33, %v2782_v14  ;;  %v4298_v56 = vsel %vm1433_vm0, %v4288_v47, %v4297_v12  ;;  %v4303_v14 = vshll.u32 %v9575_v20, 16 }
 0x30c   : > { %v9661_v8 = vpop.f32.mrf.mxu0  ;;  %v2789_v33 = vshrl.u32 %v8651_v23, 16  ;;  %v4302_v15 = vrot.slane %v4300_v43, 3  ;;  %v1740_v20 = vadd.f32 %v9580_v0, %v9486_v35  ;;  %v3719_v23 = vshll.u32 %v9691_v45, 16 }
 0x30d   : > { %v9663_v34 = vpop.f32.mrf.mxu1  ;;  %v3713_v18 = vrot.slane %v3711_v59, 1  ;;  %v2787_v58 = vsel %vm1433_vm0, %v2777_v48, %v2786_v9  ;;  %v9693_v48 = vld [vmem:[#allocation2 + $0x60] sm:$0xff]  }
 0x30e   : > { %v9665_v24 = vpop.f32.mrf.mxu3  ;;  %v3721_v22 = vrot.slane %v3719_v23, 1 }
 0x30f   : > { %3319 = vmatmul.bf16.gmra.mxu2 %v9667_v17  ;;  %v3714_v51 = vsel %vm2047_vm1, %v3709_v42, %v3713_v18  ;;  %v2794_v42 = vrot.slane %v2792_v52, 4  ;;  %v3715_v52 = vshrl.u32 %v7333_v32, 16  ;;  %v4309_v32 = vshrl.u32 %v9594_v40, 16 }
 0x312   : > { %v9670_v30 = vpop.f32.mrf.mxu2 }
 0x314   : > { %v9672_v1 = vpop.f32.mrf.mxu0 }
 0x315   : > { %v9674_v39 = vpop.f32.mrf.mxu1 }
 0x316   : > { %v9676_v11 = vpop.f32.mrf.mxu3 }
 0x317   : > { %4578 = vmatmul.bf16.gmra.mxu0 %v4298_v56 }
 0x318   : > { %3035 = vmatmul.bf16.gmra.mxu1 %v2787_v58  ;;  %v4305_v58 = vrot.slane %v4303_v14, 4 }
 0x31a   : > { %v9681_v53 = vpop.f32.mrf.mxu2  ;;  %v4306_v54 = vor.u32 %v4305_v58, %v4302_v15  ;;  %v3717_v15 = vor.u32 %v3715_v52, %v3713_v18  ;;  %v8653_v58 = vld [vmem:[#allocation2 + $0x74] sm:$0xff]  }
 0x31b   : > { %3952 = vmatmul.bf16.gmra.mxu3 %v3714_v51  ;;  %v2791_v51 = vrot.slane %v2789_v33, 3 }
 0x31c   : > { %v9685_v59 = vpop.f32.mrf.mxu0  ;;  %v4307_v35 = vsel %vm1433_vm0, %v4297_v12, %v4306_v54  ;;  %v3722_v36 = vsel %vm2047_vm1, %v3717_v15, %v3721_v22  ;;  %v2798_v12 = vshrl.u32 %v8653_v58, 16 }
 0x31d   : > { %10608 = vst [vmem:[#allocation52_spill] sm:$0xff] %v9685_v59  ;;  %v9687_v47 = vpop.f32.mrf.mxu1  ;;  %v2795_v49 = vor.u32 %v2794_v42, %v2791_v51  ;;  %v2801_v42 = vshll.u32 %v8653_v58, 16 }
 0x31e   : > { %v9689_v56 = vpop.f32.mrf.mxu3 }
 0x31f   : > { %3324 = vmatmul.bf16.gmra.mxu2 %v9693_v48  ;;  %v2796_v0 = vsel %vm1433_vm0, %v2786_v9, %v2795_v49 }
 0x322   : > { %v9699_v25 = vpop.f32.mrf.mxu2 }
 0x324   : > { %v2325_v59 = vpop.f32.mrf.mxu0 }
 0x325   : > { %v2445_v43 = vadd.f32 %v2325_v59, %v1740_v20  ;;  %v9701_v14 = vpop.f32.mrf.mxu1 }
 0x326   : > { %v9703_v33 = vpop.f32.mrf.mxu3 }
 0x327   : > { %v3106_v31 = vadd.f32 %v9624_v63, %v2445_v43  ;;  %4583 = vmatmul.bf16.gmra.mxu0 %v4307_v35  ;;  %v4312_v63 = vshll.u32 %v9594_v40, 16  ;;  %v4311_v43 = vrot.slane %v4309_v32, 3  ;;  %v2800_v40 = vrot.slane %v2798_v12, 3 }
 0x328   : > { %3040 = vmatmul.bf16.gmra.mxu1 %v2796_v0 }
 0x329   : > { %v3395_v59 = vadd.f32 %v9644_v61, %v3106_v31  ;;  %v9725_v61 = vld [vmem:[#allocation2 + $0x68] sm:$0xff]   ;;  %v4314_v52 = vrot.slane %v4312_v63, 4  ;;  %v2803_v31 = vrot.slane %v2801_v42, 4  ;;  %v3723_v42 = vshrl.u32 %v9691_v45, 16 }
 0x32a   : > { %v9712_v51 = vpop.f32.mrf.mxu2  ;;  %v4318_v45 = vshrl.u32 %v9618_v46, 16 }
 0x32b   : > { %3957 = vmatmul.bf16.gmra.mxu3 %v3722_v36  ;;  %v9717_v18 = vadd.f32 %v9665_v24, %v3395_v59  ;;  %v3727_v24 = vshll.u32 %v9723_v6, 16  ;;  %v4315_v58 = vor.u32 %v4314_v52, %v4311_v43  ;;  %v2804_v36 = vor.u32 %v2803_v31, %v2800_v40  ;;  %v8655_v43 = vld [vmem:[#allocation2 + $0x7c] sm:$0xff]  }
 0x32c   : > { %v2327_v9 = vpop.f32.mrf.mxu0  ;;  %v4321_v40 = vshll.u32 %v9618_v46, 16  ;;  %v2810_v31 = vshll.u32 %v8655_v43, 16 }
 0x32d   : > { %v2446_v20 = vadd.f32 %v2327_v9, %v1742_v10  ;;  %v9719_v23 = vpop.f32.mrf.mxu1  ;;  %v1745_v10 = vadd.f32 %v9600_v21, %v9504_v5  ;;  %v3729_v9 = vrot.slane %v3727_v24, 1  ;;  %v2805_v5 = vsel %vm1433_vm0, %v2795_v49, %v2804_v36 }
 0x32e   : > { %v9721_v62 = vpop.f32.mrf.mxu3  ;;  %v3725_v21 = vor.u32 %v3723_v42, %v3721_v22  ;;  %v4323_v46 = vrot.slane %v4321_v40, 4 }
 0x32f   : > { %v3107_v35 = vadd.f32 %v9637_v29, %v2446_v20  ;;  %3329 = vmatmul.bf16.gmra.mxu2 %v9725_v61 }
 0x331   : > { %v3396_v0 = vadd.f32 %v9657_v7, %v3107_v35  ;;  %v4316_v7 = vsel %vm1433_vm0, %v4306_v54, %v4315_v58  ;;  %v1747_v54 = vadd.f32 %v9612_v57, %v9514_v55  ;;  %v2812_v57 = vrot.slane %v2810_v31, 4 }
 0x332   : > { %v9731_v15 = vpop.f32.mrf.mxu2 }
 0x333   : > { %v9736_v59 = vadd.f32 %v9676_v11, %v3396_v0  ;;  %v3730_v11 = vsel %vm2047_vm1, %v3725_v21, %v3729_v9  ;;  %v1750_v21 = vadd.f32 %v9622_v19, %v9519_v41 }
 0x334   : > { %v2330_v32 = vpop.f32.mrf.mxu0 }
 0x335   : > { %v2447_v29 = vadd.f32 %v2330_v32, %v1745_v10  ;;  %v9738_v63 = vpop.f32.mrf.mxu1  ;;  %v9761_v10 = vld [vmem:[#allocation2 + $0x78] sm:$0xff]  ;;  %v9763_v32 = vld [vmem:[#allocation2 + $0x70] sm:$0xff]  }
 0x336   : > { %v9740_v12 = vpop.f32.mrf.mxu3 }
 0x337   : > { %v3108_v20 = vadd.f32 %v9648_v60, %v2447_v29  ;;  %4588 = vmatmul.bf16.gmra.mxu0 %v4316_v7  ;;  %v2807_v60 = vshrl.u32 %v8655_v43, 16  ;;  %v4320_v29 = vrot.slane %v4318_v45, 3 }
 0x338   : > { %3045 = vmatmul.bf16.gmra.mxu1 %v2805_v5 }
 0x339   : > { %v3397_v52 = vadd.f32 %v9670_v30, %v3108_v20  ;;  %v2809_v55 = vrot.slane %v2807_v60, 3  ;;  %v9771_v5 = vor.u32 %v4323_v46, %v4320_v29 }
 0x33a   : > { %v9748_v35 = vpop.f32.mrf.mxu2 }
 0x33b   : > { %3962 = vmatmul.bf16.gmra.mxu3 %v3730_v11  ;;  %v9755_v49 = vadd.f32 %v9689_v56, %v3397_v52  ;;  %v3735_v56 = vshll.u32 %v9761_v10, 16  ;;  %v9775_v43 = vor.u32 %v2812_v57, %v2809_v55  ;;  %v4325_v31 = vsel %vm1433_vm0, %v4315_v58, %v9771_v5 }
 0x33c   : > { %v2332_v22 = vpop.f32.mrf.mxu0  ;;  %v4330_v58 = vshll.u32 %v9641_v50, 16 }
 0x33d   : > { %v2448_v24 = vadd.f32 %v2332_v22, %v1747_v54  ;;  %v9757_v0 = vpop.f32.mrf.mxu1  ;;  %v3731_v54 = vshrl.u32 %v9723_v6, 16  ;;  %v2814_v19 = vsel %vm1433_vm0, %v2804_v36, %v9775_v43  ;;  %v8657_v22 = vld [vmem:[#allocation2 + $0x84] sm:$0xff]  }
 0x33e   : > { %v9759_v30 = vpop.f32.mrf.mxu3  ;;  %v2816_v46 = vshrl.u32 %v8657_v22, 16 }
 0x33f   : > { %v3109_v42 = vadd.f32 %v9663_v34, %v2448_v24  ;;  %3334 = vmatmul.bf16.gmra.mxu2 %v9763_v32 }
 0x341   : > { %v3398_v7 = vadd.f32 %v9681_v53, %v3109_v42  ;;  %v3737_v53 = vrot.slane %v3735_v56, 1  ;;  %v2819_v42 = vshll.u32 %v8657_v22, 16  ;;  %v7408_v22 = vld [vmem:[#allocation9 + $0x28] sm:$0xff] }
 0x342   : > { %v9769_v20 = vpop.f32.mrf.mxu2  ;;  %5954 = vmatpush.bf16.msra.mxu3 %v7408_v22 }
 0x343   : > { %v9778_v11 = vadd.f32 %v9703_v33, %v3398_v7  ;;  %v3733_v33 = vor.u32 %v3731_v54, %v3729_v9 }
 0x344   : > { %v2335_v34 = vpop.f32.mrf.mxu0 }
 0x345   : > { %v2449_v52 = vadd.f32 %v2335_v34, %v1750_v21  ;;  %v3011_v45 = vpop.f32.mrf.mxu1  ;;  %v3738_v24 = vsel %vm2047_vm1, %v3733_v33, %v3737_v53  ;;  %v9805_v21 = vld [vmem:[#allocation2 + $0x78] sm:$0xff]   ;;  %v4332_v34 = vrot.slane %v4330_v58, 4 }
 0x346   : > { %v9780_v40 = vpop.f32.mrf.mxu3  ;;  %v3116_v60 = vadd.f32 %v3011_v45, %v9310_v2  ;;  %v4327_v2 = vshrl.u32 %v9641_v50, 16 }
 0x347   : > { %v3110_v41 = vadd.f32 %v9674_v39, %v2449_v52  ;;  %4593 = vmatmul.bf16.gmra.mxu0 %v4325_v31  ;;  %v1752_v39 = vadd.f32 %v9635_v38, %v9529_v16  ;;  %v2818_v38 = vrot.slane %v2816_v46, 3  ;;  %v7397_v52 = vld [vmem:[#allocation8 + $0x210] sm:$0xff] }
 0x348   : > { %3050 = vmatmul.bf16.gmra.mxu1 %v2814_v19  ;;  %v4329_v50 = vrot.slane %v4327_v2, 3  ;;  %5487 = vmatpush.bf16.msra.mxu2 %v7397_v52 }
 0x349   : > { %v3399_v29 = vadd.f32 %v9699_v25, %v3110_v41  ;;  %v9802_v25 = vld [vmem:[#allocation2 + $0x80] sm:$0xff] }
 0x34a   : > { %v9791_v6 = vpop.f32.mrf.mxu2  ;;  %v3743_v45 = vshll.u32 %v9802_v25, 16  ;;  %v9811_v41 = vor.u32 %v4332_v34, %v4329_v50 }
 0x34b   : > { %3967 = vmatmul.bf16.gmra.mxu3 %v3738_v24  ;;  %v9798_v36 = vadd.f32 %v9721_v62, %v3399_v29  ;;  %v2821_v62 = vrot.slane %v2819_v42, 4 }
 0x34c   : > { %v2337_v9 = vpop.f32.mrf.mxu0  ;;  %v3745_v46 = vrot.slane %v3743_v45, 1 }
 0x34d   : > { %v2450_v55 = vadd.f32 %v2337_v9, %v1752_v39  ;;  %v3013_v57 = vpop.f32.mrf.mxu1  ;;  %v9815_v33 = vor.u32 %v2821_v62, %v2818_v38 }
 0x34e   : > { %v9800_v56 = vpop.f32.mrf.mxu3  ;;  %v3117_v7 = vadd.f32 %v3013_v57, %v9315_v26  ;;  %v1755_v26 = vadd.f32 %v9646_v4, %v9540_v28  ;;  %v4334_v4 = vsel %vm1433_vm0, %v9771_v5, %v9811_v41  ;;  %v4339_v5 = vshll.u32 %v9667_v17, 16 }
 0x34f   : > { %v3111_v16 = vadd.f32 %v9687_v47, %v2450_v55  ;;  %3339 = vmatmul.bf16.gmra.mxu2 %v9805_v21  ;;  %v7365_v47 = vld [vmem:[#allocation8 + $0x1d0] sm:$0xff]  ;;  %v2823_v42 = vsel %vm1433_vm0, %v9775_v43, %v9815_v33 }
 0x350   : > { %4854 = vmatpush.bf16.msra.mxu1 %v7365_v47 }
 0x351   : > { %v3400_v54 = vadd.f32 %v9712_v51, %v3111_v16  ;;  %v3739_v51 = vshrl.u32 %v9761_v10, 16 }
 0x352   : > { %v3300_v31 = vpop.f32.mrf.mxu2 }
 0x353   : > { %v3405_v19 = vadd.f32 %v3300_v31, %v3116_v60  ;;  %v9818_v24 = vadd.f32 %v9740_v12, %v3400_v54  ;;  %v8659_v60 = vld [vmem:[#allocation2 + $0x8c] sm:$0xff]   ;;  %v3741_v9 = vor.u32 %v3739_v51, %v3737_v53 }
 0x354   : > { %v2340_v29 = vpop.f32.mrf.mxu0  ;;  %v2825_v50 = vshrl.u32 %v8659_v60, 16  ;;  %v2828_v16 = vshll.u32 %v8659_v60, 16 }
 0x355   : > { %v2451_v2 = vadd.f32 %v2340_v29, %v1755_v26  ;;  %v3016_v58 = vpop.f32.mrf.mxu1  ;;  %v3746_v10 = vsel %vm2047_vm1, %v3741_v9, %v3745_v46  ;;  %v4341_v26 = vrot.slane %v4339_v5, 4  ;;  %v10609_v5 = vld [vmem:[#allocation42_spill] sm:$0xff] }
 0x356   : > { %v9820_v39 = vpop.f32.mrf.mxu3  ;;  %v3118_v28 = vadd.f32 %v3016_v58, %v9319_v44  ;;  %v4336_v44 = vshrl.u32 %v9667_v17, 16  ;;  %v9845_v17 = vld [vmem:[#allocation2 + $0x80] sm:$0xff]  }
 0x357   : > { %v3112_v12 = vadd.f32 %v9701_v14, %v2451_v2  ;;  %4598 = vmatmul.bf16.gmra.mxu0 %v4334_v4  ;;  %v1757_v14 = vadd.f32 %v9661_v8, %v9549_v37  ;;  %v2827_v8 = vrot.slane %v2825_v50, 3  ;;  %v10610_v50 = vld [vmem:[#allocation52_spill] sm:$0xff] }
 0x358   : > { %3055 = vmatmul.bf16.gmra.mxu1 %v2823_v42  ;;  %v4338_v31 = vrot.slane %v4336_v44, 3  ;;  %v4348_v44 = vshll.u32 %v9693_v48, 16 }
 0x359   : > { %v3401_v55 = vadd.f32 %v9731_v15, %v3112_v12  ;;  %v9840_v15 = vld [vmem:[#allocation2 + $0x88] sm:$0xff]  ;;  %v3747_v12 = vshrl.u32 %v9802_v25, 16 }
 0x35a   : > { %v3302_v57 = vpop.f32.mrf.mxu2  ;;  %v4342_v29 = vor.u32 %v4341_v26, %v4338_v31 }
 0x35b   : > { %3972 = vmatmul.bf16.gmra.mxu3 %v3746_v10  ;;  %v3406_v34 = vadd.f32 %v3302_v57, %v3117_v7  ;;  %v9838_v43 = vadd.f32 %v9759_v30, %v3401_v55  ;;  %v2830_v30 = vrot.slane %v2828_v16, 4  ;;  %v3751_v7 = vshll.u32 %v9840_v15, 16 }
 0x35c   : > { %v2342_v53 = vpop.f32.mrf.mxu0  ;;  %v4343_v10 = vsel %vm1433_vm0, %v9811_v41, %v4342_v29 }
 0x35d   : > { %v2452_v38 = vadd.f32 %v2342_v53, %v1757_v14  ;;  %v3018_v62 = vpop.f32.mrf.mxu1  ;;  %v2831_v2 = vor.u32 %v2830_v30, %v2827_v8  ;;  %v3753_v42 = vrot.slane %v3751_v7, 1 }
 0x35e   : > { %v3933_v52 = vpop.f32.mrf.mxu3  ;;  %v3119_v45 = vadd.f32 %v3018_v62, %v9324_v3  ;;  %v1760_v3 = vadd.f32 %v9672_v1, %v9561_v13  ;;  %v8661_v1 = vld [vmem:[#allocation2 + $0x94] sm:$0xff]  }
 0x35f   : > { %v9843_v54 = vadd.f32 %v3933_v52, %v3405_v19  ;;  %v3113_v37 = vadd.f32 %v9719_v23, %v2452_v38  ;;  %3344 = vmatmul.bf16.gmra.mxu2 %v9845_v17  ;;  %v2834_v41 = vshrl.u32 %v8661_v1, 16  ;;  %v10611_v62 = vld [vmem:[#allocation17_spill] sm:$0xff] }
 0x361   : > { %v3402_v47 = vadd.f32 %v9748_v35, %v3113_v37  ;;  %v4350_v37 = vrot.slane %v4348_v44, 4 }
 0x362   : > { %v3305_v22 = vpop.f32.mrf.mxu2 }
 0x363   : > { %v3407_v19 = vadd.f32 %v3305_v22, %v3118_v28  ;;  %v9854_v58 = vadd.f32 %v9780_v40, %v3402_v47  ;;  %v2832_v40 = vsel %vm1433_vm0, %v9815_v33, %v2831_v2  ;;  %v3749_v28 = vor.u32 %v3747_v12, %v3745_v46 }
 0x364   : > { %v2345_v51 = vpop.f32.mrf.mxu0  ;;  %v3755_v12 = vshrl.u32 %v9840_v15, 16  ;;  %v4357_v15 = vshll.u32 %v9725_v61, 16 }
 0x365   : > { %v2453_v23 = vadd.f32 %v2345_v51, %v1760_v3  ;;  %v3021_v4 = vpop.f32.mrf.mxu1  ;;  %v3754_v55 = vsel %vm2047_vm1, %v3749_v28, %v3753_v42  ;;  %v8663_v28 = vld [vmem:[#allocation2 + $0x9c] sm:$0xff]  }
 0x366   : > { %v3935_v60 = vpop.f32.mrf.mxu3  ;;  %v3120_v9 = vadd.f32 %v3021_v4, %v9331_v27  ;;  %v4345_v27 = vshrl.u32 %v9693_v48, 16  ;;  %v9879_v48 = vld [vmem:[#allocation2 + $0x88] sm:$0xff]   ;;  %v2846_v44 = vshll.u32 %v8663_v28, 16 }
 0x367   : > { %v9858_v35 = vadd.f32 %v3935_v60, %v3406_v34  ;;  %v3114_v13 = vadd.f32 %v9738_v63, %v2453_v23  ;;  %4603 = vmatmul.bf16.gmra.mxu0 %v4343_v10  ;;  %v1762_v63 = vadd.f32 %v10610_v50, %v10609_v5  ;;  %v2837_v34 = vshll.u32 %v8661_v1, 16  ;;  %v10612_v1 = vld [vmem:[#allocation18_spill] sm:$0xff]  ;;  %v10613_v50 = vld [vmem:[#allocation19_spill] sm:$0xff] }
 0x368   : > { %3060 = vmatmul.bf16.gmra.mxu1 %v2832_v40  ;;  %v4347_v26 = vrot.slane %v4345_v27, 3  ;;  %v2843_v27 = vshrl.u32 %v8663_v28, 16  ;;  %v4366_v28 = vshll.u32 %v9763_v32, 16 }
 0x369   : > { %v3403_v25 = vadd.f32 %v9769_v20, %v3114_v13  ;;  %v9874_v20 = vld [vmem:[#allocation2 + $0x90] sm:$0xff]  ;;  %v2839_v8 = vrot.slane %v2837_v34, 4 }
 0x36a   : > { %v3307_v57 = vpop.f32.mrf.mxu2  ;;  %v3759_v30 = vshll.u32 %v9874_v20, 16  ;;  %v4351_v22 = vor.u32 %v4350_v37, %v4347_v26  ;;  %v9908_v34 = vld [vmem:[#allocation2 + $0x90] sm:$0xff]  }
 0x36b   : > { %3977 = vmatmul.bf16.gmra.mxu3 %v3754_v55  ;;  %v3408_v14 = vadd.f32 %v3307_v57, %v3119_v45  ;;  %v9872_v33 = vadd.f32 %v9800_v56, %v3403_v25  ;;  %v2836_v56 = vrot.slane %v2834_v41, 3  ;;  %v4354_v25 = vshrl.u32 %v9725_v61, 16 }
 0x36c   : > { %v2347_v46 = vpop.f32.mrf.mxu0  ;;  %v3761_v10 = vrot.slane %v3759_v30, 1  ;;  %v2845_v61 = vrot.slane %v2843_v27, 3  ;;  %v10615_v27 = vld [vmem:[#allocation21_spill] sm:$0xff] }
 0x36d   : > { %v2454_v16 = vadd.f32 %v2347_v46, %v1762_v63  ;;  %v3023_v53 = vpop.f32.mrf.mxu1  ;;  %v2840_v51 = vor.u32 %v2839_v8, %v2836_v56  ;;  %v4356_v46 = vrot.slane %v4354_v25, 3  ;;  %v7407_v56 = vld [vmem:[#allocation9 + $0x20] sm:$0xff] }
 0x36e   : > { %v3938_v38 = vpop.f32.mrf.mxu3  ;;  %v3121_v52 = vadd.f32 %v3023_v53, %v10611_v62  ;;  %v2848_v53 = vrot.slane %v2846_v44, 4  ;;  %5955 = vmatpush.bf16.msra.mxu3 %v7407_v56 }
 0x36f   : > { %v9877_v31 = vadd.f32 %v3938_v38, %v3407_v19  ;;  %v3115_v45 = vadd.f32 %v9757_v0, %v2454_v16  ;;  %3349 = vmatmul.bf16.gmra.mxu2 %v9879_v48  ;;  %v4359_v16 = vrot.slane %v4357_v15, 4  ;;  %v7396_v38 = vld [vmem:[#allocation8 + $0x208] sm:$0xff] }
 0x370   : > { %5488 = vmatpush.bf16.msra.mxu2 %v7396_v38  ;;  %v2849_v37 = vor.u32 %v2848_v53, %v2845_v61 }
 0x371   : > { %v3404_v7 = vadd.f32 %v9791_v6, %v3115_v45  ;;  %v4352_v6 = vsel %vm1433_vm0, %v4342_v29, %v4351_v22  ;;  %v7364_v45 = vld [vmem:[#allocation8 + $0x1c8] sm:$0xff] }
 0x372   : > { %v3310_v47 = vpop.f32.mrf.mxu2  ;;  %4855 = vmatpush.bf16.msra.mxu1 %v7364_v45 }
 0x373   : > { %v3409_v3 = vadd.f32 %v3310_v47, %v3120_v9  ;;  %v9886_v19 = vadd.f32 %v9820_v39, %v3404_v7  ;;  %v2841_v9 = vsel %vm1433_vm0, %v2831_v2, %v2840_v51  ;;  %v3757_v39 = vor.u32 %v3755_v12, %v3753_v42  ;;  %v9903_v42 = vld [vmem:[#allocation2 + $0x98] sm:$0xff] }
 0x374   : > { %v4569_v23 = vpop.f32.mrf.mxu0  ;;  %v3771_v45 = vshrl.u32 %v9903_v42, 16 }
 0x375   : > { %v9889_v4 = vadd.f32 %v4569_v23, %v9717_v18  ;;  %v3026_v0 = vpop.f32.mrf.mxu1  ;;  %v3762_v18 = vsel %vm2047_vm1, %v3757_v39, %v3761_v10 }
 0x376   : > { %v3940_v60 = vpop.f32.mrf.mxu3  ;;  %v3122_v13 = vadd.f32 %v3026_v0, %v10612_v1  ;;  %v10614_v0 = vld [vmem:[#allocation20_spill] sm:$0xff] }
 0x377   : > { %v9893_v40 = vadd.f32 %v3940_v60, %v3408_v14  ;;  %4608 = vmatmul.bf16.gmra.mxu0 %v4352_v6 }
 0x378   : > { %3065 = vmatmul.bf16.gmra.mxu1 %v2841_v9  ;;  %v8665_v9 = vld [vmem:[#allocation2 + $0xa4] sm:$0xff]  }
 0x379   : > { %v2855_v25 = vshll.u32 %v8665_v9, 16 }
 0x37a   : > { %v3312_v55 = vpop.f32.mrf.mxu2 }
 0x37b   : > { %3982 = vmatmul.bf16.gmra.mxu3 %v3762_v18  ;;  %v3410_v57 = vadd.f32 %v3312_v55, %v3121_v52  ;;  %v4360_v52 = vor.u32 %v4359_v16, %v4356_v46  ;;  %v2852_v55 = vshrl.u32 %v8665_v9, 16 }
 0x37c   : > { %v4571_v41 = vpop.f32.mrf.mxu0 }
 0x37d   : > { %v9901_v29 = vadd.f32 %v4571_v41, %v9736_v59  ;;  %v3028_v5 = vpop.f32.mrf.mxu1  ;;  %v3767_v59 = vshll.u32 %v9903_v42, 16  ;;  %v4361_v1 = vsel %vm1433_vm0, %v4351_v22, %v4360_v52  ;;  %v4375_v42 = vshll.u32 %v9805_v21, 16 }
 0x37e   : > { %v3943_v2 = vpop.f32.mrf.mxu3  ;;  %v3123_v63 = vadd.f32 %v3028_v5, %v10613_v50  ;;  %v9932_v5 = vld [vmem:[#allocation2 + $0x98] sm:$0xff]   ;;  %v4368_v50 = vrot.slane %v4366_v28, 4 }
 0x37f   : > { %v9906_v14 = vadd.f32 %v3943_v2, %v3409_v3  ;;  %3354 = vmatmul.bf16.gmra.mxu2 %v9908_v34  ;;  %v3763_v3 = vshrl.u32 %v9874_v20, 16  ;;  %v3769_v23 = vrot.slane %v3767_v59, 1  ;;  %v4363_v20 = vshrl.u32 %v9763_v32, 16 }
 0x380   : > { %v2854_v32 = vrot.slane %v2852_v55, 3 }
 0x381   : > { %v3765_v6 = vor.u32 %v3763_v3, %v3761_v10  ;;  %v9927_v10 = vld [vmem:[#allocation2 + $0xa0] sm:$0xff]  ;;  %v4365_v2 = vrot.slane %v4363_v20, 3 }
 0x382   : > { %v3315_v62 = vpop.f32.mrf.mxu2  ;;  %v3775_v46 = vshll.u32 %v9927_v10, 16 }
 0x383   : > { %v3411_v26 = vadd.f32 %v3315_v62, %v3122_v13  ;;  %v2850_v13 = vsel %vm1433_vm0, %v2840_v51, %v2849_v37  ;;  %v4369_v16 = vor.u32 %v4368_v50, %v4365_v2 }
 0x384   : > { %v4574_v8 = vpop.f32.mrf.mxu0  ;;  %v3777_v56 = vrot.slane %v3775_v46, 1 }
 0x385   : > { %v9913_v30 = vadd.f32 %v4574_v8, %v9755_v49  ;;  %v3031_v7 = vpop.f32.mrf.mxu1  ;;  %v3770_v49 = vsel %vm2047_vm1, %v3765_v6, %v3769_v23  ;;  %v10616_v8 = vld [vmem:[#allocation22_spill] sm:$0xff]  ;;  %v4370_v3 = vsel %vm1433_vm0, %v4360_v52, %v4369_v16  ;;  %v4372_v6 = vshrl.u32 %v9805_v21, 16 }
 0x386   : > { %v3945_v47 = vpop.f32.mrf.mxu3  ;;  %v3124_v60 = vadd.f32 %v3031_v7, %v10614_v0 }
 0x387   : > { %v9917_v12 = vadd.f32 %v3945_v47, %v3410_v57  ;;  %4613 = vmatmul.bf16.gmra.mxu0 %v4361_v1  ;;  %v8667_v1 = vld [vmem:[#allocation2 + $0xac] sm:$0xff]  }
 0x388   : > { %3070 = vmatmul.bf16.gmra.mxu1 %v2850_v13 }
 0x38a   : > { %v3317_v39 = vpop.f32.mrf.mxu2 }
 0x38b   : > { %3987 = vmatmul.bf16.gmra.mxu3 %v3770_v49  ;;  %v3412_v18 = vadd.f32 %v3317_v39, %v3123_v63  ;;  %v2857_v63 = vrot.slane %v2855_v25, 4  ;;  %v2861_v49 = vshrl.u32 %v8667_v1, 16  ;;  %v2864_v39 = vshll.u32 %v8667_v1, 16 }
 0x38c   : > { %v4576_v15 = vpop.f32.mrf.mxu0 }
 0x38d   : > { %v9925_v22 = vadd.f32 %v4576_v15, %v9778_v11  ;;  %v3033_v57 = vpop.f32.mrf.mxu1  ;;  %v2858_v53 = vor.u32 %v2857_v63, %v2854_v32  ;;  %v9956_v15 = vld [vmem:[#allocation2 + $0xa0] sm:$0xff]   ;;  %v2863_v21 = vrot.slane %v2861_v49, 3 }
 0x38e   : > { %v3948_v51 = vpop.f32.mrf.mxu3  ;;  %v3125_v44 = vadd.f32 %v3033_v57, %v10615_v27  ;;  %v4374_v57 = vrot.slane %v4372_v6, 3  ;;  %v2866_v27 = vrot.slane %v2864_v39, 4  ;;  %v10619_v39 = vld [vmem:[#allocation25_spill] sm:$0xff] }
 0x38f   : > { %v9930_v41 = vadd.f32 %v3948_v51, %v3411_v26  ;;  %3359 = vmatmul.bf16.gmra.mxu2 %v9932_v5  ;;  %v2859_v0 = vsel %vm1433_vm0, %v2849_v37, %v2858_v53  ;;  %v4377_v51 = vrot.slane %v4375_v42, 4 }
 0x390   : > { %v2867_v32 = vor.u32 %v2866_v27, %v2863_v21 }
 0x391   : > { %v4378_v2 = vor.u32 %v4377_v51, %v4374_v57  ;;  %v7395_v51 = vld [vmem:[#allocation8 + $0x200] sm:$0xff] }
 0x392   : > { %v3320_v11 = vpop.f32.mrf.mxu2  ;;  %5489 = vmatpush.bf16.msra.mxu2 %v7395_v51 }
 0x393   : > { %v3413_v61 = vadd.f32 %v3320_v11, %v3124_v60  ;;  %v3773_v60 = vor.u32 %v3771_v45, %v3769_v23  ;;  %v9951_v23 = vld [vmem:[#allocation2 + $0xa8] sm:$0xff] }
 0x394   : > { %v4579_v38 = vpop.f32.mrf.mxu0 }
 0x395   : > { %v9937_v59 = vadd.f32 %v4579_v38, %v9798_v36  ;;  %v3036_v62 = vpop.f32.mrf.mxu1  ;;  %v3778_v36 = vsel %vm2047_vm1, %v3773_v60, %v3777_v56  ;;  %v3779_v38 = vshrl.u32 %v9927_v10, 16  ;;  %v8669_v60 = vld [vmem:[#allocation2 + $0xb4] sm:$0xff]   ;;  %v4384_v10 = vshll.u32 %v9845_v17, 16 }
 0x396   : > { %v3950_v26 = vpop.f32.mrf.mxu3  ;;  %v3126_v7 = vadd.f32 %v3036_v62, %v10616_v8  ;;  %v2870_v6 = vshrl.u32 %v8669_v60, 16  ;;  %v2873_v42 = vshll.u32 %v8669_v60, 16 }
 0x397   : > { %v9941_v47 = vadd.f32 %v3950_v26, %v3412_v18  ;;  %4618 = vmatmul.bf16.gmra.mxu0 %v4370_v3  ;;  %v10617_v18 = vld [vmem:[#allocation23_spill] sm:$0xff]  ;;  %v10618_v26 = vld [vmem:[#allocation24_spill] sm:$0xff]  ;;  %v4379_v3 = vsel %vm1433_vm0, %v4369_v16, %v4378_v2  ;;  %v4386_v57 = vrot.slane %v4384_v10, 4 }
 0x398   : > { %3075 = vmatmul.bf16.gmra.mxu1 %v2859_v0  ;;  %v2868_v0 = vsel %vm1433_vm0, %v2858_v53, %v2867_v32  ;;  %v8671_v10 = vld [vmem:[#allocation2 + $0xbc] sm:$0xff]  }
 0x39a   : > { %v3322_v13 = vpop.f32.mrf.mxu2 }
 0x39b   : > { %3992 = vmatmul.bf16.gmra.mxu3 %v3778_v36  ;;  %v3414_v9 = vadd.f32 %v3322_v13, %v3125_v44  ;;  %v3783_v44 = vshll.u32 %v9951_v23, 16  ;;  %v4381_v36 = vshrl.u32 %v9845_v17, 16  ;;  %v2872_v17 = vrot.slane %v2870_v6, 3 }
 0x39c   : > { %v4581_v20 = vpop.f32.mrf.mxu0 }
 0x39d   : > { %v9949_v52 = vadd.f32 %v4581_v20, %v9818_v24  ;;  %v3038_v28 = vpop.f32.mrf.mxu1  ;;  %v3785_v62 = vrot.slane %v3783_v44, 1 }
 0x39e   : > { %v3953_v37 = vpop.f32.mrf.mxu3  ;;  %v3127_v55 = vadd.f32 %v3038_v28, %v10617_v18  ;;  %v4383_v18 = vrot.slane %v4381_v36, 3 }
 0x39f   : > { %v9954_v25 = vadd.f32 %v3953_v37, %v3413_v61  ;;  %3364 = vmatmul.bf16.gmra.mxu2 %v9956_v15  ;;  %v9980_v37 = vld [vmem:[#allocation2 + $0xa8] sm:$0xff]  }
 0x3a0   : > { %v4387_v27 = vor.u32 %v4386_v57, %v4383_v18  ;;  %v10621_v18 = vld [vmem:[#allocation27_spill] sm:$0xff] }
 0x3a2   : > { %v3325_v24 = vpop.f32.mrf.mxu2 }
 0x3a3   : > { %v3415_v50 = vadd.f32 %v3325_v24, %v3126_v7  ;;  %v3781_v7 = vor.u32 %v3779_v38, %v3777_v56  ;;  %v9975_v56 = vld [vmem:[#allocation2 + $0xb0] sm:$0xff] }
 0x3a4   : > { %v4584_v63 = vpop.f32.mrf.mxu0 }
 0x3a5   : > { %v9961_v46 = vadd.f32 %v4584_v63, %v9838_v43  ;;  %v3041_v11 = vpop.f32.mrf.mxu1  ;;  %v3786_v43 = vsel %vm2047_vm1, %v3781_v7, %v3785_v62  ;;  %v7363_v63 = vld [vmem:[#allocation8 + $0x1c0] sm:$0xff]  ;;  %v10620_v7 = vld [vmem:[#allocation26_spill] sm:$0xff] }
 0x3a6   : > { %v3955_v61 = vpop.f32.mrf.mxu3  ;;  %v3128_v45 = vadd.f32 %v3041_v11, %v10618_v26  ;;  %v7406_v11 = vld [vmem:[#allocation9 + $0x18] sm:$0xff]  ;;  %4856 = vmatpush.bf16.msra.mxu1 %v7363_v63 }
 0x3a7   : > { %v9965_v8 = vadd.f32 %v3955_v61, %v3414_v9  ;;  %4623 = vmatmul.bf16.gmra.mxu0 %v4379_v3  ;;  %v3787_v3 = vshrl.u32 %v9951_v23, 16  ;;  %5956 = vmatpush.bf16.msra.mxu3 %v7406_v11  ;;  %v4390_v23 = vshrl.u32 %v9879_v48, 16 }
 0x3a8   : > { %3080 = vmatmul.bf16.gmra.mxu1 %v2868_v0 }
 0x3a9   : > { %v3789_v36 = vor.u32 %v3787_v3, %v3785_v62  ;;  %v9999_v62 = vld [vmem:[#allocation2 + $0xb8] sm:$0xff]  ;;  %v4392_v51 = vrot.slane %v4390_v23, 3  ;;  %v8672_v23 = vld [vmem:[#allocation2 + $0xc4] sm:$0xff]  }
 0x3aa   : > { %v3327_v1 = vpop.f32.mrf.mxu2 }
 0x3ab   : > { %3997 = vmatmul.bf16.gmra.mxu3 %v3786_v43  ;;  %v3416_v13 = vadd.f32 %v3327_v1, %v3127_v55  ;;  %v2875_v55 = vrot.slane %v2873_v42, 4  ;;  %v4393_v42 = vshll.u32 %v9879_v48, 16 }
 0x3ac   : > { %v4586_v9 = vpop.f32.mrf.mxu0 }
 0x3ad   : > { %v9973_v16 = vadd.f32 %v4586_v9, %v9854_v58  ;;  %v3043_v49 = vpop.f32.mrf.mxu1  ;;  %v3791_v58 = vshll.u32 %v9975_v56, 16  ;;  %v2876_v24 = vor.u32 %v2875_v55, %v2872_v17  ;;  %v10004_v55 = vld [vmem:[#allocation2 + $0xb0] sm:$0xff]  }
 0x3ae   : > { %v3958_v53 = vpop.f32.mrf.mxu3  ;;  %v3129_v20 = vadd.f32 %v3043_v49, %v10619_v39  ;;  %v2879_v49 = vshrl.u32 %v8671_v10, 16 }
 0x3af   : > { %v9978_v28 = vadd.f32 %v3958_v53, %v3415_v50  ;;  %3369 = vmatmul.bf16.gmra.mxu2 %v9980_v37  ;;  %v3793_v0 = vrot.slane %v3791_v58, 1  ;;  %v2877_v1 = vsel %vm1433_vm0, %v2867_v32, %v2876_v24  ;;  %v4395_v58 = vrot.slane %v4393_v42, 4 }
 0x3b0   : > { %v2881_v48 = vrot.slane %v2879_v49, 3  ;;  %v4399_v49 = vshrl.u32 %v9908_v34, 16 }
 0x3b1   : > { %v4396_v63 = vor.u32 %v4395_v58, %v4392_v51 }
 0x3b2   : > { %v3330_v21 = vpop.f32.mrf.mxu2 }
 0x3b3   : > { %v3417_v44 = vadd.f32 %v3330_v21, %v3128_v45  ;;  %v4388_v45 = vsel %vm1433_vm0, %v4378_v2, %v4387_v27  ;;  %v3799_v21 = vshll.u32 %v9999_v62, 16 }
 0x3b4   : > { %v4589_v50 = vpop.f32.mrf.mxu0 }
 0x3b5   : > { %v9985_v61 = vadd.f32 %v4589_v50, %v9872_v33  ;;  %v3046_v38 = vpop.f32.mrf.mxu1  ;;  %v3794_v33 = vsel %vm2047_vm1, %v3789_v36, %v3793_v0 }
 0x3b6   : > { %v3960_v26 = vpop.f32.mrf.mxu3  ;;  %v3130_v60 = vadd.f32 %v3046_v38, %v10620_v7  ;;  %v3795_v7 = vshrl.u32 %v9975_v56, 16  ;;  %v4402_v56 = vshll.u32 %v9908_v34, 16 }
 0x3b7   : > { %v9989_v43 = vadd.f32 %v3960_v26, %v3416_v13  ;;  %4628 = vmatmul.bf16.gmra.mxu0 %v4388_v45  ;;  %v2882_v13 = vshll.u32 %v8671_v10, 16  ;;  %v3801_v45 = vrot.slane %v3799_v21, 1 }
 0x3b8   : > { %3085 = vmatmul.bf16.gmra.mxu1 %v2877_v1  ;;  %v10622_v1 = vld [vmem:[#allocation28_spill] sm:$0xff]  ;;  %v4404_v34 = vrot.slane %v4402_v56, 4 }
 0x3ba   : > { %v3332_v6 = vpop.f32.mrf.mxu2 }
 0x3bb   : > { %4002 = vmatmul.bf16.gmra.mxu3 %v3794_v33  ;;  %v3418_v9 = vadd.f32 %v3332_v6, %v3129_v20  ;;  %v2884_v20 = vrot.slane %v2882_v13, 4  ;;  %v4397_v33 = vsel %vm1433_vm0, %v4387_v27, %v4396_v63 }
 0x3bc   : > { %v4591_v53 = vpop.f32.mrf.mxu0 }
 0x3bd   : > { %v9997_v2 = vadd.f32 %v4591_v53, %v9886_v19  ;;  %v3048_v39 = vpop.f32.mrf.mxu1  ;;  %v2885_v50 = vor.u32 %v2884_v20, %v2881_v48  ;;  %v2891_v53 = vshll.u32 %v8672_v23, 16  ;;  %v10030_v48 = vld [vmem:[#allocation2 + $0xb8] sm:$0xff]   ;;  %v4401_v20 = vrot.slane %v4399_v49, 3 }
 0x3be   : > { %v3963_v32 = vpop.f32.mrf.mxu3  ;;  %v3131_v57 = vadd.f32 %v3048_v39, %v10621_v18  ;;  %v10623_v18 = vld [vmem:[#allocation29_spill] sm:$0xff] }
 0x3bf   : > { %v10002_v17 = vadd.f32 %v3963_v32, %v3417_v44  ;;  %3374 = vmatmul.bf16.gmra.mxu2 %v10004_v55  ;;  %v2886_v6 = vsel %vm1433_vm0, %v2876_v24, %v2885_v50  ;;  %v10025_v32 = vld [vmem:[#allocation2 + $0xc0] sm:$0xff]  ;;  %v2893_v21 = vrot.slane %v2891_v53, 4 }
 0x3c2   : > { %v3335_v19 = vpop.f32.mrf.mxu2 }
 0x3c3   : > { %v3419_v11 = vadd.f32 %v3335_v19, %v3130_v60  ;;  %v3797_v60 = vor.u32 %v3795_v7, %v3793_v0  ;;  %v10033_v19 = vld [vmem:[#allocation2 + $0xc8] sm:$0xff]  }
 0x3c4   : > { %v4594_v38 = vpop.f32.mrf.mxu0 }
 0x3c5   : > { %v10009_v26 = vadd.f32 %v4594_v38, %v9843_v54  ;;  %v3051_v44 = vpop.f32.mrf.mxu1  ;;  %v3802_v54 = vsel %vm2047_vm1, %v3797_v60, %v3801_v45 }
 0x3c6   : > { %v3965_v3 = vpop.f32.mrf.mxu3  ;;  %v3132_v36 = vadd.f32 %v3051_v44, %v10622_v1  ;;  %v4405_v44 = vor.u32 %v4404_v34, %v4401_v20  ;;  %v7728_v1 = vunpack.c.h.b16 %v10033_v19 }
 0x3c7   : > { %v10013_v10 = vadd.f32 %v3965_v3, %v3418_v9  ;;  %4633 = vmatmul.bf16.gmra.mxu0 %v4397_v33  ;;  %v2888_v9 = vshrl.u32 %v8672_v23, 16  ;;  %v3803_v23 = vshrl.u32 %v9999_v62, 16 }
 0x3c8   : > { %3090 = vmatmul.bf16.gmra.mxu1 %v2886_v6  ;;  %v4406_v56 = vsel %vm1433_vm0, %v4396_v63, %v4405_v44  ;;  %v2680_v53 = vpack.c.b16 %v7728_v1, %v7728_v1  ;;  %v10059_v1 = vld [vmem:[#allocation2 + $0xc0] sm:$0xff]  }
 0x3ca   : > { %v3337_v42 = vpop.f32.mrf.mxu2  ;;  %v2900_v20 = vshll.u32 %v2680_v53, 16 }
 0x3cb   : > { %4007 = vmatmul.bf16.gmra.mxu3 %v3802_v54  ;;  %v10020_v13 = vadd.f32 %v3337_v42, %v3131_v57  ;;  %v2890_v57 = vrot.slane %v2888_v9, 3  ;;  %v10624_v42 = vld [vmem:[#allocation30_spill] sm:$0xff]  ;;  %v3805_v9 = vor.u32 %v3803_v23, %v3801_v45 }
 0x3cc   : > { %v4596_v39 = vpop.f32.mrf.mxu0 }
 0x3cd   : > { %v10023_v27 = vadd.f32 %v4596_v39, %v9858_v35  ;;  %v3053_v24 = vpop.f32.mrf.mxu1  ;;  %v3807_v35 = vshll.u32 %v10025_v32, 16  ;;  %v2894_v7 = vor.u32 %v2893_v21, %v2890_v57  ;;  %v10054_v57 = vld [vmem:[#allocation2 + $0xc8] sm:$0xff]  ;;  %v10625_v21 = vld [vmem:[#allocation31_spill] sm:$0xff] }
 0x3ce   : > { %v3968_v0 = vpop.f32.mrf.mxu3  ;;  %v3133_v51 = vadd.f32 %v3053_v24, %v10623_v18  ;;  %v4408_v24 = vshrl.u32 %v9932_v5, 16  ;;  %v2897_v18 = vshrl.u32 %v2680_v53, 16  ;;  %v3815_v23 = vshll.u32 %v10054_v57, 16 }
 0x3cf   : > { %v10028_v58 = vadd.f32 %v3968_v0, %v3419_v11  ;;  %3379 = vmatmul.bf16.gmra.mxu2 %v10030_v48  ;;  %v3809_v54 = vrot.slane %v3807_v35, 1  ;;  %v4411_v0 = vshll.u32 %v9932_v5, 16 }
 0x3d1   : > { %v3810_v39 = vsel %vm2047_vm1, %v3805_v9, %v3809_v54  ;;  %v4413_v5 = vrot.slane %v4411_v0, 4  ;;  %v7405_v9 = vld [vmem:[#allocation9 + $0x10] sm:$0xff]  ;;  %v3817_v0 = vrot.slane %v3815_v23, 1 }
 0x3d2   : > { %v3340_v38 = vpop.f32.mrf.mxu2  ;;  %5957 = vmatpush.bf16.msra.mxu3 %v7405_v9 }
 0x3d3   : > { %v3421_v3 = vadd.f32 %v3340_v38, %v3132_v36  ;;  %v2895_v36 = vsel %vm1433_vm0, %v2885_v50, %v2894_v7 }
 0x3d4   : > { %v4599_v11 = vpop.f32.mrf.mxu0 }
 0x3d5   : > { %v10038_v33 = vadd.f32 %v4599_v11, %v9877_v31  ;;  %v3056_v6 = vpop.f32.mrf.mxu1  ;;  %v4410_v11 = vrot.slane %v4408_v24, 3  ;;  %v3811_v24 = vshrl.u32 %v10025_v32, 16  ;;  %v4420_v32 = vshll.u32 %v9956_v15, 16 }
 0x3d6   : > { %v10040_v60 = vpop.f32.mrf.mxu3  ;;  %v3134_v49 = vadd.f32 %v3056_v6, %v10624_v42  ;;  %v2902_v6 = vrot.slane %v2900_v20, 4 }
 0x3d7   : > { %4638 = vmatmul.bf16.gmra.mxu0 %v4406_v56  ;;  %v4414_v42 = vor.u32 %v4413_v5, %v4410_v11  ;;  %v4417_v5 = vshrl.u32 %v9956_v15, 16  ;;  %v7372_v15 = vld [vmem:[#allocation2 + $0x24] sm:$0xff] }
 0x3d8   : > { %3095 = vmatmul.bf16.gmra.mxu1 %v2895_v36 }
 0x3da   : > { %v3342_v31 = vpop.f32.mrf.mxu2 }
 0x3db   : > { %4012 = vmatmul.bf16.gmra.mxu3 %v3810_v39  ;;  %v10049_v62 = vadd.f32 %v3342_v31, %v3133_v51  ;;  %v2899_v51 = vrot.slane %v2897_v18, 3  ;;  %v10626_v18 = vld [vmem:[#allocation32_spill] sm:$0xff] }
 0x3dc   : > { %v4601_v34 = vpop.f32.mrf.mxu0 }
 0x3dd   : > { %v10052_v63 = vadd.f32 %v4601_v34, %v9893_v40  ;;  %v3058_v50 = vpop.f32.mrf.mxu1  ;;  %v2903_v36 = vor.u32 %v2902_v6, %v2899_v51  ;;  %v4415_v34 = vsel %vm1433_vm0, %v4405_v44, %v4414_v42 }
 0x3de   : > { %v3973_v45 = vpop.f32.mrf.mxu3  ;;  %v3135_v35 = vadd.f32 %v3058_v50, %v10625_v21  ;;  %v3491_v50 = vld [vmem:[#allocation2 + $0xd0] sm:$0x1] }
 0x3df   : > { %v10057_v38 = vadd.f32 %v3973_v45, %v3421_v3  ;;  %3384 = vmatmul.bf16.gmra.mxu2 %v10059_v1  ;;  %v3813_v45 = vor.u32 %v3811_v24, %v3809_v54  ;;  %v3605_v21 = vunpack.c.l.b16 %v3491_v50  ;;  %v10627_v54 = vld [vmem:[#allocation33_spill] sm:$0xff]  ;;  %v7371_v24 = vld [vmem:[#allocation2 + $0x1c] sm:$0xff] }
 0x3e0   : > { %v8780_v50 = vld [vmem:[#allocation2 + $0x20] sm:$0xff]  }
 0x3e2   : > { %v3345_v40 = vpop.f32.mrf.mxu2 }
 0x3e3   : > { %v3423_v56 = vadd.f32 %v3345_v40, %v3134_v49  ;;  %v2904_v49 = vsel %vm1433_vm0, %v2894_v7, %v2903_v36  ;;  %v3630_v7 = vpack.c.b16 %v3605_v21, %v3605_v21 }
 0x3e4   : > { %v4604_v53 = vpop.f32.mrf.mxu0 }
 0x3e5   : > { %v10064_v39 = vadd.f32 %v4604_v53, %v9906_v14  ;;  %v3061_v3 = vpop.f32.mrf.mxu1  ;;  %v3818_v14 = vsel %vm2047_vm1, %v3813_v45, %v3817_v0  ;;  %v4419_v53 = vrot.slane %v4417_v5, 3  ;;  %v5217_v45 = vshll.u32 %v7371_v24, 16 }
 0x3e6   : > { %v10066_v31 = vpop.f32.mrf.mxu3  ;;  %v3136_v20 = vadd.f32 %v3061_v3, %v10626_v18  ;;  %v4422_v3 = vrot.slane %v4420_v32, 4  ;;  %v3823_v18 = vshll.u32 %v3630_v7, 16  ;;  %v3819_v5 = vshrl.u32 %v10054_v57, 16 }
 0x3e7   : > { %4643 = vmatmul.bf16.gmra.mxu0 %v4415_v34  ;;  %v4426_v57 = vshrl.u32 %v9980_v37, 16 }
 0x3e8   : > { %3100 = vmatmul.bf16.gmra.mxu1 %v2904_v49  ;;  %v4423_v34 = vor.u32 %v4422_v3, %v4419_v53  ;;  %v7731_v49 = vunpack.c.l.b16 %v8780_v50  ;;  %v3825_v32 = vrot.slane %v3823_v18, 1  ;;  %v5215_v50 = vshrl.u32 %v7371_v24, 16 }
 0x3e9   : > { %v4429_v18 = vshll.u32 %v9980_v37, 16 }
 0x3ea   : > { %v3347_v11 = vpop.f32.mrf.mxu2  ;;  %v4424_v7 = vsel %vm1433_vm0, %v4414_v42, %v4423_v34 }
 0x3eb   : > { %4017 = vmatmul.bf16.gmra.mxu3 %v3818_v14  ;;  %v10075_v51 = vadd.f32 %v3347_v11, %v3135_v35 }
 0x3ec   : > { %v4606_v6 = vpop.f32.mrf.mxu0 }
 0x3ed   : > { %v10078_v44 = vadd.f32 %v4606_v6, %v9917_v12  ;;  %v3063_v23 = vpop.f32.mrf.mxu1  ;;  %v5222_v6 = vshll.u32 %v7372_v15, 16 }
 0x3ee   : > { %v3978_v40 = vpop.f32.mrf.mxu3  ;;  %v3137_v36 = vadd.f32 %v3063_v23, %v10627_v54  ;;  %v10629_v23 = vld [vmem:[#allocation34_spill] sm:$0xff] }
 0x3ef   : > { %v10081_v9 = vadd.f32 %v3978_v40, %v3423_v56  ;;  %3389 = vmatmul.bf16.gmra.mxu2 %v10033_v19  ;;  %v10630_v54 = vld [vmem:[#allocation46_spill] sm:$0xff] }
 0x3f0   : > { %v10631_v53 = vunpack.c.l.b16 %v10630_v54  ;;  %v4431_v54 = vrot.slane %v4429_v18, 4 }
 0x3f2   : > { %v3350_v35 = vpop.f32.mrf.mxu2  ;;  %v4753_v3 = vpack.c.b16 %v7731_v49, %v10631_v53  ;;  %v7373_v53 = vld [vmem:[#allocation2 + $0x2c] sm:$0xff] }
 0x3f3   : > { %v3425_v12 = vadd.f32 %v3350_v35, %v3136_v20  ;;  %v3821_v20 = vor.u32 %v3819_v5, %v3817_v0  ;;  %v5219_v35 = vrot.slane %v5217_v45, 1 }
 0x3f4   : > { %v4609_v14 = vpop.f32.mrf.mxu0 }
 0x3f5   : > { %v10085_v21 = vadd.f32 %v4609_v14, %v9930_v41  ;;  %v3066_v11 = vpop.f32.mrf.mxu1  ;;  %v3826_v41 = vsel %vm2047_vm1, %v3821_v20, %v3825_v32  ;;  %v5224_v14 = vrot.slane %v5222_v6, 1  ;;  %v5220_v42 = vor.u32 %v5219_v35, %v5215_v50  ;;  %v10632_v32 = vld [vmem:[#allocation35_spill] sm:$0xff]  ;;  %v10633_v50 = vld [vmem:[#allocation36_spill] sm:$0xff] }
 0x3f6   : > { %v10087_v56 = vpop.f32.mrf.mxu3  ;;  %v3138_v40 = vadd.f32 %v3066_v11, %v10629_v23 }
 0x3f7   : > { %10628 = vst [vmem:[#allocation42_spill] sm:$0xff] %v10087_v56  ;;  %4648 = vmatmul.bf16.gmra.mxu0 %v4424_v7  ;;  %v5225_v5 = vsel %vm2047_vm1, %v5220_v42, %v5224_v14  ;;  %v4428_v7 = vrot.slane %v4426_v57, 3  ;;  %v5226_v57 = vshrl.u32 %v7372_v15, 16 }
 0x3f8   : > { %4857 = vmatmul.bf16.vlgmr.msra.gmra.mxu1 %v4753_v3 }
 0x3fa   : > { %v3352_v56 = vpop.f32.mrf.mxu2 }
 0x3fb   : > { %4022 = vmatmul.bf16.gmra.mxu3 %v3826_v41  ;;  %v10097_v11 = vadd.f32 %v3352_v56, %v3137_v36  ;;  %v4432_v36 = vor.u32 %v4431_v54, %v4428_v7  ;;  %v5230_v41 = vshll.u32 %v7373_v53, 16 }
 0x3fc   : > { %v4611_v23 = vpop.f32.mrf.mxu0 }
 0x3fd   : > { %v10100_v49 = vadd.f32 %v4611_v23, %v9941_v47  ;;  %v3068_v0 = vpop.f32.mrf.mxu1  ;;  %v8516_v23 = vld [vmem:[#allocation2 + $0x24] sm:$0xff]   ;;  %v5232_v18 = vrot.slane %v5230_v41, 1 }
 0x3fe   : > { %v3983_v45 = vpop.f32.mrf.mxu3  ;;  %v3139_v24 = vadd.f32 %v3068_v0, %v10632_v32 }
 0x3ff   : > { %v10104_v6 = vadd.f32 %v3983_v45, %v3425_v12  ;;  %5490 = vmatmul.bf16.vlgmr.msra.gmra.mxu2 %v5225_v5  ;;  %v4433_v12 = vsel %vm1433_vm0, %v4423_v34, %v4432_v36  ;;  %v4438_v45 = vshll.u32 %v10004_v55, 16  ;;  %v5228_v5 = vor.u32 %v5226_v57, %v5224_v14  ;;  %v7404_v14 = vld [vmem:[#allocation9 + $0x8] sm:$0xff] }
 0x400   : > { %5958 = vmatpush.bf16.msra.mxu3 %v7404_v14 }
 0x401   : > { %v5233_v34 = vsel %vm2047_vm1, %v5228_v5, %v5232_v18 }
 0x402   : > { %v3355_v37 = vpop.f32.mrf.mxu2 }
 0x403   : > { %v3427_v56 = vadd.f32 %v3355_v37, %v3138_v40  ;;  %v4435_v40 = vshrl.u32 %v10004_v55, 16 }
 0x404   : > { %v4614_v3 = vpop.f32.mrf.mxu0 }
 0x405   : > { %v10107_v20 = vadd.f32 %v4614_v3, %v9954_v25  ;;  %v3071_v47 = vpop.f32.mrf.mxu1  ;;  %v10635_v3 = vld [vmem:[#allocation37_spill] sm:$0xff]  ;;  %v4437_v41 = vrot.slane %v4435_v40, 3 }
 0x406   : > { %v10109_v35 = vpop.f32.mrf.mxu3  ;;  %v3140_v42 = vadd.f32 %v3071_v47, %v10633_v50  ;;  %v4440_v50 = vrot.slane %v4438_v45, 4  ;;  %v8518_v45 = vld [vmem:[#allocation2 + $0x2c] sm:$0xff]  }
 0x407   : > { %4653 = vmatmul.bf16.gmra.mxu0 %v4433_v12  ;;  %v7374_v12 = vld [vmem:[#allocation2 + $0x34] sm:$0xff] }
 0x408   : > { %4862 = vmatmul.bf16.gmra.mxu1 %v8516_v23  ;;  %v5238_v5 = vshll.u32 %v7374_v12, 16 }
 0x40a   : > { %v3357_v0 = vpop.f32.mrf.mxu2 }
 0x40b   : > { %v10115_v25 = vadd.f32 %v3357_v0, %v3139_v24  ;;  %v4441_v24 = vor.u32 %v4440_v50, %v4437_v41 }
 0x40c   : > { %v4616_v32 = vpop.f32.mrf.mxu0 }
 0x40d   : > { %10634 = vst [vmem:[#allocation52_spill] sm:$0xff] %v10115_v25  ;;  %v10118_v7 = vadd.f32 %v4616_v32, %v9965_v8  ;;  %v3073_v54 = vpop.f32.mrf.mxu1  ;;  %v4442_v40 = vsel %vm1433_vm0, %v4432_v36, %v4441_v24 }
 0x40e   : > { %v3988_v37 = vpop.f32.mrf.mxu3  ;;  %v3141_v47 = vadd.f32 %v3073_v54, %v10635_v3  ;;  %v10638_v54 = vld [vmem:[#allocation38_spill] sm:$0xff]  ;;  %v4444_v3 = vshrl.u32 %v10030_v48, 16 }
 0x40f   : > { %v10122_v15 = vadd.f32 %v3988_v37, %v3427_v56  ;;  %5495 = vmatmul.bf16.gmra.mxu2 %v5233_v34  ;;  %v5234_v37 = vshrl.u32 %v7373_v53, 16  ;;  %v5240_v34 = vrot.slane %v5238_v5, 1 }
 0x410   : > { %v4446_v5 = vrot.slane %v4444_v3, 3  ;;  %v5242_v3 = vshrl.u32 %v7374_v12, 16 }
 0x411   : > { %10636 = vst [vmem:[#allocation17_spill] sm:$0xff] %v10122_v15  ;;  %v5236_v50 = vor.u32 %v5234_v37, %v5232_v18 }
 0x412   : > { %v3360_v55 = vpop.f32.mrf.mxu2 }
 0x413   : > { %v3429_v23 = vadd.f32 %v3360_v55, %v3140_v42  ;;  %v5241_v36 = vsel %vm2047_vm1, %v5236_v50, %v5240_v34  ;;  %v10643_v50 = vld [vmem:[#allocation40_spill] sm:$0xff] }
 0x414   : > { %v4619_v57 = vpop.f32.mrf.mxu0 }
 0x415   : > { %v10125_v8 = vadd.f32 %v4619_v57, %v9978_v28  ;;  %v3076_v0 = vpop.f32.mrf.mxu1  ;;  %v4447_v28 = vshll.u32 %v10030_v48, 16 }
 0x416   : > { %v10127_v32 = vpop.f32.mrf.mxu3  ;;  %v3142_v56 = vadd.f32 %v3076_v0, %v10638_v54  ;;  %v10640_v54 = vld [vmem:[#allocation39_spill] sm:$0xff] }
 0x417   : > { %10637 = vst [vmem:[#allocation18_spill] sm:$0xff] %v10127_v32  ;;  %4658 = vmatmul.bf16.gmra.mxu0 %v4442_v40  ;;  %v7375_v32 = vld [vmem:[#allocation2 + $0x3c] sm:$0xff] }
 0x418   : > { %4867 = vmatmul.bf16.gmra.mxu1 %v8518_v45  ;;  %v4449_v45 = vrot.slane %v4447_v28, 4 }
 0x41a   : > { %v3362_v42 = vpop.f32.mrf.mxu2 }
 0x41b   : > { %v10133_v41 = vadd.f32 %v3362_v42, %v3141_v47  ;;  %v4450_v47 = vor.u32 %v4449_v45, %v4446_v5 }
 0x41c   : > { %v4621_v55 = vpop.f32.mrf.mxu0 }
 0x41d   : > { %10639 = vst [vmem:[#allocation19_spill] sm:$0xff] %v10133_v41  ;;  %v10136_v14 = vadd.f32 %v4621_v55, %v9989_v43  ;;  %v3078_v57 = vpop.f32.mrf.mxu1  ;;  %v5246_v41 = vshll.u32 %v7375_v32, 16 }
 0x41e   : > { %v3993_v0 = vpop.f32.mrf.mxu3  ;;  %v3143_v40 = vadd.f32 %v3078_v57, %v10640_v54  ;;  %v8520_v57 = vld [vmem:[#allocation2 + $0x34] sm:$0xff]   ;;  %v5244_v54 = vor.u32 %v5242_v3, %v5240_v34 }
 0x41f   : > { %v10140_v53 = vadd.f32 %v3993_v0, %v3429_v23  ;;  %5500 = vmatmul.bf16.gmra.mxu2 %v5241_v36  ;;  %v4451_v23 = vsel %vm1433_vm0, %v4441_v24, %v4450_v47  ;;  %v5248_v28 = vrot.slane %v5246_v41, 1  ;;  %v4456_v36 = vshll.u32 %v10059_v1, 16 }
 0x421   : > { %10641 = vst [vmem:[#allocation20_spill] sm:$0xff] %v10140_v53  ;;  %v5249_v24 = vsel %vm2047_vm1, %v5244_v54, %v5248_v28  ;;  %v8522_v54 = vld [vmem:[#allocation2 + $0x3c] sm:$0xff]   ;;  %v10659_v53 = vld [vmem:[#allocation49_spill] sm:$0xff] }
 0x422   : > { %v3365_v48 = vpop.f32.mrf.mxu2 }
 0x423   : > { %v3431_v42 = vadd.f32 %v3365_v48, %v3142_v56  ;;  %v4453_v56 = vshrl.u32 %v10059_v1, 16 }
 0x424   : > { %v4624_v18 = vpop.f32.mrf.mxu0 }
 0x425   : > { %v10143_v37 = vadd.f32 %v4624_v18, %v10002_v17  ;;  %v3081_v43 = vpop.f32.mrf.mxu1  ;;  %v4455_v41 = vrot.slane %v4453_v56, 3 }
 0x426   : > { %v10145_v55 = vpop.f32.mrf.mxu3  ;;  %v3144_v25 = vadd.f32 %v3081_v43, %v10643_v50  ;;  %v10645_v43 = vld [vmem:[#allocation41_spill] sm:$0xff] }
 0x427   : > { %10642 = vst [vmem:[#allocation21_spill] sm:$0xff] %v10145_v55  ;;  %4663 = vmatmul.bf16.gmra.mxu0 %v4451_v23  ;;  %v4458_v23 = vrot.slane %v4456_v36, 4  ;;  %v4462_v36 = vshrl.u32 %v10033_v19, 16 }
 0x428   : > { %4872 = vmatmul.bf16.gmra.mxu1 %v8520_v57  ;;  %v7376_v57 = vld [vmem:[#allocation2 + $0x44] sm:$0xff] }
 0x42a   : > { %v3367_v0 = vpop.f32.mrf.mxu2 }
 0x42b   : > { %v10151_v17 = vadd.f32 %v3367_v0, %v3143_v40  ;;  %v4459_v40 = vor.u32 %v4458_v23, %v4455_v41 }
 0x42c   : > { %v4626_v5 = vpop.f32.mrf.mxu0 }
 0x42d   : > { %10644 = vst [vmem:[#allocation22_spill] sm:$0xff] %v10151_v17  ;;  %v10154_v45 = vadd.f32 %v4626_v5, %v10013_v10  ;;  %v3083_v48 = vpop.f32.mrf.mxu1  ;;  %v5254_v10 = vshll.u32 %v7376_v57, 16  ;;  %v10648_v5 = vld [vmem:[#allocation43_spill] sm:$0xff]  ;;  %v4460_v55 = vsel %vm1433_vm0, %v4450_v47, %v4459_v40 }
 0x42e   : > { %v3998_v18 = vpop.f32.mrf.mxu3  ;;  %v3145_v50 = vadd.f32 %v3083_v48, %v10645_v43 }
 0x42f   : > { %v10158_v12 = vadd.f32 %v3998_v18, %v3431_v42  ;;  %5505 = vmatmul.bf16.gmra.mxu2 %v5249_v24  ;;  %v5250_v42 = vshrl.u32 %v7375_v32, 16  ;;  %v5256_v48 = vrot.slane %v5254_v10, 1  ;;  %v4465_v18 = vshll.u32 %v10033_v19, 16  ;;  %v7377_v32 = vld [vmem:[#allocation2 + $0x4c] sm:$0xff] }
 0x431   : > { %10646 = vst [vmem:[#allocation23_spill] sm:$0xff] %v10158_v12  ;;  %v7403_v12 = vld [vmem:[#allocation9] sm:$0xff] }
 0x432   : > { %v3370_v1 = vpop.f32.mrf.mxu2  ;;  %5959 = vmatpush.bf16.msra.mxu3 %v7403_v12 }
 0x433   : > { %v3433_v0 = vadd.f32 %v3370_v1, %v3144_v25  ;;  %v5252_v25 = vor.u32 %v5250_v42, %v5248_v28  ;;  %v10650_v1 = vld [vmem:[#allocation44_spill] sm:$0xff]  ;;  %v5262_v28 = vshll.u32 %v7377_v32, 16  ;;  %v10653_v42 = vld [vmem:[#allocation45_spill] sm:$0xff] }
 0x435   : > { %v3086_v34 = vpop.f32.mrf.mxu1  ;;  %v5257_v23 = vsel %vm2047_vm1, %v5252_v25, %v5256_v48 }
 0x436   : > { %v10160_v3 = vpop.f32.mrf.mxu3  ;;  %v3146_v17 = vadd.f32 %v3086_v34, %v10648_v5  ;;  %v4467_v5 = vrot.slane %v4465_v18, 4  ;;  %v5264_v18 = vrot.slane %v5262_v28, 1 }
 0x437   : > { %10647 = vst [vmem:[#allocation24_spill] sm:$0xff] %v10160_v3  ;;  %4668 = vmatmul.bf16.gmra.mxu0 %v4460_v55  ;;  %v4464_v55 = vrot.slane %v4462_v36, 3  ;;  %v5258_v36 = vshrl.u32 %v7376_v57, 16 }
 0x438   : > { %4877 = vmatmul.bf16.gmra.mxu1 %v8522_v54 }
 0x439   : > { %v4468_v54 = vor.u32 %v4467_v5, %v4464_v55  ;;  %v5260_v55 = vor.u32 %v5258_v36, %v5256_v48 }
 0x43a   : > { %v3372_v56 = vpop.f32.mrf.mxu2 }
 0x43b   : > { %v10166_v24 = vadd.f32 %v3372_v56, %v3145_v50  ;;  %v4469_v25 = vsel %vm1433_vm0, %v4459_v40, %v4468_v54  ;;  %v4124_v40 = vld [vmem:[#allocation2 + $0xd8] sm:$0xf] }
 0x43c   : > { %v10186_v28 = vunpack.c.l.b16 %v4124_v40  ;;  %v5266_v40 = vshrl.u32 %v7377_v32, 16 }
 0x43d   : > { %10649 = vst [vmem:[#allocation25_spill] sm:$0xff] %v10166_v24  ;;  %v3088_v43 = vpop.f32.mrf.mxu1 }
 0x43e   : > { %v4003_v41 = vpop.f32.mrf.mxu3  ;;  %v3147_v34 = vadd.f32 %v3088_v43, %v10650_v1  ;;  %v8524_v43 = vld [vmem:[#allocation2 + $0x44] sm:$0xff]   ;;  %v4263_v48 = vpack.c.b16 %v10186_v28, %v10186_v28 }
 0x43f   : > { %v10170_v47 = vadd.f32 %v4003_v41, %v3433_v0  ;;  %5510 = vmatmul.bf16.gmra.mxu2 %v5257_v23  ;;  %v10176_v0 = vld [vmem:[#allocation2 + $0xd0] sm:$0xff]  }
 0x440   : > { %v4474_v23 = vshll.u32 %v10176_v0, 16 }
 0x441   : > { %10651 = vst [vmem:[#allocation26_spill] sm:$0xff] %v10170_v47  ;;  %v7378_v47 = vld [vmem:[#allocation2 + $0x54] sm:$0xff] }
 0x442   : > { %v3375_v10 = vpop.f32.mrf.mxu2  ;;  %v4476_v57 = vrot.slane %v4474_v23, 4  ;;  %v4480_v23 = vshrl.u32 %v4263_v48, 16 }
 0x443   : > { %v3435_v3 = vadd.f32 %v3375_v10, %v3146_v17  ;;  %v4471_v17 = vshrl.u32 %v10176_v0, 16  ;;  %v5265_v10 = vsel %vm2047_vm1, %v5260_v55, %v5264_v18  ;;  %v10658_v55 = vld [vmem:[#allocation48_spill] sm:$0xff] }
 0x445   : > { %v3091_v19 = vpop.f32.mrf.mxu1 }
 0x446   : > { %v10172_v50 = vpop.f32.mrf.mxu3  ;;  %v3148_v56 = vadd.f32 %v3091_v19, %v10653_v42  ;;  %v10655_v19 = vld [vmem:[#allocation47_spill] sm:$0xff] }
 0x447   : > { %10652 = vst [vmem:[#allocation27_spill] sm:$0xff] %v10172_v50  ;;  %4673 = vmatmul.bf16.gmra.mxu0 %v4469_v25 }
 0x448   : > { %4882 = vmatmul.bf16.gmra.mxu1 %v8524_v43  ;;  %v4473_v43 = vrot.slane %v4471_v17, 3  ;;  %v5270_v17 = vshll.u32 %v7378_v47, 16 }
 0x44a   : > { %v3377_v41 = vpop.f32.mrf.mxu2  ;;  %v4477_v24 = vor.u32 %v4476_v57, %v4473_v43  ;;  %v4482_v43 = vrot.slane %v4480_v23, 3 }
 0x44b   : > { %v10180_v1 = vadd.f32 %v3377_v41, %v3147_v34 }
 0x44d   : > { %10654 = vst [vmem:[#allocation28_spill] sm:$0xff] %v10180_v1  ;;  %v3093_v12 = vpop.f32.mrf.mxu1 }
 0x44e   : > { %v4008_v5 = vpop.f32.mrf.mxu3  ;;  %v3149_v42 = vadd.f32 %v3093_v12, %v10655_v19  ;;  %v8526_v12 = vld [vmem:[#allocation2 + $0x4c] sm:$0xff]   ;;  %v5272_v19 = vrot.slane %v5270_v17, 1 }
 0x44f   : > { %v10184_v25 = vadd.f32 %v4008_v5, %v3435_v3  ;;  %5515 = vmatmul.bf16.gmra.mxu2 %v5265_v10  ;;  %v4478_v3 = vsel %vm1433_vm0, %v4468_v54, %v4477_v24  ;;  %v4483_v5 = vshll.u32 %v4263_v48, 16  ;;  %v7379_v48 = vld [vmem:[#allocation2 + $0x5c] sm:$0xff] }
 0x451   : > { %10656 = vst [vmem:[#allocation29_spill] sm:$0xff] %v10184_v25  ;;  %v4485_v57 = vrot.slane %v4483_v5, 4  ;;  %v8528_v5 = vld [vmem:[#allocation2 + $0x54] sm:$0xff]  }
 0x452   : > { %v3380_v50 = vpop.f32.mrf.mxu2 }
 0x453   : > { %v3437_v34 = vadd.f32 %v3380_v50, %v3148_v56  ;;  %v5268_v56 = vor.u32 %v5266_v40, %v5264_v18  ;;  %v10660_v18 = vld [vmem:[#allocation50_spill] sm:$0xff] }
 0x455   : > { %v3096_v36 = vpop.f32.mrf.mxu1  ;;  %v5273_v54 = vsel %vm2047_vm1, %v5268_v56, %v5272_v19 }
 0x456   : > { %v10190_v41 = vpop.f32.mrf.mxu3  ;;  %v3150_v1 = vadd.f32 %v3096_v36, %v10658_v55 }
 0x457   : > { %10657 = vst [vmem:[#allocation30_spill] sm:$0xff] %v10190_v41  ;;  %4678 = vmatmul.bf16.gmra.mxu0 %v4478_v3  ;;  %v4486_v3 = vor.u32 %v4485_v57, %v4482_v43 }
 0x458   : > { %4887 = vmatmul.bf16.gmra.mxu1 %v8526_v12 }
 0x459   : > { %v4487_v32 = vsel %vm1433_vm0, %v4477_v24, %v4486_v3 }
 0x45a   : > { %v3382_v10 = vpop.f32.mrf.mxu2 }
 0x45b   : > { %v10194_v50 = vadd.f32 %v3382_v10, %v3149_v42  ;;  %v5278_v10 = vshll.u32 %v7379_v48, 16 }
 0x45d   : > { %v3098_v25 = vpop.f32.mrf.mxu1 }
 0x45e   : > { %v4013_v41 = vpop.f32.mrf.mxu3  ;;  %v3151_v36 = vadd.f32 %v3098_v25, %v10659_v53  ;;  %v5274_v25 = vshrl.u32 %v7378_v47, 16  ;;  %v8530_v47 = vld [vmem:[#allocation2 + $0x5c] sm:$0xff]  }
 0x45f   : > { %v10197_v55 = vadd.f32 %v4013_v41, %v3437_v34  ;;  %5520 = vmatmul.bf16.gmra.mxu2 %v5273_v54  ;;  %v5280_v34 = vrot.slane %v5278_v10, 1 }
 0x460   : > { %v5276_v40 = vor.u32 %v5274_v25, %v5272_v19  ;;  %v5282_v19 = vshrl.u32 %v7379_v48, 16  ;;  %v10221_v48 = vld [vmem:[%s10549_s5] ss:$0 sm:$0xff] }
 0x462   : > { %v3385_v12 = vpop.f32.mrf.mxu2  ;;  %v5281_v54 = vsel %vm2047_vm1, %v5276_v40, %v5280_v34  ;;  %v5284_v25 = vor.u32 %v5282_v19, %v5280_v34 }
 0x463   : > { %v3439_v15 = vadd.f32 %v3385_v12, %v3150_v1  ;;  %v10662_v1 = vld [vmem:[#allocation51_spill] sm:$0xff] }
 0x464   : > { %v7380_v12 = vld [vmem:[#allocation2 + $0x64] sm:$0xff] }
 0x465   : > { %v3101_v42 = vpop.f32.mrf.mxu1 }
 0x466   : > { %v10201_v17 = vpop.f32.mrf.mxu3  ;;  %v3152_v23 = vadd.f32 %v3101_v42, %v10660_v18 }
 0x467   : > { %4683 = vmatmul.bf16.gmra.mxu0 %v4487_v32 }
 0x468   : > { %4892 = vmatmul.bf16.gmra.mxu1 %v8528_v5  ;;  %v5286_v5 = vshll.u32 %v7380_v12, 16 }
 0x46a   : > { %v3387_v53 = vpop.f32.mrf.mxu2  ;;  %v5288_v10 = vrot.slane %v5286_v5, 1 }
 0x46b   : > { %v10204_v41 = vadd.f32 %v3387_v53, %v3151_v36 }
 0x46c   : > { %v5289_v40 = vsel %vm2047_vm1, %v5284_v25, %v5288_v10 }
 0x46d   : > { %10661 = vst [vmem:[#allocation31_spill] sm:$0xff] %v10204_v41  ;;  %v3103_v56 = vpop.f32.mrf.mxu1 }
 0x46e   : > { %v4018_v43 = vpop.f32.mrf.mxu3  ;;  %v3153_v57 = vadd.f32 %v3103_v56, %v10662_v1  ;;  %v7381_v1 = vld [vmem:[#allocation2 + $0x6c] sm:$0xff] }
 0x46f   : > { %v10207_v24 = vadd.f32 %v4018_v43, %v3439_v15  ;;  %5525 = vmatmul.bf16.gmra.mxu2 %v5281_v54 }
 0x472   : > { %v3390_v3 = vpop.f32.mrf.mxu2 }
 0x473   : > { %v3441_v42 = vadd.f32 %v3390_v3, %v3152_v23 }
 0x475   : > { %v4858_v32 = vpop.f32.mrf.mxu1 }
 0x476   : > { %v10210_v18 = vpop.f32.mrf.mxu3  ;;  %v4978_v54 = vadd.f32 %v4858_v32, %v9889_v4 }
 0x477   : > { %10663 = vst [vmem:[#allocation32_spill] sm:$0xff] %v10210_v18  ;;  %v8532_v18 = vld [vmem:[#allocation2 + $0x64] sm:$0xff]  }
 0x478   : > { %4897 = vmatmul.bf16.gmra.mxu1 %v8530_v47  ;;  %v5294_v47 = vshll.u32 %v7381_v1, 16 }
 0x47a   : > { %v3392_v36 = vpop.f32.mrf.mxu2  ;;  %v5296_v5 = vrot.slane %v5294_v47, 1 }
 0x47b   : > { %v10212_v53 = vadd.f32 %v3392_v36, %v3153_v57 }
 0x47d   : > { %10664 = vst [vmem:[#allocation33_spill] sm:$0xff] %v10212_v53  ;;  %v4860_v15 = vpop.f32.mrf.mxu1 }
 0x47e   : > { %v4023_v56 = vpop.f32.mrf.mxu3  ;;  %v4979_v34 = vadd.f32 %v4860_v15, %v9901_v29  ;;  %v8534_v15 = vld [vmem:[#allocation2 + $0x6c] sm:$0xff]  }
 0x47f   : > { %v10214_v43 = vadd.f32 %v4023_v56, %v3441_v42  ;;  %5530 = vmatmul.bf16.gmra.mxu2 %v5289_v40  ;;  %v5290_v42 = vshrl.u32 %v7380_v12, 16 }
 0x481   : > { %v5292_v25 = vor.u32 %v5290_v42, %v5288_v10 }
 0x482   : > { %v5491_v23 = vpop.f32.mrf.mxu2 }
 0x483   : > { %v5611_v41 = vadd.f32 %v5491_v23, %v4978_v54  ;;  %v5297_v56 = vsel %vm2047_vm1, %v5292_v25, %v5296_v5 }
 0x485   : > { %v4863_v3 = vpop.f32.mrf.mxu1  ;;  %v5663_v36 = vadd.f32 %v10221_v48, %v5611_v41 }
 0x486   : > { %v4980_v29 = vadd.f32 %v4863_v3, %v9913_v30 }
 0x487   : > { %v5711_v40 = vmax.f32 %v5663_v36, 0.0 }
 0x488   : > { %4902 = vmatmul.bf16.gmra.mxu1 %v8532_v18  ;;  %v7382_v18 = vld [vmem:[#allocation2 + $0x74] sm:$0xff] }
 0x489   : > { %v5302_v47 = vshll.u32 %v7382_v18, 16 }
 0x48a   : > { %v5493_v57 = vpop.f32.mrf.mxu2 }
 0x48b   : > { %v5612_v19 = vadd.f32 %v5493_v57, %v4979_v34  ;;  %v5298_v57 = vshrl.u32 %v7381_v1, 16  ;;  %v5304_v42 = vrot.slane %v5302_v47, 1 }
 0x48d   : > { %v5664_v4 = vadd.f32 %v10221_v48, %v5612_v19  ;;  %v4865_v32 = vpop.f32.mrf.mxu1  ;;  %v5300_v25 = vor.u32 %v5298_v57, %v5296_v5 }
 0x48e   : > { %v4981_v10 = vadd.f32 %v4865_v32, %v9925_v22  ;;  %v8536_v32 = vld [vmem:[#allocation2 + $0x74] sm:$0xff]  }
 0x48f   : > { %v5712_v23 = vmax.f32 %v5664_v4, 0.0  ;;  %5535 = vmatmul.bf16.gmra.mxu2 %v5297_v56 }
 0x491   : > { %v5759_v54 = vpack.c.bf16 %v5712_v23, %v5711_v40  ;;  %v5305_v40 = vsel %vm2047_vm1, %v5300_v25, %v5304_v42 }
 0x492   : > { %v5496_v53 = vpop.f32.mrf.mxu2 }
 0x493   : > { %5960 = vmatmul.bf16.vlgmr.msra.gmra.mxu3 %v5759_v54  ;;  %v5613_v41 = vadd.f32 %v5496_v53, %v4980_v29  ;;  %v7383_v54 = vld [vmem:[#allocation2 + $0x7c] sm:$0xff] }
 0x494   : > { %v5310_v29 = vshll.u32 %v7383_v54, 16 }
 0x495   : > { %v4868_v12 = vpop.f32.mrf.mxu1  ;;  %v5665_v36 = vadd.f32 %v10221_v48, %v5613_v41  ;;  %v5306_v41 = vshrl.u32 %v7382_v18, 16 }
 0x496   : > { %v4982_v22 = vadd.f32 %v4868_v12, %v9937_v59 }
 0x497   : > { %v5713_v30 = vmax.f32 %v5665_v36, 0.0  ;;  %v5308_v36 = vor.u32 %v5306_v41, %v5304_v42 }
 0x498   : > { %4907 = vmatmul.bf16.gmra.mxu1 %v8534_v15 }
 0x49a   : > { %v5498_v34 = vpop.f32.mrf.mxu2 }
 0x49b   : > { %v5614_v19 = vadd.f32 %v5498_v34, %v4981_v10  ;;  %v5312_v10 = vrot.slane %v5310_v29, 1 }
 0x49d   : > { %v5666_v4 = vadd.f32 %v10221_v48, %v5614_v19  ;;  %v4870_v56 = vpop.f32.mrf.mxu1 }
 0x49e   : > { %v4983_v5 = vadd.f32 %v4870_v56, %v9949_v52  ;;  %v8538_v56 = vld [vmem:[#allocation2 + $0x7c] sm:$0xff]  }
 0x49f   : > { %v5714_v3 = vmax.f32 %v5666_v4, 0.0  ;;  %5540 = vmatmul.bf16.gmra.mxu2 %v5305_v40  ;;  %v5313_v4 = vsel %vm2047_vm1, %v5308_v36, %v5312_v10 }
 0x4a1   : > { %v5760_v23 = vpack.c.bf16 %v5714_v3, %v5713_v30  ;;  %v7384_v3 = vld [vmem:[#allocation2 + $0x84] sm:$0xff] }
 0x4a2   : > { %v5501_v53 = vpop.f32.mrf.mxu2 }
 0x4a3   : > { %5965 = vmatmul.bf16.gmra.mxu3 %v5760_v23  ;;  %v5615_v15 = vadd.f32 %v5501_v53, %v4982_v22  ;;  %v5318_v23 = vshll.u32 %v7384_v3, 16 }
 0x4a5   : > { %v4873_v1 = vpop.f32.mrf.mxu1  ;;  %v5667_v34 = vadd.f32 %v10221_v48, %v5615_v15  ;;  %v5320_v29 = vrot.slane %v5318_v23, 1 }
 0x4a6   : > { %v4984_v52 = vadd.f32 %v4873_v1, %v9961_v46 }
 0x4a7   : > { %v5715_v59 = vmax.f32 %v5667_v34, 0.0 }
 0x4a8   : > { %4912 = vmatmul.bf16.gmra.mxu1 %v8536_v32  ;;  %v5314_v32 = vshrl.u32 %v7383_v54, 16 }
 0x4aa   : > { %v5503_v47 = vpop.f32.mrf.mxu2 }
 0x4ab   : > { %v5616_v57 = vadd.f32 %v5503_v47, %v4983_v5  ;;  %v5316_v47 = vor.u32 %v5314_v32, %v5312_v10 }
 0x4ad   : > { %v5668_v19 = vadd.f32 %v10221_v48, %v5616_v57  ;;  %v4875_v25 = vpop.f32.mrf.mxu1  ;;  %v5321_v57 = vsel %vm2047_vm1, %v5316_v47, %v5320_v29  ;;  %v7386_v47 = vld [vmem:[#allocation2 + $0x94] sm:$0xff] }
 0x4ae   : > { %v4985_v42 = vadd.f32 %v4875_v25, %v9973_v16  ;;  %v8540_v25 = vld [vmem:[#allocation2 + $0x84] sm:$0xff]  }
 0x4af   : > { %v5716_v12 = vmax.f32 %v5668_v19, 0.0  ;;  %5545 = vmatmul.bf16.gmra.mxu2 %v5313_v4  ;;  %v7385_v4 = vld [vmem:[#allocation2 + $0x8c] sm:$0xff] }
 0x4b1   : > { %v5761_v40 = vpack.c.bf16 %v5716_v12, %v5715_v59  ;;  %v5326_v59 = vshll.u32 %v7385_v4, 16 }
 0x4b2   : > { %v5506_v30 = vpop.f32.mrf.mxu2 }
 0x4b3   : > { %5970 = vmatmul.bf16.gmra.mxu3 %v5761_v40  ;;  %v5617_v53 = vadd.f32 %v5506_v30, %v4984_v52  ;;  %v5322_v30 = vshrl.u32 %v7384_v3, 16  ;;  %v5328_v52 = vrot.slane %v5326_v59, 1 }
 0x4b5   : > { %v4878_v18 = vpop.f32.mrf.mxu1  ;;  %v5669_v15 = vadd.f32 %v10221_v48, %v5617_v53  ;;  %v5324_v53 = vor.u32 %v5322_v30, %v5320_v29 }
 0x4b6   : > { %v4986_v16 = vadd.f32 %v4878_v18, %v9985_v61 }
 0x4b7   : > { %v5717_v46 = vmax.f32 %v5669_v15, 0.0  ;;  %v5329_v32 = vsel %vm2047_vm1, %v5324_v53, %v5328_v52 }
 0x4b8   : > { %4917 = vmatmul.bf16.gmra.mxu1 %v8538_v56 }
 0x4ba   : > { %v5508_v22 = vpop.f32.mrf.mxu2 }
 0x4bb   : > { %v5618_v5 = vadd.f32 %v5508_v22, %v4985_v42 }
 0x4bd   : > { %v5670_v41 = vadd.f32 %v10221_v48, %v5618_v5  ;;  %v4880_v34 = vpop.f32.mrf.mxu1 }
 0x4be   : > { %v4987_v10 = vadd.f32 %v4880_v34, %v9997_v2  ;;  %v5334_v34 = vshll.u32 %v7386_v47, 16 }
 0x4bf   : > { %v5718_v1 = vmax.f32 %v5670_v41, 0.0  ;;  %5550 = vmatmul.bf16.gmra.mxu2 %v5321_v57  ;;  %v8542_v41 = vld [vmem:[#allocation2 + $0x8c] sm:$0xff]  }
 0x4c1   : > { %v5762_v36 = vpack.c.bf16 %v5718_v1, %v5717_v46  ;;  %v5330_v1 = vshrl.u32 %v7385_v4, 16 }
 0x4c2   : > { %v5511_v19 = vpop.f32.mrf.mxu2 }
 0x4c3   : > { %5975 = vmatmul.bf16.gmra.mxu3 %v5762_v36  ;;  %v5619_v12 = vadd.f32 %v5511_v19, %v4986_v16  ;;  %v5336_v36 = vrot.slane %v5334_v34, 1 }
 0x4c5   : > { %v4883_v54 = vpop.f32.mrf.mxu1  ;;  %v5671_v56 = vadd.f32 %v10221_v48, %v5619_v12 }
 0x4c6   : > { %v4988_v2 = vadd.f32 %v4883_v54, %v10009_v26 }
 0x4c7   : > { %v5719_v61 = vmax.f32 %v5671_v56, 0.0  ;;  %v7387_v56 = vld [vmem:[#allocation2 + $0x9c] sm:$0xff] }
 0x4c8   : > { %4922 = vmatmul.bf16.gmra.mxu1 %v8540_v25  ;;  %v5332_v25 = vor.u32 %v5330_v1, %v5328_v52  ;;  %v5342_v53 = vshll.u32 %v7387_v56, 16  ;;  %v8546_v1 = vld [vmem:[#allocation2 + $0x9c] sm:$0xff]  }
 0x4ca   : > { %v5513_v40 = vpop.f32.mrf.mxu2 }
 0x4cb   : > { %v5620_v23 = vadd.f32 %v5513_v40, %v4987_v10  ;;  %v5337_v10 = vsel %vm2047_vm1, %v5332_v25, %v5336_v36 }
 0x4cd   : > { %v5672_v42 = vadd.f32 %v10221_v48, %v5620_v23  ;;  %v4885_v22 = vpop.f32.mrf.mxu1  ;;  %v8544_v23 = vld [vmem:[#allocation2 + $0x94] sm:$0xff]  }
 0x4ce   : > { %v4989_v29 = vadd.f32 %v4885_v22, %v10023_v27 }
 0x4cf   : > { %v5720_v18 = vmax.f32 %v5672_v42, 0.0  ;;  %5555 = vmatmul.bf16.gmra.mxu2 %v5329_v32  ;;  %v5338_v32 = vshrl.u32 %v7386_v47, 16 }
 0x4d1   : > { %v5763_v15 = vpack.c.bf16 %v5720_v18, %v5719_v61  ;;  %v5344_v61 = vrot.slane %v5342_v53, 1 }
 0x4d2   : > { %v5516_v5 = vpop.f32.mrf.mxu2 }
 0x4d3   : > { %5980 = vmatmul.bf16.gmra.mxu3 %v5763_v15  ;;  %v5621_v57 = vadd.f32 %v5516_v5, %v4988_v2  ;;  %v5340_v5 = vor.u32 %v5338_v32, %v5336_v36 }
 0x4d5   : > { %v4888_v3 = vpop.f32.mrf.mxu1  ;;  %v5673_v19 = vadd.f32 %v10221_v48, %v5621_v57  ;;  %v5345_v34 = vsel %vm2047_vm1, %v5340_v5, %v5344_v61 }
 0x4d6   : > { %v4990_v27 = vadd.f32 %v4888_v3, %v10038_v33 }
 0x4d7   : > { %v5721_v26 = vmax.f32 %v5673_v19, 0.0 }
 0x4d8   : > { %4927 = vmatmul.bf16.gmra.mxu1 %v8542_v41 }
 0x4da   : > { %v5518_v46 = vpop.f32.mrf.mxu2 }
 0x4db   : > { %v5622_v16 = vadd.f32 %v5518_v46, %v4989_v29  ;;  %v7388_v46 = vld [vmem:[#allocation2 + $0xa4] sm:$0xff] }
 0x4dc   : > { %v5350_v19 = vshll.u32 %v7388_v46, 16 }
 0x4dd   : > { %v5674_v59 = vadd.f32 %v10221_v48, %v5622_v16  ;;  %v4890_v12 = vpop.f32.mrf.mxu1 }
 0x4de   : > { %v4991_v52 = vadd.f32 %v4890_v12, %v10052_v63  ;;  %v5352_v12 = vrot.slane %v5350_v19, 1 }
 0x4df   : > { %v5722_v54 = vmax.f32 %v5674_v59, 0.0  ;;  %5560 = vmatmul.bf16.gmra.mxu2 %v5337_v10  ;;  %v5346_v59 = vshrl.u32 %v7387_v56, 16 }
 0x4e1   : > { %v5764_v40 = vpack.c.bf16 %v5722_v54, %v5721_v26  ;;  %v5348_v54 = vor.u32 %v5346_v59, %v5344_v61 }
 0x4e2   : > { %v5521_v30 = vpop.f32.mrf.mxu2 }
 0x4e3   : > { %5985 = vmatmul.bf16.gmra.mxu3 %v5764_v40  ;;  %v5623_v42 = vadd.f32 %v5521_v30, %v4990_v27  ;;  %v5353_v27 = vsel %vm2047_vm1, %v5348_v54, %v5352_v12  ;;  %v7141_v54 = vld [vmem:[%s9168_s13 + $0xc] sm:$0xf] }
 0x4e5   : > { %v4893_v4 = vpop.f32.mrf.mxu1  ;;  %v5675_v18 = vadd.f32 %v10221_v48, %v5623_v42  ;;  %v7389_v42 = vld [vmem:[#allocation2 + $0xac] sm:$0xff] }
 0x4e6   : > { %v4992_v63 = vadd.f32 %v4893_v4, %v10064_v39 }
 0x4e7   : > { %v5723_v33 = vmax.f32 %v5675_v18, 0.0 }
 0x4e8   : > { %4932 = vmatmul.bf16.gmra.mxu1 %v8544_v23 }
 0x4ea   : > { %v5523_v22 = vpop.f32.mrf.mxu2 }
 0x4eb   : > { %v5624_v15 = vadd.f32 %v5523_v22, %v4991_v52  ;;  %v8548_v52 = vld [vmem:[#allocation2 + $0xa4] sm:$0xff]   ;;  %v5358_v22 = vshll.u32 %v7389_v42, 16 }
 0x4ed   : > { %v5676_v2 = vadd.f32 %v10221_v48, %v5624_v15  ;;  %v4895_v41 = vpop.f32.mrf.mxu1  ;;  %v5354_v15 = vshrl.u32 %v7388_v46, 16  ;;  %v5360_v5 = vrot.slane %v5358_v22, 1 }
 0x4ee   : > { %v4993_v36 = vadd.f32 %v4895_v41, %v10078_v44 }
 0x4ef   : > { %v5724_v3 = vmax.f32 %v5676_v2, 0.0  ;;  %5565 = vmatmul.bf16.gmra.mxu2 %v5345_v34  ;;  %v5356_v34 = vor.u32 %v5354_v15, %v5352_v12 }
 0x4f1   : > { %v5765_v57 = vpack.c.bf16 %v5724_v3, %v5723_v33 }
 0x4f2   : > { %v5526_v29 = vpop.f32.mrf.mxu2 }
 0x4f3   : > { %5990 = vmatmul.bf16.gmra.mxu3 %v5765_v57  ;;  %v5625_v16 = vadd.f32 %v5526_v29, %v4992_v63  ;;  %v10266_v57 = vpop.f32.mrf.mxu0  ;;  %v5361_v29 = vsel %vm2047_vm1, %v5356_v34, %v5360_v5 }
 0x4f5   : > { %v4898_v47 = vpop.f32.mrf.mxu1  ;;  %v5677_v10 = vadd.f32 %v10221_v48, %v5625_v16 }
 0x4f6   : > { %v4994_v44 = vadd.f32 %v4898_v47, %v10085_v21  ;;  %v10268_v21 = vpop.f32.mrf.mxu3 }
 0x4f7   : > { %v5725_v39 = vmax.f32 %v5677_v10, 0.0  ;;  %v10275_v10 = vld [vmem:[%s10550_s6] ss:$0 sm:$0xff] }
 0x4f8   : > { %4937 = vmatmul.bf16.gmra.mxu1 %v8546_v1  ;;  %v7390_v1 = vld [vmem:[#allocation2 + $0xb4] sm:$0xff] }
 0x4f9   : > { %v5366_v59 = vshll.u32 %v7390_v1, 16 }
 0x4fa   : > { %v5528_v25 = vpop.f32.mrf.mxu2 }
 0x4fb   : > { %v5626_v26 = vadd.f32 %v5528_v25, %v4993_v36  ;;  %v8550_v25 = vld [vmem:[#allocation2 + $0xac] sm:$0xff]  }
 0x4fd   : > { %v5678_v40 = vadd.f32 %v10221_v48, %v5626_v26  ;;  %v4900_v30 = vpop.f32.mrf.mxu1  ;;  %v10277_v26 = vpop.f32.mrf.mxu0 }
 0x4fe   : > { %v4995_v61 = vadd.f32 %v4900_v30, %v10100_v49 }
 0x4ff   : > { %v5726_v4 = vmax.f32 %v5678_v40, 0.0  ;;  %5570 = vmatmul.bf16.gmra.mxu2 %v5353_v27  ;;  %v8239_v27 = vld [vmem:[%s9168_s13 + $0x10] sm:$0xff]  }
 0x501   : > { %v5766_v23 = vpack.c.bf16 %v5726_v4, %v5725_v39  ;;  %v5362_v39 = vshrl.u32 %v7389_v42, 16 }
 0x502   : > { %v5531_v53 = vpop.f32.mrf.mxu2 }
 0x503   : > { %5995 = vmatmul.bf16.gmra.mxu3 %v5766_v23  ;;  %v5627_v32 = vadd.f32 %v5531_v53, %v4994_v44  ;;  %v5852_v23 = vunpack.c.l.bf16 %v7141_v54 }
 0x505   : > { %v4903_v56 = vpop.f32.mrf.mxu1  ;;  %v5679_v2 = vadd.f32 %v10221_v48, %v5627_v32  ;;  %v7823_v32 = vunpack.c.l.bf16 %v8239_v27 }
 0x506   : > { %v4996_v19 = vadd.f32 %v4903_v56, %v10107_v20  ;;  %v5368_v20 = vrot.slane %v5366_v59, 1  ;;  %v5364_v56 = vor.u32 %v5362_v39, %v5360_v5  ;;  %v7391_v5 = vld [vmem:[#allocation2 + $0xbc] sm:$0xff] }
 0x507   : > { %v5727_v63 = vmax.f32 %v5679_v2, 0.0 }
 0x508   : > { %4942 = vmatmul.bf16.gmra.mxu1 %v8548_v52 }
 0x50a   : > { %v5533_v18 = vpop.f32.mrf.mxu2 }
 0x50b   : > { %v5628_v41 = vadd.f32 %v5533_v18, %v4995_v61  ;;  %v5369_v18 = vsel %vm2047_vm1, %v5364_v56, %v5368_v20 }
 0x50d   : > { %v5680_v33 = vadd.f32 %v10221_v48, %v5628_v41  ;;  %v4905_v3 = vpop.f32.mrf.mxu1 }
 0x50e   : > { %v4997_v40 = vadd.f32 %v4905_v3, %v10118_v7 }
 0x50f   : > { %v5728_v47 = vmax.f32 %v5680_v33, 0.0  ;;  %5575 = vmatmul.bf16.gmra.mxu2 %v5361_v29  ;;  %v10288_v33 = vpop.f32.mrf.mxu0 }
 0x511   : > { %v5767_v49 = vpack.c.bf16 %v5728_v47, %v5727_v63 }
 0x512   : > { %v5536_v46 = vpop.f32.mrf.mxu2 }
 0x513   : > { %6000 = vmatmul.bf16.gmra.mxu3 %v5767_v49  ;;  %v5629_v12 = vadd.f32 %v5536_v46, %v4996_v19 }
 0x515   : > { %v4908_v16 = vpop.f32.mrf.mxu1  ;;  %v5681_v4 = vadd.f32 %v10221_v48, %v5629_v12 }
 0x516   : > { %v5961_v36 = vpop.f32.mrf.mxu3  ;;  %v4998_v47 = vadd.f32 %v4908_v16, %v10125_v8  ;;  %v7824_v8 = vunpack.c.h.bf16 %v8239_v27 }
 0x517   : > { %v5962_v53 = vadd.f32 %v10275_v10, %v5961_v36  ;;  %v5729_v7 = vmax.f32 %v5681_v4, 0.0  ;;  %v8552_v36 = vld [vmem:[#allocation2 + $0xb4] sm:$0xff]  }
 0x518   : > { %4947 = vmatmul.bf16.gmra.mxu1 %v8550_v25  ;;  %v5374_v25 = vshll.u32 %v7391_v5, 16 }
 0x519   : > { %v6081_v15 = vadd.f32 %v5962_v53, %v5852_v23  ;;  %v10298_v53 = vpop.f32.mrf.mxu0 }
 0x51a   : > { %v5538_v30 = vpop.f32.mrf.mxu2  ;;  %v5376_v39 = vrot.slane %v5374_v25, 1 }
 0x51b   : > { %v5630_v44 = vadd.f32 %v5538_v30, %v4997_v40  ;;  %v6129_v29 = vmax.f32 %v6081_v15, 0.0  ;;  %v8240_v40 = vld [vmem:[%s9168_s13 + $0x18] sm:$0xff]   ;;  %v5370_v30 = vshrl.u32 %v7390_v1, 16 }
 0x51d   : > { %v5682_v52 = vadd.f32 %v10221_v48, %v5630_v44  ;;  %v4910_v22 = vpop.f32.mrf.mxu1  ;;  %v5372_v44 = vor.u32 %v5370_v30, %v5368_v20 }
 0x51e   : > { %v5963_v61 = vpop.f32.mrf.mxu3  ;;  %v4999_v12 = vadd.f32 %v4910_v22, %v10136_v14 }
 0x51f   : > { %v5730_v2 = vmax.f32 %v5682_v52, 0.0  ;;  %v5964_v42 = vadd.f32 %v10275_v10, %v5963_v61  ;;  %5580 = vmatmul.bf16.gmra.mxu2 %v5369_v18  ;;  %v5377_v14 = vsel %vm2047_vm1, %v5372_v44, %v5376_v39 }
 0x521   : > { %v6082_v41 = vadd.f32 %v7823_v32, %v5964_v42  ;;  %v5768_v34 = vpack.c.bf16 %v5730_v2, %v5729_v7  ;;  %v7827_v32 = vunpack.c.l.bf16 %v8240_v40  ;;  %v10303_v42 = vld [vmem:[#allocation2 + $0xc4] sm:$0xff] }
 0x522   : > { %v5541_v3 = vpop.f32.mrf.mxu2 }
 0x523   : > { %v6130_v63 = vmax.f32 %v6082_v41, 0.0  ;;  %6005 = vmatmul.bf16.gmra.mxu3 %v5768_v34  ;;  %v5631_v59 = vadd.f32 %v5541_v3, %v4998_v47 }
 0x525   : > { %v7916_v49 = vpack.c.bf16 %v6130_v63, %v6129_v29  ;;  %v4913_v46 = vpop.f32.mrf.mxu1  ;;  %v5683_v4 = vadd.f32 %v10221_v48, %v5631_v59  ;;  %v10306_v63 = vpop.f32.mrf.mxu0 }
 0x526   : > { %v5966_v19 = vpop.f32.mrf.mxu3  ;;  %v5000_v34 = vadd.f32 %v4913_v46, %v10143_v37  ;;  %v7828_v37 = vunpack.c.h.bf16 %v8240_v40 }
 0x527   : > { %7917 = vst [vmem:[%s10291_s17] sm:$0xff] %v7916_v49   ;;  %v5967_v16 = vadd.f32 %v10275_v10, %v5966_v19  ;;  %v5731_v22 = vmax.f32 %v5683_v4, 0.0  ;;  %v8554_v49 = vld [vmem:[#allocation2 + $0xbc] sm:$0xff]   ;;  %v5382_v19 = vshll.u32 %v10303_v42, 16 }
 0x528   : > { %4952 = vmatmul.bf16.gmra.mxu1 %v8552_v36 }
 0x529   : > { %v6083_v18 = vadd.f32 %v7824_v8, %v5967_v16  ;;  %v5384_v30 = vrot.slane %v5382_v19, 1 }
 0x52a   : > { %v5543_v54 = vpop.f32.mrf.mxu2 }
 0x52b   : > { %v5632_v23 = vadd.f32 %v5543_v54, %v4999_v12  ;;  %v6131_v20 = vmax.f32 %v6083_v18, 0.0  ;;  %v8241_v12 = vld [vmem:[%s9168_s13 + $0x20] sm:$0xff]   ;;  %v5378_v54 = vshrl.u32 %v7391_v5, 16 }
 0x52d   : > { %v5684_v56 = vadd.f32 %v10221_v48, %v5632_v23  ;;  %v4915_v52 = vpop.f32.mrf.mxu1  ;;  %v5380_v16 = vor.u32 %v5378_v54, %v5376_v39  ;;  %v7393_v39 = vld [vmem:[#allocation2 + $0xcc] sm:$0xff]  ;;  %v5386_v54 = vshrl.u32 %v10303_v42, 16 }
 0x52e   : > { %v5968_v61 = vpop.f32.mrf.mxu3  ;;  %v5001_v25 = vadd.f32 %v4915_v52, %v10154_v45 }
 0x52f   : > { %v5732_v1 = vmax.f32 %v5684_v56, 0.0  ;;  %v5969_v7 = vadd.f32 %v10275_v10, %v5968_v61  ;;  %5585 = vmatmul.bf16.gmra.mxu2 %v5377_v14  ;;  %v7831_v56 = vunpack.c.l.bf16 %v8241_v12  ;;  %v5385_v61 = vsel %vm2047_vm1, %v5380_v16, %v5384_v30 }
 0x531   : > { %v6084_v27 = vadd.f32 %v7827_v32, %v5969_v7  ;;  %v5769_v15 = vpack.c.bf16 %v5732_v1, %v5731_v22  ;;  %v10317_v22 = vpop.f32.mrf.mxu0  ;;  %v4713_v7 = vadd.f32 %v10266_v57, %v10028_v58 }
 0x532   : > { %v5546_v2 = vpop.f32.mrf.mxu2 }
 0x533   : > { %v6132_v41 = vmax.f32 %v6084_v27, 0.0  ;;  %6010 = vmatmul.bf16.gmra.mxu3 %v5769_v15  ;;  %v5633_v36 = vadd.f32 %v5546_v2, %v5000_v34  ;;  %v4053_v2 = vadd.f32 %v10040_v60, %v10020_v13  ;;  %v7832_v60 = vunpack.c.h.bf16 %v8241_v12 }
 0x535   : > { %v7921_v3 = vpack.c.bf16 %v6132_v41, %v6131_v20  ;;  %v4918_v29 = vpop.f32.mrf.mxu1  ;;  %v5685_v4 = vadd.f32 %v10221_v48, %v5633_v36  ;;  %v4714_v19 = vadd.f32 %v10277_v26, %v4053_v2 }
 0x536   : > { %v5971_v47 = vpop.f32.mrf.mxu3  ;;  %v5002_v20 = vadd.f32 %v4918_v29, %v4713_v7  ;;  %v5394_v7 = vshrl.u32 %v7393_v39, 16 }
 0x537   : > { %8262 = vst [vmem:[%s10291_s17 + $0x8] sm:$0xff] %v7921_v3   ;;  %v5972_v46 = vadd.f32 %v10275_v10, %v5971_v47  ;;  %v5733_v14 = vmax.f32 %v5685_v4, 0.0  ;;  %v8556_v47 = vld [vmem:[#allocation2 + $0xc4] sm:$0xff]  }
 0x538   : > { %4957 = vmatmul.bf16.gmra.mxu1 %v8554_v49  ;;  %v5390_v49 = vshll.u32 %v7393_v39, 16 }
 0x539   : > { %v6085_v45 = vadd.f32 %v7828_v37, %v5972_v46  ;;  %v10325_v58 = vpop.f32.mrf.mxu0  ;;  %v5388_v46 = vor.u32 %v5386_v54, %v5384_v30  ;;  %v4715_v30 = vadd.f32 %v10288_v33, %v10057_v38 }
 0x53a   : > { %v5548_v59 = vpop.f32.mrf.mxu2  ;;  %v5392_v4 = vrot.slane %v5390_v49, 1 }
 0x53b   : > { %v5634_v8 = vadd.f32 %v5548_v59, %v5001_v25  ;;  %v6133_v27 = vmax.f32 %v6085_v45, 0.0  ;;  %v8242_v59 = vld [vmem:[%s9168_s13 + $0x28] sm:$0xff]  }
 0x53c   : > { %v7835_v16 = vunpack.c.l.bf16 %v8242_v59  ;;  %v5396_v33 = vor.u32 %v5394_v7, %v5392_v4  ;;  %v7836_v54 = vunpack.c.h.bf16 %v8242_v59  ;;  %v7820_v59 = vunpack.c.h.b16 %v10176_v0 }
 0x53d   : > { %v5686_v23 = vadd.f32 %v10221_v48, %v5634_v8  ;;  %v4920_v44 = vpop.f32.mrf.mxu1 }
 0x53e   : > { %v5973_v32 = vpop.f32.mrf.mxu3  ;;  %v5003_v25 = vadd.f32 %v4920_v44, %v4714_v19  ;;  %v5393_v44 = vsel %vm2047_vm1, %v5388_v46, %v5392_v4 }
 0x53f   : > { %v5734_v52 = vmax.f32 %v5686_v23, 0.0  ;;  %v5974_v5 = vadd.f32 %v10275_v10, %v5973_v32  ;;  %5590 = vmatmul.bf16.gmra.mxu2 %v5385_v61 }
 0x541   : > { %v6086_v40 = vadd.f32 %v7831_v56, %v5974_v5  ;;  %v5770_v18 = vpack.c.bf16 %v5734_v52, %v5733_v14  ;;  %v10334_v14 = vld [vmem:[#allocation2 + $0xd4] sm:$0xff] }
 0x542   : > { %v5551_v1 = vpop.f32.mrf.mxu2 }
 0x543   : > { %v6134_v15 = vmax.f32 %v6086_v40, 0.0  ;;  %6015 = vmatmul.bf16.gmra.mxu3 %v5770_v18  ;;  %v5635_v36 = vadd.f32 %v5551_v1, %v5002_v20  ;;  %v10338_v18 = vpop.f32.mrf.mxu0  ;;  %v8557_v1 = vld [vmem:[#allocation2 + $0xcc] sm:$0xff]  }
 0x545   : > { %v7926_v41 = vpack.c.bf16 %v6134_v15, %v6133_v27  ;;  %v4923_v34 = vpop.f32.mrf.mxu1  ;;  %v5687_v13 = vadd.f32 %v10221_v48, %v5635_v36  ;;  %v5398_v27 = vshll.u32 %v10334_v14, 16  ;;  %v4055_v15 = vadd.f32 %v10066_v31, %v10049_v62  ;;  %v5074_v36 = vld [vmem:[#allocation2 + $0xdc] sm:$0x1] }
 0x546   : > { %v5976_v3 = vpop.f32.mrf.mxu3  ;;  %v5004_v2 = vadd.f32 %v4923_v34, %v4715_v30 }
 0x547   : > { %8263 = vst [vmem:[%s10291_s17 + $0x10] sm:$0xff] %v7926_v41   ;;  %v5977_v29 = vadd.f32 %v10275_v10, %v5976_v3  ;;  %v5735_v56 = vmax.f32 %v5687_v13, 0.0  ;;  %v5400_v49 = vrot.slane %v5398_v27, 1  ;;  %v5188_v13 = vunpack.c.l.b16 %v5074_v36 }
 0x548   : > { %4962 = vmatmul.bf16.gmra.mxu1 %v8556_v47  ;;  %v4716_v47 = vadd.f32 %v10298_v53, %v4055_v15 }
 0x549   : > { %v6087_v32 = vadd.f32 %v7832_v60, %v5977_v29  ;;  %v5401_v34 = vsel %vm2047_vm1, %v5396_v33, %v5400_v49 }
 0x54a   : > { %v5553_v57 = vpop.f32.mrf.mxu2 }
 0x54b   : > { %v5636_v37 = vadd.f32 %v5553_v57, %v5003_v25  ;;  %v6135_v5 = vmax.f32 %v6087_v32, 0.0  ;;  %v8243_v25 = vld [vmem:[%s9168_s13 + $0x30] sm:$0xff]  }
 0x54c   : > { %v7839_v29 = vunpack.c.l.bf16 %v8243_v25 }
 0x54d   : > { %v5688_v26 = vadd.f32 %v10221_v48, %v5636_v37  ;;  %v4925_v8 = vpop.f32.mrf.mxu1  ;;  %v10350_v37 = vpop.f32.mrf.mxu0 }
 0x54e   : > { %v5978_v23 = vpop.f32.mrf.mxu3  ;;  %v5005_v19 = vadd.f32 %v4925_v8, %v4716_v47 }
 0x54f   : > { %v5736_v61 = vmax.f32 %v5688_v26, 0.0  ;;  %v5979_v42 = vadd.f32 %v10275_v10, %v5978_v23  ;;  %5595 = vmatmul.bf16.gmra.mxu2 %v5393_v44  ;;  %v5213_v23 = vpack.c.b16 %v5188_v13, %v5188_v13 }
 0x551   : > { %v6088_v12 = vadd.f32 %v7835_v16, %v5979_v42  ;;  %v5771_v45 = vpack.c.bf16 %v5736_v61, %v5735_v56  ;;  %v4717_v61 = vadd.f32 %v10306_v63, %v10081_v9  ;;  %v5406_v30 = vshll.u32 %v5213_v23, 16 }
 0x552   : > { %v5556_v52 = vpop.f32.mrf.mxu2 }
 0x553   : > { %v6136_v40 = vmax.f32 %v6088_v12, 0.0  ;;  %6020 = vmatmul.bf16.gmra.mxu3 %v5771_v45  ;;  %v5637_v38 = vadd.f32 %v5556_v52, %v5004_v2  ;;  %v4776_v45 = vpack.c.b16 %v10186_v28, %v7820_v59  ;;  %v5402_v52 = vshrl.u32 %v10334_v14, 16 }
 0x554   : > { %v5408_v28 = vrot.slane %v5406_v30, 1 }
 0x555   : > { %v7931_v20 = vpack.c.bf16 %v6136_v40, %v6135_v5  ;;  %v4928_v41 = vpop.f32.mrf.mxu1  ;;  %v5689_v57 = vadd.f32 %v10221_v48, %v5637_v38  ;;  %v10665_v5 = vld [vmem:[#allocation42_spill] sm:$0xff]  ;;  %v10362_v63 = vpop.f32.mrf.mxu0  ;;  %v5404_v2 = vor.u32 %v5402_v52, %v5400_v49  ;;  %v7840_v38 = vunpack.c.h.bf16 %v8243_v25 }
 0x556   : > { %v5981_v3 = vpop.f32.mrf.mxu3  ;;  %v4057_v0 = vadd.f32 %v10665_v5, %v10075_v51  ;;  %v5006_v40 = vadd.f32 %v4928_v41, %v4717_v61 }
 0x557   : > { %8264 = vst [vmem:[%s10291_s17 + $0x18] sm:$0xff] %v7931_v20   ;;  %v5982_v62 = vadd.f32 %v10275_v10, %v5981_v3  ;;  %v5737_v46 = vmax.f32 %v5689_v57, 0.0  ;;  %v8244_v3 = vld [vmem:[%s9168_s13 + $0x38] sm:$0xff]   ;;  %v5409_v33 = vsel %vm2047_vm1, %v5404_v2, %v5408_v28  ;;  %v10667_v28 = vld [vmem:[#allocation52_spill] sm:$0xff] }
 0x558   : > { %4967 = vmatmul.bf16.gmra.mxu1 %v8557_v1  ;;  %v4718_v15 = vadd.f32 %v10317_v22, %v4057_v0  ;;  %v7843_v36 = vunpack.c.l.bf16 %v8244_v3 }
 0x559   : > { %v6089_v26 = vadd.f32 %v7836_v54, %v5982_v62 }
 0x55a   : > { %v5558_v39 = vpop.f32.mrf.mxu2 }
 0x55b   : > { %v5638_v31 = vadd.f32 %v5558_v39, %v5005_v19  ;;  %v6137_v42 = vmax.f32 %v6089_v26, 0.0 }
 0x55d   : > { %v5690_v53 = vadd.f32 %v10221_v48, %v5638_v31  ;;  %v4930_v60 = vpop.f32.mrf.mxu1  ;;  %v10370_v25 = vpop.f32.mrf.mxu0 }
 0x55e   : > { %v5983_v4 = vpop.f32.mrf.mxu3  ;;  %v5007_v20 = vadd.f32 %v4930_v60, %v4718_v15 }
 0x55f   : > { %v5738_v8 = vmax.f32 %v5690_v53, 0.0  ;;  %v5984_v16 = vadd.f32 %v10275_v10, %v5983_v4  ;;  %5600 = vmatmul.bf16.gmra.mxu2 %v5401_v34  ;;  %v4719_v53 = vadd.f32 %v10325_v58, %v10104_v6  ;;  %v4059_v4 = vadd.f32 %v10109_v35, %v10097_v11 }
 0x560   : > { %v7844_v6 = vunpack.c.h.bf16 %v8244_v3 }
 0x561   : > { %v6090_v44 = vadd.f32 %v7839_v29, %v5984_v16  ;;  %v5772_v56 = vpack.c.bf16 %v5738_v8, %v5737_v46  ;;  %v4720_v59 = vadd.f32 %v10338_v18, %v4059_v4 }
 0x562   : > { %v5561_v32 = vpop.f32.mrf.mxu2 }
 0x563   : > { %v6138_v12 = vmax.f32 %v6090_v44, 0.0  ;;  %6025 = vmatmul.bf16.gmra.mxu3 %v5772_v56  ;;  %v5639_v9 = vadd.f32 %v5561_v32, %v5006_v40  ;;  %v8245_v32 = vld [vmem:[%s9168_s13 + $0x40] sm:$0xff]  }
 0x565   : > { %v7936_v1 = vpack.c.bf16 %v6138_v12, %v6137_v42  ;;  %v4933_v7 = vpop.f32.mrf.mxu1  ;;  %v5691_v47 = vadd.f32 %v10221_v48, %v5639_v9  ;;  %v4656_v12 = vpop.f32.mrf.mxu0 }
 0x566   : > { %v5986_v27 = vpop.f32.mrf.mxu3  ;;  %v5008_v46 = vadd.f32 %v4933_v7, %v4719_v53 }
 0x567   : > { %8265 = vst [vmem:[%s10291_s17 + $0x20] sm:$0xff] %v7936_v1   ;;  %v5987_v51 = vadd.f32 %v10275_v10, %v5986_v27  ;;  %v5739_v57 = vmax.f32 %v5691_v47, 0.0  ;;  %v10666_v27 = vld [vmem:[#allocation17_spill] sm:$0xff] }
 0x568   : > { %4972 = vmatmul.bf16.gmra.mxu1 %v4776_v45  ;;  %v7847_v45 = vunpack.c.l.bf16 %v8245_v32  ;;  %v4721_v15 = vadd.f32 %v10350_v37, %v10666_v27 }
 0x569   : > { %v6091_v54 = vadd.f32 %v7840_v38, %v5987_v51 }
 0x56a   : > { %v5563_v14 = vpop.f32.mrf.mxu2 }
 0x56b   : > { %v5640_v41 = vadd.f32 %v5563_v14, %v5007_v20  ;;  %v6139_v60 = vmax.f32 %v6091_v54, 0.0  ;;  %v10668_v20 = vld [vmem:[#allocation18_spill] sm:$0xff] }
 0x56c   : > { %v4061_v14 = vadd.f32 %v10668_v20, %v10667_v28 }
 0x56d   : > { %v5692_v22 = vadd.f32 %v10221_v48, %v5640_v41  ;;  %v4935_v19 = vpop.f32.mrf.mxu1  ;;  %v4659_v51 = vpop.f32.mrf.mxu0 }
 0x56e   : > { %v5988_v39 = vpop.f32.mrf.mxu3  ;;  %v5009_v44 = vadd.f32 %v4935_v19, %v4720_v59 }
 0x56f   : > { %v5740_v49 = vmax.f32 %v5692_v22, 0.0  ;;  %v5989_v62 = vadd.f32 %v10275_v10, %v5988_v39  ;;  %5605 = vmatmul.bf16.gmra.mxu2 %v5409_v33  ;;  %v4722_v33 = vadd.f32 %v10362_v63, %v4061_v14  ;;  %v8246_v39 = vld [vmem:[%s9168_s13 + $0x48] sm:$0xff]  }
 0x571   : > { %v6092_v31 = vadd.f32 %v7843_v36, %v5989_v62  ;;  %v5773_v34 = vpack.c.bf16 %v5740_v49, %v5739_v57  ;;  %v7848_v57 = vunpack.c.h.bf16 %v8245_v32 }
 0x572   : > { %v5566_v13 = vpop.f32.mrf.mxu2 }
 0x573   : > { %v6140_v29 = vmax.f32 %v6092_v31, 0.0  ;;  %6030 = vmatmul.bf16.gmra.mxu3 %v5773_v34  ;;  %v5641_v23 = vadd.f32 %v5566_v13, %v5008_v46  ;;  %v7851_v34 = vunpack.c.l.bf16 %v8246_v39 }
 0x575   : > { %v7941_v26 = vpack.c.bf16 %v6140_v29, %v6139_v60  ;;  %v4938_v8 = vpop.f32.mrf.mxu1  ;;  %v5693_v61 = vadd.f32 %v10221_v48, %v5641_v23  ;;  %v4661_v4 = vpop.f32.mrf.mxu0 }
 0x576   : > { %v5991_v16 = vpop.f32.mrf.mxu3  ;;  %v5010_v3 = vadd.f32 %v4938_v8, %v4721_v15 }
 0x577   : > { %8266 = vst [vmem:[%s10291_s17 + $0x28] sm:$0xff] %v7941_v26   ;;  %v5992_v58 = vadd.f32 %v10275_v10, %v5991_v16  ;;  %v5741_v30 = vmax.f32 %v5693_v61, 0.0  ;;  %v10669_v16 = vld [vmem:[#allocation20_spill] sm:$0xff] }
 0x578   : > { %v4723_v59 = vadd.f32 %v10370_v25, %v10669_v16  ;;  %v10403_v25 = vld [vmem:[%s10549_s5] ss:$0 sm:$0xff] }
 0x579   : > { %v6093_v5 = vadd.f32 %v7844_v6, %v5992_v58 }
 0x57a   : > { %v5568_v56 = vpop.f32.mrf.mxu2 }
 0x57b   : > { %v5642_v42 = vadd.f32 %v5568_v56, %v5009_v44  ;;  %v6141_v9 = vmax.f32 %v6093_v5, 0.0  ;;  %v10671_v56 = vld [vmem:[#allocation21_spill] sm:$0xff] }
 0x57c   : > { %v8247_v5 = vld [vmem:[%s9168_s13 + $0x50] sm:$0xff]  }
 0x57d   : > { %v5694_v11 = vadd.f32 %v10221_v48, %v5642_v42  ;;  %v4940_v35 = vpop.f32.mrf.mxu1  ;;  %v7855_v27 = vunpack.c.l.bf16 %v8247_v5 }
 0x57e   : > { %v5993_v52 = vpop.f32.mrf.mxu3  ;;  %v5011_v19 = vadd.f32 %v4940_v35, %v4722_v33 }
 0x57f   : > { %v5742_v18 = vmax.f32 %v5694_v11, 0.0  ;;  %v5994_v0 = vadd.f32 %v10275_v10, %v5993_v52  ;;  %v4664_v52 = vpop.f32.mrf.mxu0 }
 0x581   : > { %v6094_v40 = vadd.f32 %v7847_v45, %v5994_v0  ;;  %v5774_v1 = vpack.c.bf16 %v5742_v18, %v5741_v30  ;;  %v7852_v0 = vunpack.c.h.bf16 %v8246_v39  ;;  %v10674_v39 = vld [vmem:[#allocation24_spill] sm:$0xff] }
 0x582   : > { %v5571_v7 = vpop.f32.mrf.mxu2 }
 0x583   : > { %v6142_v2 = vmax.f32 %v6094_v40, 0.0  ;;  %6035 = vmatmul.bf16.gmra.mxu3 %v5774_v1  ;;  %v5643_v22 = vadd.f32 %v5571_v7, %v5010_v3 }
 0x585   : > { %v7946_v47 = vpack.c.bf16 %v6142_v2, %v6141_v9  ;;  %v4943_v38 = vpop.f32.mrf.mxu1  ;;  %v5695_v37 = vadd.f32 %v10221_v48, %v5643_v22 }
 0x586   : > { %v5996_v41 = vpop.f32.mrf.mxu3  ;;  %v5012_v61 = vadd.f32 %v4943_v38, %v4723_v59  ;;  %v10672_v38 = vld [vmem:[#allocation23_spill] sm:$0xff] }
 0x587   : > { %8267 = vst [vmem:[%s10291_s17 + $0x30] sm:$0xff] %v7946_v47   ;;  %v5997_v54 = vadd.f32 %v10275_v10, %v5996_v41  ;;  %v5743_v53 = vmax.f32 %v5695_v37, 0.0  ;;  %v4725_v41 = vadd.f32 %v4659_v51, %v10672_v38  ;;  %v7856_v51 = vunpack.c.h.bf16 %v8247_v5 }
 0x589   : > { %v6095_v60 = vadd.f32 %v7848_v57, %v5997_v54 }
 0x58a   : > { %v5573_v36 = vpop.f32.mrf.mxu2 }
 0x58b   : > { %v5644_v49 = vadd.f32 %v5573_v36, %v5011_v19  ;;  %v6143_v23 = vmax.f32 %v6095_v60, 0.0  ;;  %v4666_v19 = vpop.f32.mrf.mxu0  ;;  %v10673_v36 = vld [vmem:[#allocation22_spill] sm:$0xff] }
 0x58c   : > { %v4065_v37 = vadd.f32 %v10674_v39, %v10673_v36  ;;  %v8248_v60 = vld [vmem:[%s9168_s13 + $0x58] sm:$0xff]  }
 0x58d   : > { %v5696_v62 = vadd.f32 %v10221_v48, %v5644_v49  ;;  %v4945_v31 = vpop.f32.mrf.mxu1  ;;  %v10670_v48 = vld [vmem:[#allocation19_spill] sm:$0xff]  ;;  %v7859_v16 = vunpack.c.l.bf16 %v8248_v60 }
 0x58e   : > { %v5998_v13 = vpop.f32.mrf.mxu3  ;;  %v4063_v32 = vadd.f32 %v10671_v56, %v10670_v48 }
 0x58f   : > { %v5744_v29 = vmax.f32 %v5696_v62, 0.0  ;;  %v5999_v63 = vadd.f32 %v10275_v10, %v5998_v13 }
 0x590   : > { %v4724_v11 = vadd.f32 %v4656_v12, %v4063_v32 }
 0x591   : > { %v6096_v46 = vadd.f32 %v7851_v34, %v5999_v63  ;;  %v5775_v26 = vpack.c.bf16 %v5744_v29, %v5743_v53 }
 0x592   : > { %v5576_v8 = vpop.f32.mrf.mxu2  ;;  %v5013_v45 = vadd.f32 %v4945_v31, %v4724_v11  ;;  %v4726_v31 = vadd.f32 %v4661_v4, %v4065_v37 }
 0x593   : > { %v6144_v44 = vmax.f32 %v6096_v46, 0.0  ;;  %6040 = vmatmul.bf16.gmra.mxu3 %v5775_v26  ;;  %v5645_v35 = vadd.f32 %v5576_v8, %v5012_v61  ;;  %v4669_v59 = vpop.f32.mrf.mxu0 }
 0x595   : > { %v7951_v6 = vpack.c.bf16 %v6144_v44, %v6143_v23  ;;  %v4948_v58 = vpop.f32.mrf.mxu1  ;;  %v5697_v18 = vadd.f32 %v10403_v25, %v5645_v35 }
 0x596   : > { %v6001_v42 = vpop.f32.mrf.mxu3  ;;  %v5014_v57 = vadd.f32 %v4948_v58, %v4725_v41  ;;  %v10675_v58 = vld [vmem:[#allocation26_spill] sm:$0xff] }
 0x597   : > { %8268 = vst [vmem:[%s10291_s17 + $0x38] sm:$0xff] %v7951_v6   ;;  %v6002_v40 = vadd.f32 %v10275_v10, %v6001_v42  ;;  %v5745_v9 = vmax.f32 %v5697_v18, 0.0  ;;  %v4727_v42 = vadd.f32 %v4664_v52, %v10675_v58  ;;  %v7860_v52 = vunpack.c.h.bf16 %v8248_v60 }
 0x599   : > { %v6097_v2 = vadd.f32 %v7852_v0, %v6002_v40 }
 0x59a   : > { %v5578_v30 = vpop.f32.mrf.mxu2 }
 0x59b   : > { %v5646_v1 = vadd.f32 %v5578_v30, %v5013_v45  ;;  %v6145_v33 = vmax.f32 %v6097_v2, 0.0  ;;  %v10676_v45 = vld [vmem:[#allocation25_spill] sm:$0xff]  ;;  %v10677_v30 = vld [vmem:[#allocation27_spill] sm:$0xff] }
 0x59c   : > { %v4067_v5 = vadd.f32 %v10677_v30, %v10676_v45  ;;  %v8249_v2 = vld [vmem:[%s9168_s13 + $0x60] sm:$0xff]  }
 0x59d   : > { %v5698_v7 = vadd.f32 %v10403_v25, %v5646_v1  ;;  %v4950_v12 = vpop.f32.mrf.mxu1  ;;  %v7863_v38 = vunpack.c.l.bf16 %v8249_v2 }
 0x59e   : > { %v6003_v15 = vpop.f32.mrf.mxu3  ;;  %v5015_v13 = vadd.f32 %v4950_v12, %v4726_v31 }
 0x59f   : > { %v5746_v28 = vmax.f32 %v5698_v7, 0.0  ;;  %v6004_v20 = vadd.f32 %v10275_v10, %v6003_v15  ;;  %v4728_v7 = vadd.f32 %v4666_v19, %v4067_v5 }
 0x5a1   : > { %v6098_v14 = vadd.f32 %v7855_v27, %v6004_v20  ;;  %v5776_v3 = vpack.c.bf16 %v5746_v28, %v5745_v9  ;;  %v4671_v27 = vpop.f32.mrf.mxu0 }
 0x5a2   : > { %v5581_v47 = vpop.f32.mrf.mxu2 }
 0x5a3   : > { %v6146_v22 = vmax.f32 %v6098_v14, 0.0  ;;  %6045 = vmatmul.bf16.gmra.mxu3 %v5776_v3  ;;  %v5647_v34 = vadd.f32 %v5581_v47, %v5014_v57 }
 0x5a5   : > { %v7956_v54 = vpack.c.bf16 %v6146_v22, %v6145_v33  ;;  %v4953_v49 = vpop.f32.mrf.mxu1  ;;  %v5699_v29 = vadd.f32 %v10403_v25, %v5647_v34 }
 0x5a6   : > { %v6006_v62 = vpop.f32.mrf.mxu3  ;;  %v5016_v18 = vadd.f32 %v4953_v49, %v4727_v42  ;;  %v10678_v49 = vld [vmem:[#allocation29_spill] sm:$0xff] }
 0x5a7   : > { %8269 = vst [vmem:[%s10291_s17 + $0x40] sm:$0xff] %v7956_v54   ;;  %v6007_v63 = vadd.f32 %v10275_v10, %v6006_v62  ;;  %v5747_v44 = vmax.f32 %v5699_v29, 0.0  ;;  %v4729_v62 = vadd.f32 %v4669_v59, %v10678_v49 }
 0x5a9   : > { %v6099_v48 = vadd.f32 %v7856_v51, %v6007_v63  ;;  %v4674_v57 = vpop.f32.mrf.mxu0 }
 0x5aa   : > { %v5583_v53 = vpop.f32.mrf.mxu2 }
 0x5ab   : > { %v5648_v46 = vadd.f32 %v5583_v53, %v5015_v13  ;;  %v6147_v11 = vmax.f32 %v6099_v48, 0.0  ;;  %v10679_v13 = vld [vmem:[#allocation28_spill] sm:$0xff]  ;;  %v10680_v53 = vld [vmem:[#allocation30_spill] sm:$0xff] }
 0x5ac   : > { %v4069_v60 = vadd.f32 %v10680_v53, %v10679_v13 }
 0x5ad   : > { %v5700_v26 = vadd.f32 %v10403_v25, %v5648_v46  ;;  %v4955_v8 = vpop.f32.mrf.mxu1 }
 0x5ae   : > { %v6008_v23 = vpop.f32.mrf.mxu3  ;;  %v5017_v15 = vadd.f32 %v4955_v8, %v4728_v7 }
 0x5af   : > { %v5748_v4 = vmax.f32 %v5700_v26, 0.0  ;;  %v6009_v56 = vadd.f32 %v10275_v10, %v6008_v23  ;;  %v4730_v26 = vadd.f32 %v4671_v27, %v4069_v60  ;;  %v10681_v60 = vld [vmem:[#allocation31_spill] sm:$0xff] }
 0x5b1   : > { %v6100_v32 = vadd.f32 %v7859_v16, %v6009_v56  ;;  %v5777_v61 = vpack.c.bf16 %v5748_v4, %v5747_v44  ;;  %v8250_v44 = vld [vmem:[%s9168_s13 + $0x68] sm:$0xff]   ;;  %v7864_v4 = vunpack.c.h.bf16 %v8249_v2 }
 0x5b2   : > { %v5586_v6 = vpop.f32.mrf.mxu2 }
 0x5b3   : > { %v6148_v35 = vmax.f32 %v6100_v32, 0.0  ;;  %6050 = vmatmul.bf16.gmra.mxu3 %v5777_v61  ;;  %v5649_v12 = vadd.f32 %v5586_v6, %v5016_v18  ;;  %v4676_v32 = vpop.f32.mrf.mxu0  ;;  %v7867_v6 = vunpack.c.l.bf16 %v8250_v44 }
 0x5b5   : > { %v7961_v0 = vpack.c.bf16 %v6148_v35, %v6147_v11  ;;  %v4958_v40 = vpop.f32.mrf.mxu1  ;;  %v5701_v28 = vadd.f32 %v10403_v25, %v5649_v12  ;;  %v4071_v12 = vadd.f32 %v10201_v17, %v10194_v50 }
 0x5b6   : > { %v6011_v1 = vpop.f32.mrf.mxu3  ;;  %v5018_v29 = vadd.f32 %v4958_v40, %v4729_v62  ;;  %v4731_v40 = vadd.f32 %v4674_v57, %v10197_v55  ;;  %v7868_v55 = vunpack.c.h.bf16 %v8250_v44 }
 0x5b7   : > { %8270 = vst [vmem:[%s10291_s17 + $0x48] sm:$0xff] %v7961_v0   ;;  %v6012_v20 = vadd.f32 %v10275_v10, %v6011_v1  ;;  %v5749_v33 = vmax.f32 %v5701_v28, 0.0  ;;  %v4732_v28 = vadd.f32 %v4676_v32, %v4071_v12 }
 0x5b9   : > { %v6101_v22 = vadd.f32 %v7860_v52, %v6012_v20 }
 0x5ba   : > { %v5588_v9 = vpop.f32.mrf.mxu2 }
 0x5bb   : > { %v5650_v14 = vadd.f32 %v5588_v9, %v5017_v15  ;;  %v6149_v31 = vmax.f32 %v6101_v22, 0.0  ;;  %v4679_v9 = vpop.f32.mrf.mxu0 }
 0x5bd   : > { %v5702_v3 = vadd.f32 %v10403_v25, %v5650_v14  ;;  %v4960_v47 = vpop.f32.mrf.mxu1 }
 0x5be   : > { %v6013_v41 = vpop.f32.mrf.mxu3  ;;  %v5019_v16 = vadd.f32 %v4960_v47, %v4730_v26  ;;  %v8251_v47 = vld [vmem:[%s9168_s13 + $0x70] sm:$0xff]  }
 0x5bf   : > { %v5750_v19 = vmax.f32 %v5702_v3, 0.0  ;;  %v6014_v36 = vadd.f32 %v10275_v10, %v6013_v41  ;;  %v7871_v50 = vunpack.c.l.bf16 %v8251_v47 }
 0x5c1   : > { %v6102_v39 = vadd.f32 %v7863_v38, %v6014_v36  ;;  %v5778_v37 = vpack.c.bf16 %v5750_v19, %v5749_v33 }
 0x5c2   : > { %v5591_v54 = vpop.f32.mrf.mxu2 }
 0x5c3   : > { %v6150_v34 = vmax.f32 %v6102_v39, 0.0  ;;  %6055 = vmatmul.bf16.gmra.mxu3 %v5778_v37  ;;  %v5651_v8 = vadd.f32 %v5591_v54, %v5018_v29  ;;  %v4681_v57 = vpop.f32.mrf.mxu0  ;;  %v10682_v29 = vld [vmem:[#allocation32_spill] sm:$0xff] }
 0x5c5   : > { %v7966_v51 = vpack.c.bf16 %v6150_v34, %v6149_v31  ;;  %v4963_v63 = vpop.f32.mrf.mxu1  ;;  %v5703_v48 = vadd.f32 %v10403_v25, %v5651_v8  ;;  %v4733_v34 = vadd.f32 %v4679_v9, %v10207_v24 }
 0x5c6   : > { %v6016_v46 = vpop.f32.mrf.mxu3  ;;  %v5020_v27 = vadd.f32 %v4963_v63, %v4731_v40 }
 0x5c7   : > { %8271 = vst [vmem:[%s10291_s17 + $0x50] sm:$0xff] %v7966_v51   ;;  %v6017_v59 = vadd.f32 %v10275_v10, %v6016_v46  ;;  %v5751_v11 = vmax.f32 %v5703_v48, 0.0  ;;  %v4073_v51 = vadd.f32 %v10682_v29, %v10681_v60 }
 0x5c9   : > { %v6103_v35 = vadd.f32 %v7864_v4, %v6017_v59  ;;  %v4734_v8 = vadd.f32 %v4681_v57, %v4073_v51  ;;  %v8252_v4 = vld [vmem:[%s9168_s13 + $0x78] sm:$0xff]  }
 0x5ca   : > { %v5593_v23 = vpop.f32.mrf.mxu2 }
 0x5cb   : > { %v5652_v56 = vadd.f32 %v5593_v23, %v5019_v16  ;;  %v6151_v1 = vmax.f32 %v6103_v35, 0.0  ;;  %v4684_v44 = vpop.f32.mrf.mxu0 }
 0x5cc   : > { %v4735_v40 = vadd.f32 %v4684_v44, %v10214_v43  ;;  %v7876_v43 = vunpack.c.h.bf16 %v8252_v4 }
 0x5cd   : > { %v5704_v61 = vadd.f32 %v10403_v25, %v5652_v56  ;;  %v4965_v58 = vpop.f32.mrf.mxu1  ;;  %v7872_v56 = vunpack.c.h.bf16 %v8251_v47 }
 0x5ce   : > { %v6018_v42 = vpop.f32.mrf.mxu3  ;;  %v5021_v14 = vadd.f32 %v4965_v58, %v4732_v28  ;;  %v7875_v58 = vunpack.c.l.bf16 %v8252_v4 }
 0x5cf   : > { %v5752_v45 = vmax.f32 %v5704_v61, 0.0  ;;  %v6019_v30 = vadd.f32 %v10275_v10, %v6018_v42 }
 0x5d1   : > { %v6104_v5 = vadd.f32 %v7867_v6, %v6019_v30  ;;  %v5779_v18 = vpack.c.bf16 %v5752_v45, %v5751_v11 }
 0x5d2   : > { %v5596_v0 = vpop.f32.mrf.mxu2 }
 0x5d3   : > { %v6152_v7 = vmax.f32 %v6104_v5, 0.0  ;;  %6060 = vmatmul.bf16.gmra.mxu3 %v5779_v18  ;;  %v5653_v52 = vadd.f32 %v5596_v0, %v5020_v27  ;;  %v4686_v12 = vpop.f32.mrf.mxu0  ;;  %v10683_v27 = vld [vmem:[#allocation33_spill] sm:$0xff] }
 0x5d5   : > { %v7971_v15 = vpack.c.bf16 %v6152_v7, %v6151_v1  ;;  %v4968_v20 = vpop.f32.mrf.mxu1  ;;  %v5705_v38 = vadd.f32 %v10403_v25, %v5653_v52 }
 0x5d6   : > { %v6021_v2 = vpop.f32.mrf.mxu3  ;;  %v5022_v63 = vadd.f32 %v4968_v20, %v4733_v34  ;;  %v8254_v34 = vld [vmem:[%s9168_s13 + $0x88] sm:$0xff]  }
 0x5d7   : > { %8272 = vst [vmem:[%s10291_s17 + $0x58] sm:$0xff] %v7971_v15   ;;  %v6022_v41 = vadd.f32 %v10275_v10, %v6021_v2  ;;  %v5753_v19 = vmax.f32 %v5705_v38, 0.0  ;;  %v4075_v15 = vadd.f32 %v10268_v21, %v10683_v27  ;;  %v8253_v38 = vld [vmem:[%s9168_s13 + $0x80] sm:$0xff]   ;;  %v7884_v44 = vunpack.c.h.bf16 %v8254_v34 }
 0x5d9   : > { %v6105_v36 = vadd.f32 %v7868_v55, %v6022_v41  ;;  %v4736_v20 = vadd.f32 %v4686_v12, %v4075_v15  ;;  %v8257_v15 = vld [vmem:[%s9168_s13 + $0xa0] sm:$0xff]  }
 0x5da   : > { %v5598_v3 = vpop.f32.mrf.mxu2 }
 0x5db   : > { %v5654_v33 = vadd.f32 %v5598_v3, %v5021_v14  ;;  %v6153_v13 = vmax.f32 %v6105_v36, 0.0 }
 0x5dd   : > { %v5706_v22 = vadd.f32 %v10403_v25, %v5654_v33  ;;  %v4970_v62 = vpop.f32.mrf.mxu1 }
 0x5de   : > { %v6023_v17 = vpop.f32.mrf.mxu3  ;;  %v5023_v23 = vadd.f32 %v4970_v62, %v4734_v8 }
 0x5df   : > { %v5754_v39 = vmax.f32 %v5706_v22, 0.0  ;;  %v6024_v37 = vadd.f32 %v10275_v10, %v6023_v17  ;;  %v7879_v22 = vunpack.c.l.bf16 %v8253_v38 }
 0x5e1   : > { %v6106_v54 = vadd.f32 %v7871_v50, %v6024_v37  ;;  %v5780_v49 = vpack.c.bf16 %v5754_v39, %v5753_v19 }
 0x5e2   : > { %v5601_v31 = vpop.f32.mrf.mxu2 }
 0x5e3   : > { %v6154_v53 = vmax.f32 %v6106_v54, 0.0  ;;  %6065 = vmatmul.bf16.gmra.mxu3 %v5780_v49  ;;  %v5655_v16 = vadd.f32 %v5601_v31, %v5022_v63 }
 0x5e5   : > { %v7976_v46 = vpack.c.bf16 %v6154_v53, %v6153_v13  ;;  %v5707_v59 = vadd.f32 %v10403_v25, %v5655_v16  ;;  %v4973_v61 = vpop.f32.mrf.mxu1  ;;  %v7880_v13 = vunpack.c.h.bf16 %v8253_v38 }
 0x5e6   : > { %v6026_v26 = vpop.f32.mrf.mxu3  ;;  %v5024_v9 = vadd.f32 %v4973_v61, %v4735_v40 }
 0x5e7   : > { %8273 = vst [vmem:[%s10291_s17 + $0x60] sm:$0xff] %v7976_v46   ;;  %v6027_v24 = vadd.f32 %v10275_v10, %v6026_v26  ;;  %v5755_v11 = vmax.f32 %v5707_v59, 0.0 }
 0x5e9   : > { %v6107_v35 = vadd.f32 %v7872_v56, %v6027_v24 }
 0x5ea   : > { %v5603_v48 = vpop.f32.mrf.mxu2 }
 0x5eb   : > { %v5656_v32 = vadd.f32 %v5603_v48, %v5023_v23  ;;  %v6155_v1 = vmax.f32 %v6107_v35, 0.0  ;;  %v8255_v23 = vld [vmem:[%s9168_s13 + $0x90] sm:$0xff]  }
 0x5ec   : > { %v7887_v4 = vunpack.c.l.bf16 %v8255_v23  ;;  %v7888_v35 = vunpack.c.h.bf16 %v8255_v23 }
 0x5ed   : > { %v5708_v6 = vadd.f32 %v10403_v25, %v5656_v32  ;;  %v4975_v28 = vpop.f32.mrf.mxu1 }
 0x5ee   : > { %v6028_v42 = vpop.f32.mrf.mxu3  ;;  %v5025_v3 = vadd.f32 %v4975_v28, %v4736_v20  ;;  %v7895_v28 = vunpack.c.l.bf16 %v8257_v15 }
 0x5ef   : > { %v5756_v45 = vmax.f32 %v5708_v6, 0.0  ;;  %v6029_v30 = vadd.f32 %v10275_v10, %v6028_v42 }
 0x5f1   : > { %v6108_v5 = vadd.f32 %v7875_v58, %v6029_v30  ;;  %v5781_v18 = vpack.c.bf16 %v5756_v45, %v5755_v11  ;;  %v8256_v11 = vld [vmem:[%s9168_s13 + $0x98] sm:$0xff]  }
 0x5f2   : > { %v5606_v0 = vpop.f32.mrf.mxu2  ;;  %v7891_v30 = vunpack.c.l.bf16 %v8256_v11 }
 0x5f3   : > { %v6156_v7 = vmax.f32 %v6108_v5, 0.0  ;;  %6070 = vmatmul.bf16.gmra.mxu3 %v5781_v18  ;;  %v5657_v14 = vadd.f32 %v5606_v0, %v5024_v9  ;;  %v7892_v9 = vunpack.c.h.bf16 %v8256_v11 }
 0x5f5   : > { %v7981_v2 = vpack.c.bf16 %v6156_v7, %v6155_v1  ;;  %v5709_v55 = vadd.f32 %v10403_v25, %v5657_v14 }
 0x5f6   : > { %v6031_v52 = vpop.f32.mrf.mxu3 }
 0x5f7   : > { %8274 = vst [vmem:[%s10291_s17 + $0x68] sm:$0xff] %v7981_v2   ;;  %v6032_v41 = vadd.f32 %v10275_v10, %v6031_v52  ;;  %v5757_v17 = vmax.f32 %v5709_v55, 0.0 }
 0x5f9   : > { %v6109_v19 = vadd.f32 %v7876_v43, %v6032_v41  ;;  %v8258_v41 = vld [vmem:[%s9168_s13 + $0xa8] sm:$0xff]  }
 0x5fa   : > { %v5608_v47 = vpop.f32.mrf.mxu2 }
 0x5fb   : > { %v5658_v33 = vadd.f32 %v5608_v47, %v5025_v3  ;;  %v6157_v54 = vmax.f32 %v6109_v19, 0.0 }
 0x5fd   : > { %v5710_v21 = vadd.f32 %v10403_v25, %v5658_v33  ;;  %v10468_v25 = vld [vmem:[%s10550_s6] ss:$0 sm:$0xff]  ;;  %v7896_v33 = vunpack.c.h.bf16 %v8257_v15 }
 0x5fe   : > { %v6033_v50 = vpop.f32.mrf.mxu3 }
 0x5ff   : > { %v5758_v36 = vmax.f32 %v5710_v21, 0.0  ;;  %v6034_v39 = vadd.f32 %v10275_v10, %v6033_v50  ;;  %v7883_v10 = vunpack.c.l.bf16 %v8254_v34 }
 0x601   : > { %v6110_v37 = vadd.f32 %v7879_v22, %v6034_v39  ;;  %v5782_v57 = vpack.c.bf16 %v5758_v36, %v5757_v17  ;;  %v7899_v22 = vunpack.c.l.bf16 %v8258_v41 }
 0x603   : > { %v6158_v49 = vmax.f32 %v6110_v37, 0.0  ;;  %6075 = vmatmul.bf16.gmra.mxu3 %v5782_v57 }
 0x605   : > { %v7986_v62 = vpack.c.bf16 %v6158_v49, %v6157_v54  ;;  %v8259_v49 = vld [vmem:[%s9168_s13 + $0xb0] sm:$0xff]  }
 0x606   : > { %v6036_v31 = vpop.f32.mrf.mxu3  ;;  %v7903_v34 = vunpack.c.l.bf16 %v8259_v49 }
 0x607   : > { %8275 = vst [vmem:[%s10291_s17 + $0x70] sm:$0xff] %v7986_v62   ;;  %v6037_v53 = vadd.f32 %v10468_v25, %v6036_v31  ;;  %v7900_v62 = vunpack.c.h.bf16 %v8258_v41 }
 0x609   : > { %v6111_v29 = vadd.f32 %v7880_v13, %v6037_v53 }
 0x60b   : > { %v6159_v46 = vmax.f32 %v6111_v29, 0.0 }
 0x60e   : > { %v6038_v60 = vpop.f32.mrf.mxu3 }
 0x60f   : > { %v6039_v51 = vadd.f32 %v10468_v25, %v6038_v60 }
 0x611   : > { %v6112_v63 = vadd.f32 %v7883_v10, %v6039_v51 }
 0x613   : > { %v6160_v26 = vmax.f32 %v6112_v63, 0.0 }
 0x615   : > { %v7991_v8 = vpack.c.bf16 %v6160_v26, %v6159_v46  ;;  %v8260_v26 = vld [vmem:[%s9168_s13 + $0xb8] sm:$0xff]  }
 0x616   : > { %v6041_v16 = vpop.f32.mrf.mxu3  ;;  %v7907_v23 = vunpack.c.l.bf16 %v8260_v26 }
 0x617   : > { %8276 = vst [vmem:[%s10291_s17 + $0x78] sm:$0xff] %v7991_v8   ;;  %v6042_v48 = vadd.f32 %v10468_v25, %v6041_v16  ;;  %v7904_v8 = vunpack.c.h.bf16 %v8259_v49 }
 0x619   : > { %v6113_v56 = vadd.f32 %v7884_v44, %v6042_v48 }
 0x61b   : > { %v6161_v61 = vmax.f32 %v6113_v56, 0.0 }
 0x61e   : > { %v6043_v59 = vpop.f32.mrf.mxu3 }
 0x61f   : > { %v6044_v24 = vadd.f32 %v10468_v25, %v6043_v59 }
 0x621   : > { %v6114_v32 = vadd.f32 %v7887_v4, %v6044_v24 }
 0x623   : > { %v6162_v6 = vmax.f32 %v6114_v32, 0.0 }
 0x625   : > { %v7996_v58 = vpack.c.bf16 %v6162_v6, %v6161_v61  ;;  %v8261_v6 = vld [vmem:[%s9168_s13 + $0xc0] sm:$0xff]  }
 0x626   : > { %v6046_v42 = vpop.f32.mrf.mxu3  ;;  %v7911_v11 = vunpack.c.l.bf16 %v8261_v6 }
 0x627   : > { %8277 = vst [vmem:[%s10291_s17 + $0x80] sm:$0xff] %v7996_v58   ;;  %v6047_v45 = vadd.f32 %v10468_v25, %v6046_v42  ;;  %v7908_v58 = vunpack.c.h.bf16 %v8260_v26 }
 0x629   : > { %v6115_v18 = vadd.f32 %v7888_v35, %v6047_v45 }
 0x62b   : > { %v6163_v1 = vmax.f32 %v6115_v18, 0.0 }
 0x62e   : > { %v6048_v5 = vpop.f32.mrf.mxu3 }
 0x62f   : > { %v6049_v0 = vadd.f32 %v10468_v25, %v6048_v5 }
 0x631   : > { %v6116_v40 = vadd.f32 %v7891_v30, %v6049_v0 }
 0x633   : > { %v6164_v7 = vmax.f32 %v6116_v40, 0.0 }
 0x635   : > { %v8001_v12 = vpack.c.bf16 %v6164_v7, %v6163_v1  ;;  %v7188_v7 = vld [vmem:[%s9168_s13 + $0xc8] sm:$0xf]  ;;  %s8917_s13 = sshra.s32 %s6291_s16, 4  ;;  %s8918_s13 = int_to_ptr.hbm [resolvable:$true] %s8917_s13 }
 0x636   : > { %v6051_v27 = vpop.f32.mrf.mxu3  ;;  %v5899_v15 = vunpack.c.l.bf16 %v7188_v7  ;;  %s8919_s30 = scalar_lea.hbm %s8918_s13, 192  ;;  %p8924_p8 = scmp.lt.s32.totalorder %s8918_s13, %s10551_s7 }
 0x637   : > { %8278 = vst [vmem:[%s10291_s17 + $0x88] sm:$0xff] %v8001_v12   ;;  %v6052_v2 = vadd.f32 %v10468_v25, %v6051_v27  ;;  %v7912_v12 = vunpack.c.h.bf16 %v8261_v6  ;;  %p8920_p1 = scmp.ne.s32.totalorder %s8918_s13, %s8919_s30  ;;  %p8925_p12 = scmp.lt.s32.totalorder %s8923_s14, %s8919_s30 }
 0x639   : > { %v6117_v20 = vadd.f32 %v7892_v9, %v6052_v2  ;;  %p8921_p2 = pnand %p8920_p1, %p9143_p5  ;;  %p8926_p13 = por %p8925_p12, %p8924_p8 }
 0x63b   : > { %v6165_v47 = vmax.f32 %v6117_v20, 0.0  ;;  %p8922_p4 = pneg %p8921_p2 }
 0x63d   : > { %p8927_p0 = pnand %p8926_p13, %p8922_p4 }
 0x63e   : > { %v6053_v52 = vpop.f32.mrf.mxu3 }
 0x63f   : > { %v6054_v14 = vadd.f32 %v10468_v25, %v6053_v52 }
 0x641   : > { %v6118_v3 = vadd.f32 %v7895_v28, %v6054_v14 }
 0x643   : > { %v6166_v38 = vmax.f32 %v6118_v3, 0.0 }
 0x645   : > { %v8006_v55 = vpack.c.bf16 %v6166_v38, %v6165_v47 }
 0x646   : > { %v6056_v43 = vpop.f32.mrf.mxu3 }
 0x647   : > { %8279 = vst [vmem:[%s10291_s17 + $0x90] sm:$0xff] %v8006_v55   ;;  %v6057_v21 = vadd.f32 %v10468_v25, %v6056_v43 }
 0x649   : > { %v6119_v17 = vadd.f32 %v7896_v33, %v6057_v21 }
 0x64b   : > { %v6167_v39 = vmax.f32 %v6119_v17, 0.0 }
 0x64e   : > { %v6058_v50 = vpop.f32.mrf.mxu3 }
 0x64f   : > { %v6059_v19 = vadd.f32 %v10468_v25, %v6058_v50 }
 0x651   : > { %v6120_v36 = vadd.f32 %v7899_v22, %v6059_v19 }
 0x653   : > { %v6168_v37 = vmax.f32 %v6120_v36, 0.0 }
 0x655   : > { %v8011_v57 = vpack.c.bf16 %v6168_v37, %v6167_v39 }
 0x656   : > { %v6061_v54 = vpop.f32.mrf.mxu3 }
 0x657   : > { %8280 = vst [vmem:[%s10291_s17 + $0x98] sm:$0xff] %v8011_v57   ;;  %v6062_v31 = vadd.f32 %v10468_v25, %v6061_v54 }
 0x659   : > { %v6121_v53 = vadd.f32 %v7900_v62, %v6062_v31 }
 0x65b   : > { %v6169_v29 = vmax.f32 %v6121_v53, 0.0 }
 0x65e   : > { %v6063_v13 = vpop.f32.mrf.mxu3 }
 0x65f   : > { %v6064_v10 = vadd.f32 %v10468_v25, %v6063_v13 }
 0x661   : > { %v6122_v60 = vadd.f32 %v7903_v34, %v6064_v10 }
 0x663   : > { %v6170_v51 = vmax.f32 %v6122_v60, 0.0 }
 0x665   : > { %v8016_v63 = vpack.c.bf16 %v6170_v51, %v6169_v29 }
 0x666   : > { %v6066_v46 = vpop.f32.mrf.mxu3 }
 0x667   : > { %8281 = vst [vmem:[%s10291_s17 + $0xa0] sm:$0xff] %v8016_v63   ;;  %v6067_v16 = vadd.f32 %v10468_v25, %v6066_v46 }
 0x669   : > { %v6123_v48 = vadd.f32 %v7904_v8, %v6067_v16 }
 0x66b   : > { %v6171_v56 = vmax.f32 %v6123_v48, 0.0 }
 0x66e   : > { %v6068_v44 = vpop.f32.mrf.mxu3 }
 0x66f   : > { %v6069_v4 = vadd.f32 %v10468_v25, %v6068_v44 }
 0x671   : > { %v6124_v59 = vadd.f32 %v7907_v23, %v6069_v4 }
 0x673   : > { %v6172_v24 = vmax.f32 %v6124_v59, 0.0 }
 0x675   : > { %v8021_v32 = vpack.c.bf16 %v6172_v24, %v6171_v56 }
 0x676   : > { %v6071_v61 = vpop.f32.mrf.mxu3 }
 0x677   : > { %8282 = vst [vmem:[%s10291_s17 + $0xa8] sm:$0xff] %v8021_v32   ;;  %v6072_v42 = vadd.f32 %v10468_v25, %v6071_v61 }
 0x679   : > { %v6125_v45 = vadd.f32 %v7908_v58, %v6072_v42 }
 0x67b   : > { %v6173_v18 = vmax.f32 %v6125_v45, 0.0 }
 0x67e   : > { %v6073_v35 = vpop.f32.mrf.mxu3 }
 0x67f   : > { %v6074_v30 = vadd.f32 %v10468_v25, %v6073_v35 }
 0x681   : > { %v6126_v5 = vadd.f32 %v7911_v11, %v6074_v30 }
 0x683   : > { %v6174_v0 = vmax.f32 %v6126_v5, 0.0 }
 0x685   : > { %v8026_v40 = vpack.c.bf16 %v6174_v0, %v6173_v18 }
 0x686   : > { %v6076_v1 = vpop.f32.mrf.mxu3 }
 0x687   : > { %8283 = vst [vmem:[%s10291_s17 + $0xb0] sm:$0xff] %v8026_v40   ;;  %v6077_v27 = vadd.f32 %v10468_v25, %v6076_v1 }
 0x689   : > { %v6127_v2 = vadd.f32 %v7912_v12, %v6077_v27 }
 0x68b   : > { %v6175_v20 = vmax.f32 %v6127_v2, 0.0 }
 0x68e   : > { %v6078_v9 = vpop.f32.mrf.mxu3 }
 0x68f   : > { %v6079_v28 = vadd.f32 %v10468_v25, %v6078_v9 }
 0x691   : > { %v6128_v52 = vadd.f32 %v6079_v28, %v5899_v15 }
 0x693   : > { %v6176_v14 = vmax.f32 %v6128_v52, 0.0 }
 0x695   : > { %v8031_v3 = vpack.c.bf16 %v6176_v14, %v6175_v20 }
 0x697   : > { %8284 = vst [vmem:[%s10291_s17 + $0xb8] sm:$0xff] %v8031_v3  }
 0x698   : > { %8930 = shalt.err (!%p8927_p0)
}
 0x699   : > { %s9001_s18 = smov 64   ;;  %s9002_s17 = smov 4  }
 0x69a   : > { %8692 = dma.vmem_to_hbm [thread:$0]  (%p9143_p5), %s6289_s11, 3072, %s6291_s16, %s6274_s27, %s9001_s18, %s9001_s18, %s9002_s17  }
 0x69b PF: > { %s6305_s10 = sand.u32 1, %s8973_s24   ;;  %p8709_p3 = pnand %p6416_p11, %p9092_p6 }
 0x69c   : > { %s6306_s19 = scalar_lea.sflag [#allocation5], %s6305_s10 }
 0x69d   : > { %p8710_p7 = pneg %p8709_p3 }
 0x69f   : > { %8968 = dma.done.wait (%p8710_p7), %s6306_s19, 3072  }
 0x6a0   : > { %8970 = vsyncadd (%p8710_p7), %s6306_s19, 4294964224  ;;  %s25_s29 = sadd.s32 1, %s8993_s29   ;;  %s10684_s22 = sld [smem:[#allocation16_spill]] }
 0x6a1   : > { %p22_p9 = scmp.ge.s32.totalorder %s25_s29, 4   ;;  %s10685_s24 = smov %s8977_s25 }
 0x6a2   : > { %s10686_s25 = smov %s8981_s26  ;;  %s10687_s26 = smov %s9152_s1 }
 0x6a3   : > { %s10688_s27 = smov %s8989_s28  ;;  %24 = sbr.rel (!%p22_p9) target bundleno = 12 (0xc), region = 116 }
 0x6a6   : > { %s10689_s28 = smov %s10684_s22 }
 0x6a8   :  { %6312 = vsyncpa [#allocation4], 1 }
 0x6a9   :  { %6314 = vsyncpa [#allocation4 + $0x1], 1 }
 0x6aa   :  { %6315 = vsyncpa [#allocation7], 1 }
 0x6ab   :  { %6316 = vsyncpa [#allocation10], 1 }
 0x6ac   :  { %6317 = vsyncpa [#allocation5], 1 }
 0x6ad   :  { %6319 = vsyncpa [#allocation5 + $0x1], 1 }

</bundles_post_ra>
